<compile_context>
chip_gen: v5e
topology: v5e:2x2
jax: 0.10.0
libtpu: 0.0.40
codegen_flags: <defaults>
</compile_context>

<pallas_src>
import functools

import jax
import jax.numpy as jnp
from jax import lax
from jax.experimental import pallas as pl
from jax.experimental.pallas import tpu as pltpu

LANE = 128


def _round_up(x, m):
    return (x + m - 1) // m * m


def _full_block_spec(arr):
    """Full-extent block, constant index map (array fully resident in VMEM)."""
    nd = arr.ndim
    return pl.BlockSpec(arr.shape, lambda i, _nd=nd: (0,) * _nd)


# ---------------------------------------------------------------------------
# Single fused kernel: L x (GIN agg + GIN_MLP [+skip] + ReLU) -> pooling -> head
# ---------------------------------------------------------------------------
def _fused_gnn_kernel(*refs, num_layers, eps, skip_connection, n_valid):
    x_ref, adj_ref = refs[0], refs[1]
    gin_refs = refs[2:2 + 4 * num_layers]
    hw0_ref, hb0_ref, hw1_ref, hb1_ref, hw2_ref, hb2_ref = refs[2 + 4 * num_layers:-1]
    o_ref = refs[-1]

    # int8 adjacency -> bf16 once (VPU cast, hidden under the MXU); reused per layer.
    adj = adj_ref[...].astype(jnp.float32).astype(jnp.bfloat16)   # [n_pad, n_pad]
    h = x_ref[...]                                                # [n_pad, d_pad] bf16

    for li in range(num_layers):
        w0, b0, w1, b1 = gin_refs[4 * li:4 * li + 4]
        # GIN aggregation: (1+eps)*x_i + sum_{j in N(i)} x_j   (A @ X, bf16 MXU, f32 acc)
        agg = jnp.dot(adj, h, preferred_element_type=jnp.float32)
        agg = agg + (1.0 + eps) * h.astype(jnp.float32)
        # GIN_MLP: Linear -> ReLU -> Linear  (bf16 operands, f32 accumulation)
        t = jnp.dot(agg.astype(jnp.bfloat16), w0[...],
                    preferred_element_type=jnp.float32) + b0[...]
        t = jnp.maximum(t, 0.0)
        y = jnp.dot(t.astype(jnp.bfloat16), w1[...],
                    preferred_element_type=jnp.float32) + b1[...]
        if skip_connection and 0 < li < num_layers - 1:           # middle layers only
            y = y + h.astype(jnp.float32)
        y = jnp.maximum(y, 0.0)                                   # gnn_activation (ReLU)
        h = y.astype(jnp.bfloat16)                                # stays in VMEM

    # GlobalPooling(['add','max','mean'], mode='cat') over nodes; padded rows masked.
    hf = h.astype(jnp.float32)
    rows = lax.broadcasted_iota(jnp.int32, hf.shape, 0)
    valid = rows < n_valid
    s = jnp.sum(jnp.where(valid, hf, 0.0), axis=0, keepdims=True)          # 'add'
    mx = jnp.max(jnp.where(valid, hf, -jnp.inf), axis=0, keepdims=True)    # 'max'
    mean = s * (1.0 / n_valid)                                             # 'mean'

    # MLP head: Linear -> ReLU -> Linear -> ReLU -> Linear (bf16 x bf16, f32 acc).
    # hw0 is stacked [3, d_pad, hh_p] (one padded block per pooled segment), so the
    # concat is expressed as three accumulated matmuls (no lane concatenation needed).
    d = hf.shape[1]
    p_s = jnp.broadcast_to(s, (8, d)).astype(jnp.bfloat16)
    p_m = jnp.broadcast_to(mx, (8, d)).astype(jnp.bfloat16)
    p_a = jnp.broadcast_to(mean, (8, d)).astype(jnp.bfloat16)
    t0 = (jnp.dot(p_s, hw0_ref[0], preferred_element_type=jnp.float32)
          + jnp.dot(p_m, hw0_ref[1], preferred_element_type=jnp.float32)
          + jnp.dot(p_a, hw0_ref[2], preferred_element_type=jnp.float32)
          + hb0_ref[...])
    t0 = jnp.maximum(t0, 0.0)
    t1 = jnp.dot(t0.astype(jnp.bfloat16), hw1_ref[...],
                 preferred_element_type=jnp.float32) + hb1_ref[...]
    t1 = jnp.maximum(t1, 0.0)
    out = jnp.dot(t1.astype(jnp.bfloat16), hw2_ref[...],
                  preferred_element_type=jnp.float32) + hb2_ref[...]
    o_ref[...] = out                                              # lane-dense f32 store


def gnn_model_forward(x_pad, adj_pad, gin_params, head_params, *,
                      eps, skip_connection, n_nodes, out_dim):
    num_layers = len(gin_params)
    n_pad, _ = x_pad.shape
    flat_gin = [a for layer in gin_params for a in layer]
    hw0, hb0, hw1, hb1, hw2, hb2 = head_params
    inputs = [x_pad, adj_pad, *flat_gin, hw0, hb0, hw1, hb1, hw2, hb2]

    out_p = hw2.shape[1]
    out_shape = jax.ShapeDtypeStruct((8, out_p), jnp.float32)
    in_specs = [_full_block_spec(a) for a in inputs]
    out_specs = pl.BlockSpec((8, out_p), lambda i: (0, 0))

    # FLOP / byte estimates for the XLA scheduler.
    flops = 0
    for (w0, _, w1, _) in gin_params:
        flops += 2 * n_pad * n_pad * w0.shape[0]            # A @ X
        flops += 2 * n_pad * w0.shape[0] * w0.shape[1]      # agg @ W0
        flops += 2 * n_pad * w1.shape[0] * w1.shape[1]      # h @ W1
    flops += 2 * 8 * (hw0.shape[0] * hw0.shape[1] * hw0.shape[2]
                      + hw1.shape[0] * hw1.shape[1] + hw2.shape[0] * hw2.shape[1])
    io_bytes = sum(int(a.size) * a.dtype.itemsize for a in inputs) + 8 * out_p * 4

    # VMEM budget from the actual buffers (double-buffered pipeline copies) plus
    # in-kernel temporaries (f32/bf16 adjacency copies, f32 activations) + headroom.
    feat_pad = max(int(a.shape[-1]) for a in (inputs[0], *inputs[2:]))
    tmp_bytes = n_pad * n_pad * (4 + 2) + 8 * n_pad * feat_pad * 4
    vmem_limit = min(int(2 * io_bytes + tmp_bytes) + (16 << 20), 64 << 20)

    out = pl.pallas_call(
        functools.partial(_fused_gnn_kernel, num_layers=num_layers, eps=eps,
                          skip_connection=skip_connection, n_valid=n_nodes),
        out_shape=out_shape,
        grid_spec=pltpu.PrefetchScalarGridSpec(
            num_scalar_prefetch=0,
            grid=(1,),
            in_specs=in_specs,
            out_specs=out_specs,
        ),
        compiler_params=pltpu.CompilerParams(
            dimension_semantics=("arbitrary",),
            vmem_limit_bytes=vmem_limit,
        ),
        cost_estimate=pl.CostEstimate(flops=int(flops), transcendentals=0,
                                      bytes_accessed=int(io_bytes)),
    )(*inputs)
    # TODO(synk): optional output_activation (e.g. Softmax) not applied (None here).
    return out[0:1, :out_dim]                                   # [num_graphs=1, out_dim]


# ---------------------------------------------------------------------------
# Pure-JAX reference (mirrors the kernel's bf16 quantization points)
# ---------------------------------------------------------------------------
def reference_forward(x_pad, adj_pad, gin_params, head_params, *,
                      eps, skip_connection, n_nodes, out_dim):
    f32 = jnp.float32
    adj = adj_pad.astype(f32)
    num_layers = len(gin_params)

    h = x_pad
    for li, (w0t, b0, w1t, b1) in enumerate(gin_params):
        hf = h.astype(f32)
        agg = jnp.dot(adj, hf) + (1.0 + eps) * hf
        t = jnp.maximum(
            jnp.dot(agg.astype(jnp.bfloat16).astype(f32), w0t.astype(f32)) + b0, 0.0)
        y = jnp.dot(t.astype(jnp.bfloat16).astype(f32), w1t.astype(f32)) + b1
        if skip_connection and 0 < li < num_layers - 1:
            y = y + hf
        y = jnp.maximum(y, 0.0)
        h = y.astype(jnp.bfloat16)

    hf = h.astype(f32)
    valid = (jnp.arange(hf.shape[0]) < n_nodes)[:, None]
    s = jnp.sum(jnp.where(valid, hf, 0.0), axis=0, keepdims=True)
    m = jnp.max(jnp.where(valid, hf, -jnp.inf), axis=0, keepdims=True)
    mean = s * (1.0 / n_nodes)

    hw0, hb0, hw1, hb1, hw2, hb2 = head_params

    def bdot(a, b):
        return jnp.dot(a.astype(jnp.bfloat16).astype(f32), b.astype(f32))

    t = bdot(s, hw0[0]) + bdot(m, hw0[1]) + bdot(mean, hw0[2]) + hb0
    t = jnp.maximum(t, 0.0)
    t = jnp.maximum(bdot(t, hw1) + hb1, 0.0)
    y = bdot(t, hw2) + hb2
    return y[:, :out_dim]


if __name__ == "__main__":
    # GNNModel config: GINConv_GNNB conv, ReLU activations, skip connections,
    # GlobalPooling(['add','max','mean'], 'cat'), MLP head hidden_layers=2,
    # output_activation=None, single graph (batch=None).
    N_NODES, N_EDGES = 300, 1200
    FEAT_DIM = 16        # graph_input_feature_dim
    GNN_HIDDEN = 32      # gnn_hidden_dim
    GNN_LAYERS = 3       # gnn_num_layers
    GNN_OUT = 24         # gnn_output_dim
    HEAD_HIDDEN = 64     # mlp_head.hidden_dim
    HEAD_OUT = 10        # mlp_head.out_dim
    EPS = 0.0            # GINConv eps
    SKIP = True          # gnn_skip_connection

    n_pad = _round_up(N_NODES, LANE)          # 384
    in0_p = _round_up(FEAT_DIM, LANE)         # 128 (lane-dense layer-0 input, per review)
    hid_p = _round_up(GNN_HIDDEN, LANE)       # 128
    gout_p = _round_up(GNN_OUT, LANE)         # 128
    hh_p = _round_up(HEAD_HIDDEN, LANE)       # 128
    ho_p = _round_up(HEAD_OUT, LANE)          # 128

    key = jax.random.PRNGKey(0)
    k_x, k_src, k_dst, k_p = jax.random.split(key, 4)

    # Node features, padded in both node-rows and feature-lanes, streamed as bf16.
    x = jax.random.normal(k_x, (N_NODES, FEAT_DIM), jnp.float32)
    x_pad = jnp.zeros((n_pad, in0_p), jnp.float32).at[:N_NODES, :FEAT_DIM].set(x)
    x_pad = x_pad.astype(jnp.bfloat16)

    # Random edge_index -> dense padded adjacency A[dst, src] for GIN sum-aggregation.
    # int8 halves the dominant O(N^2) HBM bytes (exact for edge multiplicities <= 127).
    src = jax.random.randint(k_src, (N_EDGES,), 0, N_NODES)
    dst = jax.random.randint(k_dst, (N_EDGES,), 0, N_NODES)
    adj_pad = (jnp.zeros((n_pad, n_pad), jnp.int32).at[dst, src].add(1)).astype(jnp.int8)

    def init_linear(k, fan_in, fan_out):
        kw, kb = jax.random.split(k)
        bound = 1.0 / jnp.sqrt(jnp.float32(fan_in))
        wt = jax.random.uniform(kw, (fan_in, fan_out), jnp.float32, -bound, bound)
        b = jax.random.uniform(kb, (fan_out,), jnp.float32, -bound, bound)
        return wt, b  # stored transposed: (in, out) == torch W.T

    def pad_wt(wt, rows, cols):
        return jnp.zeros((rows, cols), jnp.float32).at[:wt.shape[0], :wt.shape[1]].set(wt)

    def pad_b(b, cols):
        return jnp.zeros((1, cols), jnp.float32).at[0, :b.shape[0]].set(b)

    # GIN layers: GINConv_GNNB uses GIN_MLP(in, out, hidden=out).
    layer_dims = []
    for li in range(GNN_LAYERS):
        in_d = FEAT_DIM if li == 0 else GNN_HIDDEN
        out_d = GNN_OUT if li == GNN_LAYERS - 1 else GNN_HIDDEN
        layer_dims.append((in_d, out_d))

    keys = jax.random.split(k_p, 2 * GNN_LAYERS + 3)
    gin_params = []
    for li, (in_d, out_d) in enumerate(layer_dims):
        in_p = in0_p if li == 0 else hid_p
        out_p = gout_p if li == GNN_LAYERS - 1 else hid_p
        w0, b0 = init_linear(keys[2 * li], in_d, out_d)        # Linear(in, hidden=out)
        w1, b1 = init_linear(keys[2 * li + 1], out_d, out_d)   # Linear(hidden, out)
        gin_params.append((
            pad_wt(w0, in_p, out_p).astype(jnp.bfloat16), pad_b(b0, out_p),
            pad_wt(w1, out_p, out_p).astype(jnp.bfloat16), pad_b(b1, out_p),
        ))

    # MLP head; first layer stored as [3, gout_p, hh_p] (one padded block per pooled
    # segment: sum | max | mean) so the kernel avoids a lane concatenation.
    hw0, hb0 = init_linear(keys[-3], 3 * GNN_OUT, HEAD_HIDDEN)
    hw1, hb1 = init_linear(keys[-2], HEAD_HIDDEN, HEAD_HIDDEN)
    hw2, hb2 = init_linear(keys[-1], HEAD_HIDDEN, HEAD_OUT)
    hw0_stack = jnp.zeros((3, gout_p, hh_p), jnp.float32)
    for a in range(3):
        hw0_stack = hw0_stack.at[a, :GNN_OUT, :HEAD_HIDDEN].set(
            hw0[a * GNN_OUT:(a + 1) * GNN_OUT, :])
    head_params = (
        hw0_stack.astype(jnp.bfloat16), pad_b(hb0, hh_p),
        pad_wt(hw1, hh_p, hh_p).astype(jnp.bfloat16), pad_b(hb1, hh_p),
        pad_wt(hw2, hh_p, ho_p).astype(jnp.bfloat16), pad_b(hb2, ho_p),
    )

    fwd = jax.jit(functools.partial(
        gnn_model_forward, eps=EPS, skip_connection=SKIP, n_nodes=N_NODES,
        out_dim=HEAD_OUT))
    out = jax.block_until_ready(fwd(x_pad, adj_pad, gin_params, head_params))

    ref = reference_forward(x_pad, adj_pad, gin_params, head_params,
                            eps=EPS, skip_connection=SKIP, n_nodes=N_NODES,
                            out_dim=HEAD_OUT)

    assert out.shape == (1, HEAD_OUT)
    assert bool(jnp.all(jnp.isfinite(out)))
    scale = max(float(jnp.max(jnp.abs(ref))), 1.0)
    max_diff = float(jnp.max(jnp.abs(out - ref.astype(out.dtype))))
    assert max_diff <= 2e-2 * scale, f"max abs diff {max_diff} vs scale {scale}"
    print("KERNEL_OK")
</pallas_src>

<mosaic_0001>
module attributes {stable_mosaic.version = 11 : i64} {
  func.func @_fused_gnn_kernel(%arg0: i32, %arg1: memref<384x128xbf16, #tpu.memory_space<vmem>>, %arg2: memref<384x384xi8, #tpu.memory_space<vmem>>, %arg3: memref<128x128xbf16, #tpu.memory_space<vmem>>, %arg4: memref<1x128xf32, #tpu.memory_space<vmem>>, %arg5: memref<128x128xbf16, #tpu.memory_space<vmem>>, %arg6: memref<1x128xf32, #tpu.memory_space<vmem>>, %arg7: memref<128x128xbf16, #tpu.memory_space<vmem>>, %arg8: memref<1x128xf32, #tpu.memory_space<vmem>>, %arg9: memref<128x128xbf16, #tpu.memory_space<vmem>>, %arg10: memref<1x128xf32, #tpu.memory_space<vmem>>, %arg11: memref<128x128xbf16, #tpu.memory_space<vmem>>, %arg12: memref<1x128xf32, #tpu.memory_space<vmem>>, %arg13: memref<128x128xbf16, #tpu.memory_space<vmem>>, %arg14: memref<1x128xf32, #tpu.memory_space<vmem>>, %arg15: memref<3x128x128xbf16, #tpu.memory_space<vmem>>, %arg16: memref<1x128xf32, #tpu.memory_space<vmem>>, %arg17: memref<128x128xbf16, #tpu.memory_space<vmem>>, %arg18: memref<1x128xf32, #tpu.memory_space<vmem>>, %arg19: memref<128x128xbf16, #tpu.memory_space<vmem>>, %arg20: memref<1x128xf32, #tpu.memory_space<vmem>>, %arg21: memref<8x128xf32, #tpu.memory_space<vmem>>) attributes {dimension_semantics = [#tpu.dimension_semantics<arbitrary>], iteration_bounds = array<i64: 1>, scalar_prefetch = 0 : i64, scratch_operands = 0 : i64, tpu.core_type = #tpu.core_type<tc>, window_params = [{pipeline_mode = #tpu.pipeline_mode<synchronous>, transform_indices = @transform_0, window_bounds = array<i64: 384, 128>}, {pipeline_mode = #tpu.pipeline_mode<synchronous>, transform_indices = @transform_1, window_bounds = array<i64: 384, 384>}, {pipeline_mode = #tpu.pipeline_mode<synchronous>, transform_indices = @transform_2, window_bounds = array<i64: 128, 128>}, {pipeline_mode = #tpu.pipeline_mode<synchronous>, transform_indices = @transform_3, window_bounds = array<i64: 1, 128>}, {pipeline_mode = #tpu.pipeline_mode<synchronous>, transform_indices = @transform_4, window_bounds = array<i64: 128, 128>}, {pipeline_mode = #tpu.pipeline_mode<synchronous>, transform_indices = @transform_5, window_bounds = array<i64: 1, 128>}, {pipeline_mode = #tpu.pipeline_mode<synchronous>, transform_indices = @transform_6, window_bounds = array<i64: 128, 128>}, {pipeline_mode = #tpu.pipeline_mode<synchronous>, transform_indices = @transform_7, window_bounds = array<i64: 1, 128>}, {pipeline_mode = #tpu.pipeline_mode<synchronous>, transform_indices = @transform_8, window_bounds = array<i64: 128, 128>}, {pipeline_mode = #tpu.pipeline_mode<synchronous>, transform_indices = @transform_9, window_bounds = array<i64: 1, 128>}, {pipeline_mode = #tpu.pipeline_mode<synchronous>, transform_indices = @transform_10, window_bounds = array<i64: 128, 128>}, {pipeline_mode = #tpu.pipeline_mode<synchronous>, transform_indices = @transform_11, window_bounds = array<i64: 1, 128>}, {pipeline_mode = #tpu.pipeline_mode<synchronous>, transform_indices = @transform_12, window_bounds = array<i64: 128, 128>}, {pipeline_mode = #tpu.pipeline_mode<synchronous>, transform_indices = @transform_13, window_bounds = array<i64: 1, 128>}, {pipeline_mode = #tpu.pipeline_mode<synchronous>, transform_indices = @transform_14, window_bounds = array<i64: 3, 128, 128>}, {pipeline_mode = #tpu.pipeline_mode<synchronous>, transform_indices = @transform_15, window_bounds = array<i64: 1, 128>}, {pipeline_mode = #tpu.pipeline_mode<synchronous>, transform_indices = @transform_16, window_bounds = array<i64: 128, 128>}, {pipeline_mode = #tpu.pipeline_mode<synchronous>, transform_indices = @transform_17, window_bounds = array<i64: 1, 128>}, {pipeline_mode = #tpu.pipeline_mode<synchronous>, transform_indices = @transform_18, window_bounds = array<i64: 128, 128>}, {pipeline_mode = #tpu.pipeline_mode<synchronous>, transform_indices = @transform_19, window_bounds = array<i64: 1, 128>}, {pipeline_mode = #tpu.pipeline_mode<synchronous>, transform_indices = @transform_20, window_bounds = array<i64: 8, 128>}]} {
    %c0 = arith.constant 0 : index
    %c0_0 = arith.constant 0 : index
    %0 = vector.load %arg2[%c0, %c0_0] : memref<384x384xi8, #tpu.memory_space<vmem>>, vector<384x384xi8>
    %1 = arith.sitofp %0 : vector<384x384xi8> to vector<384x384xf32>
    %2 = arith.truncf %1 : vector<384x384xf32> to vector<384x384xbf16>
    %c0_1 = arith.constant 0 : index
    %c0_2 = arith.constant 0 : index
    %3 = vector.load %arg1[%c0_1, %c0_2] : memref<384x128xbf16, #tpu.memory_space<vmem>>, vector<384x128xbf16>
    %cst = arith.constant dense<0.000000e+00> : vector<384x128xf32>
    %4 = tpu.matmul %2, %3, %cst {dimension_numbers = #tpu.dot_dimension_numbers<[1], [0], [0], [1], [0, 0, 1, 1], [], []>} : vector<384x384xbf16>, vector<384x128xbf16>, vector<384x128xf32> -> vector<384x128xf32>
    %5 = arith.extf %3 : vector<384x128xbf16> to vector<384x128xf32>
    %cst_3 = arith.constant 1.000000e+00 : f32
    %6 = vector.broadcast %cst_3 : f32 to vector<384x128xf32>
    %7 = arith.mulf %6, %5 : vector<384x128xf32>
    %8 = arith.addf %4, %7 : vector<384x128xf32>
    %9 = arith.truncf %8 : vector<384x128xf32> to vector<384x128xbf16>
    %c0_4 = arith.constant 0 : index
    %c0_5 = arith.constant 0 : index
    %10 = vector.load %arg3[%c0_4, %c0_5] : memref<128x128xbf16, #tpu.memory_space<vmem>>, vector<128x128xbf16>
    %cst_6 = arith.constant dense<0.000000e+00> : vector<384x128xf32>
    %11 = tpu.matmul %9, %10, %cst_6 {dimension_numbers = #tpu.dot_dimension_numbers<[1], [0], [0], [1], [0, 0, 1, 1], [], []>} : vector<384x128xbf16>, vector<128x128xbf16>, vector<384x128xf32> -> vector<384x128xf32>
    %c0_7 = arith.constant 0 : index
    %c0_8 = arith.constant 0 : index
    %12 = vector.load %arg4[%c0_7, %c0_8] : memref<1x128xf32, #tpu.memory_space<vmem>>, vector<1x128xf32>
    %13 = vector.broadcast %12 : vector<1x128xf32> to vector<384x128xf32>
    %14 = arith.addf %11, %13 : vector<384x128xf32>
    %cst_9 = arith.constant 0.000000e+00 : f32
    %15 = vector.broadcast %cst_9 : f32 to vector<384x128xf32>
    %16 = arith.maximumf %14, %15 : vector<384x128xf32>
    %17 = arith.truncf %16 : vector<384x128xf32> to vector<384x128xbf16>
    %c0_10 = arith.constant 0 : index
    %c0_11 = arith.constant 0 : index
    %18 = vector.load %arg5[%c0_10, %c0_11] : memref<128x128xbf16, #tpu.memory_space<vmem>>, vector<128x128xbf16>
    %cst_12 = arith.constant dense<0.000000e+00> : vector<384x128xf32>
    %19 = tpu.matmul %17, %18, %cst_12 {dimension_numbers = #tpu.dot_dimension_numbers<[1], [0], [0], [1], [0, 0, 1, 1], [], []>} : vector<384x128xbf16>, vector<128x128xbf16>, vector<384x128xf32> -> vector<384x128xf32>
    %c0_13 = arith.constant 0 : index
    %c0_14 = arith.constant 0 : index
    %20 = vector.load %arg6[%c0_13, %c0_14] : memref<1x128xf32, #tpu.memory_space<vmem>>, vector<1x128xf32>
    %21 = vector.broadcast %20 : vector<1x128xf32> to vector<384x128xf32>
    %22 = arith.addf %19, %21 : vector<384x128xf32>
    %cst_15 = arith.constant 0.000000e+00 : f32
    %23 = vector.broadcast %cst_15 : f32 to vector<384x128xf32>
    %24 = arith.maximumf %22, %23 : vector<384x128xf32>
    %25 = arith.truncf %24 : vector<384x128xf32> to vector<384x128xbf16>
    %cst_16 = arith.constant dense<0.000000e+00> : vector<384x128xf32>
    %26 = tpu.matmul %2, %25, %cst_16 {dimension_numbers = #tpu.dot_dimension_numbers<[1], [0], [0], [1], [0, 0, 1, 1], [], []>} : vector<384x384xbf16>, vector<384x128xbf16>, vector<384x128xf32> -> vector<384x128xf32>
    %27 = arith.extf %25 : vector<384x128xbf16> to vector<384x128xf32>
    %cst_17 = arith.constant 1.000000e+00 : f32
    %28 = vector.broadcast %cst_17 : f32 to vector<384x128xf32>
    %29 = arith.mulf %28, %27 : vector<384x128xf32>
    %30 = arith.addf %26, %29 : vector<384x128xf32>
    %31 = arith.truncf %30 : vector<384x128xf32> to vector<384x128xbf16>
    %c0_18 = arith.constant 0 : index
    %c0_19 = arith.constant 0 : index
    %32 = vector.load %arg7[%c0_18, %c0_19] : memref<128x128xbf16, #tpu.memory_space<vmem>>, vector<128x128xbf16>
    %cst_20 = arith.constant dense<0.000000e+00> : vector<384x128xf32>
    %33 = tpu.matmul %31, %32, %cst_20 {dimension_numbers = #tpu.dot_dimension_numbers<[1], [0], [0], [1], [0, 0, 1, 1], [], []>} : vector<384x128xbf16>, vector<128x128xbf16>, vector<384x128xf32> -> vector<384x128xf32>
    %c0_21 = arith.constant 0 : index
    %c0_22 = arith.constant 0 : index
    %34 = vector.load %arg8[%c0_21, %c0_22] : memref<1x128xf32, #tpu.memory_space<vmem>>, vector<1x128xf32>
    %35 = vector.broadcast %34 : vector<1x128xf32> to vector<384x128xf32>
    %36 = arith.addf %33, %35 : vector<384x128xf32>
    %cst_23 = arith.constant 0.000000e+00 : f32
    %37 = vector.broadcast %cst_23 : f32 to vector<384x128xf32>
    %38 = arith.maximumf %36, %37 : vector<384x128xf32>
    %39 = arith.truncf %38 : vector<384x128xf32> to vector<384x128xbf16>
    %c0_24 = arith.constant 0 : index
    %c0_25 = arith.constant 0 : index
    %40 = vector.load %arg9[%c0_24, %c0_25] : memref<128x128xbf16, #tpu.memory_space<vmem>>, vector<128x128xbf16>
    %cst_26 = arith.constant dense<0.000000e+00> : vector<384x128xf32>
    %41 = tpu.matmul %39, %40, %cst_26 {dimension_numbers = #tpu.dot_dimension_numbers<[1], [0], [0], [1], [0, 0, 1, 1], [], []>} : vector<384x128xbf16>, vector<128x128xbf16>, vector<384x128xf32> -> vector<384x128xf32>
    %c0_27 = arith.constant 0 : index
    %c0_28 = arith.constant 0 : index
    %42 = vector.load %arg10[%c0_27, %c0_28] : memref<1x128xf32, #tpu.memory_space<vmem>>, vector<1x128xf32>
    %43 = vector.broadcast %42 : vector<1x128xf32> to vector<384x128xf32>
    %44 = arith.addf %41, %43 : vector<384x128xf32>
    %45 = arith.extf %25 : vector<384x128xbf16> to vector<384x128xf32>
    %46 = arith.addf %44, %45 : vector<384x128xf32>
    %cst_29 = arith.constant 0.000000e+00 : f32
    %47 = vector.broadcast %cst_29 : f32 to vector<384x128xf32>
    %48 = arith.maximumf %46, %47 : vector<384x128xf32>
    %49 = arith.truncf %48 : vector<384x128xf32> to vector<384x128xbf16>
    %cst_30 = arith.constant dense<0.000000e+00> : vector<384x128xf32>
    %50 = tpu.matmul %2, %49, %cst_30 {dimension_numbers = #tpu.dot_dimension_numbers<[1], [0], [0], [1], [0, 0, 1, 1], [], []>} : vector<384x384xbf16>, vector<384x128xbf16>, vector<384x128xf32> -> vector<384x128xf32>
    %51 = arith.extf %49 : vector<384x128xbf16> to vector<384x128xf32>
    %cst_31 = arith.constant 1.000000e+00 : f32
    %52 = vector.broadcast %cst_31 : f32 to vector<384x128xf32>
    %53 = arith.mulf %52, %51 : vector<384x128xf32>
    %54 = arith.addf %50, %53 : vector<384x128xf32>
    %55 = arith.truncf %54 : vector<384x128xf32> to vector<384x128xbf16>
    %c0_32 = arith.constant 0 : index
    %c0_33 = arith.constant 0 : index
    %56 = vector.load %arg11[%c0_32, %c0_33] : memref<128x128xbf16, #tpu.memory_space<vmem>>, vector<128x128xbf16>
    %cst_34 = arith.constant dense<0.000000e+00> : vector<384x128xf32>
    %57 = tpu.matmul %55, %56, %cst_34 {dimension_numbers = #tpu.dot_dimension_numbers<[1], [0], [0], [1], [0, 0, 1, 1], [], []>} : vector<384x128xbf16>, vector<128x128xbf16>, vector<384x128xf32> -> vector<384x128xf32>
    %c0_35 = arith.constant 0 : index
    %c0_36 = arith.constant 0 : index
    %58 = vector.load %arg12[%c0_35, %c0_36] : memref<1x128xf32, #tpu.memory_space<vmem>>, vector<1x128xf32>
    %59 = vector.broadcast %58 : vector<1x128xf32> to vector<384x128xf32>
    %60 = arith.addf %57, %59 : vector<384x128xf32>
    %cst_37 = arith.constant 0.000000e+00 : f32
    %61 = vector.broadcast %cst_37 : f32 to vector<384x128xf32>
    %62 = arith.maximumf %60, %61 : vector<384x128xf32>
    %63 = arith.truncf %62 : vector<384x128xf32> to vector<384x128xbf16>
    %c0_38 = arith.constant 0 : index
    %c0_39 = arith.constant 0 : index
    %64 = vector.load %arg13[%c0_38, %c0_39] : memref<128x128xbf16, #tpu.memory_space<vmem>>, vector<128x128xbf16>
    %cst_40 = arith.constant dense<0.000000e+00> : vector<384x128xf32>
    %65 = tpu.matmul %63, %64, %cst_40 {dimension_numbers = #tpu.dot_dimension_numbers<[1], [0], [0], [1], [0, 0, 1, 1], [], []>} : vector<384x128xbf16>, vector<128x128xbf16>, vector<384x128xf32> -> vector<384x128xf32>
    %c0_41 = arith.constant 0 : index
    %c0_42 = arith.constant 0 : index
    %66 = vector.load %arg14[%c0_41, %c0_42] : memref<1x128xf32, #tpu.memory_space<vmem>>, vector<1x128xf32>
    %67 = vector.broadcast %66 : vector<1x128xf32> to vector<384x128xf32>
    %68 = arith.addf %65, %67 : vector<384x128xf32>
    %cst_43 = arith.constant 0.000000e+00 : f32
    %69 = vector.broadcast %cst_43 : f32 to vector<384x128xf32>
    %70 = arith.maximumf %68, %69 : vector<384x128xf32>
    %71 = arith.truncf %70 : vector<384x128xf32> to vector<384x128xbf16>
    %72 = arith.extf %71 : vector<384x128xbf16> to vector<384x128xf32>
    %73 = tpu.iota {dimensions = array<i32: 0>} : vector<384x128xi32>
    %c300_i32 = arith.constant 300 : i32
    %74 = vector.broadcast %c300_i32 : i32 to vector<384x128xi32>
    %75 = arith.cmpi slt, %73, %74 : vector<384x128xi32>
    %cst_44 = arith.constant 0.000000e+00 : f32
    %76 = vector.broadcast %cst_44 : f32 to vector<384x128xf32>
    %77 = arith.select %75, %72, %76 : vector<384x128xi1>, vector<384x128xf32>
    %cst_45 = arith.constant dense<0.000000e+00> : vector<128xf32>
    %78 = vector.multi_reduction <add>, %77, %cst_45 [0] : vector<384x128xf32> to vector<128xf32>
    %79 = vector.shape_cast %78 : vector<128xf32> to vector<1x128xf32>
    %cst_46 = arith.constant 0xFF800000 : f32
    %80 = vector.broadcast %cst_46 : f32 to vector<384x128xf32>
    %81 = arith.select %75, %72, %80 : vector<384x128xi1>, vector<384x128xf32>
    %cst_47 = arith.constant dense<0xFF800000> : vector<128xf32>
    %82 = vector.multi_reduction <maximumf>, %81, %cst_47 [0] : vector<384x128xf32> to vector<128xf32>
    %83 = vector.shape_cast %82 : vector<128xf32> to vector<1x128xf32>
    %cst_48 = arith.constant 0.00333333341 : f32
    %84 = vector.broadcast %cst_48 : f32 to vector<1x128xf32>
    %85 = arith.mulf %79, %84 : vector<1x128xf32>
    %86 = vector.shape_cast %79 : vector<1x128xf32> to vector<1x128xf32>
    %87 = vector.broadcast %86 : vector<1x128xf32> to vector<8x128xf32>
    %88 = arith.truncf %87 : vector<8x128xf32> to vector<8x128xbf16>
    %89 = vector.shape_cast %83 : vector<1x128xf32> to vector<1x128xf32>
    %90 = vector.broadcast %89 : vector<1x128xf32> to vector<8x128xf32>
    %91 = arith.truncf %90 : vector<8x128xf32> to vector<8x128xbf16>
    %92 = vector.shape_cast %85 : vector<1x128xf32> to vector<1x128xf32>
    %93 = vector.broadcast %92 : vector<1x128xf32> to vector<8x128xf32>
    %94 = arith.truncf %93 : vector<8x128xf32> to vector<8x128xbf16>
    %c0_49 = arith.constant 0 : index
    %c0_50 = arith.constant 0 : index
    %c0_51 = arith.constant 0 : index
    %95 = vector.load %arg15[%c0_49, %c0_50, %c0_51] : memref<3x128x128xbf16, #tpu.memory_space<vmem>>, vector<1x128x128xbf16>
    %96 = vector.shape_cast %95 : vector<1x128x128xbf16> to vector<128x128xbf16>
    %cst_52 = arith.constant dense<0.000000e+00> : vector<8x128xf32>
    %97 = tpu.matmul %88, %96, %cst_52 {dimension_numbers = #tpu.dot_dimension_numbers<[1], [0], [0], [1], [0, 0, 1, 1], [], []>} : vector<8x128xbf16>, vector<128x128xbf16>, vector<8x128xf32> -> vector<8x128xf32>
    %c1 = arith.constant 1 : index
    %c0_53 = arith.constant 0 : index
    %c0_54 = arith.constant 0 : index
    %98 = vector.load %arg15[%c1, %c0_53, %c0_54] : memref<3x128x128xbf16, #tpu.memory_space<vmem>>, vector<1x128x128xbf16>
    %99 = vector.shape_cast %98 : vector<1x128x128xbf16> to vector<128x128xbf16>
    %cst_55 = arith.constant dense<0.000000e+00> : vector<8x128xf32>
    %100 = tpu.matmul %91, %99, %cst_55 {dimension_numbers = #tpu.dot_dimension_numbers<[1], [0], [0], [1], [0, 0, 1, 1], [], []>} : vector<8x128xbf16>, vector<128x128xbf16>, vector<8x128xf32> -> vector<8x128xf32>
    %101 = arith.addf %97, %100 : vector<8x128xf32>
    %c2 = arith.constant 2 : index
    %c0_56 = arith.constant 0 : index
    %c0_57 = arith.constant 0 : index
    %102 = vector.load %arg15[%c2, %c0_56, %c0_57] : memref<3x128x128xbf16, #tpu.memory_space<vmem>>, vector<1x128x128xbf16>
    %103 = vector.shape_cast %102 : vector<1x128x128xbf16> to vector<128x128xbf16>
    %cst_58 = arith.constant dense<0.000000e+00> : vector<8x128xf32>
    %104 = tpu.matmul %94, %103, %cst_58 {dimension_numbers = #tpu.dot_dimension_numbers<[1], [0], [0], [1], [0, 0, 1, 1], [], []>} : vector<8x128xbf16>, vector<128x128xbf16>, vector<8x128xf32> -> vector<8x128xf32>
    %105 = arith.addf %101, %104 : vector<8x128xf32>
    %c0_59 = arith.constant 0 : index
    %c0_60 = arith.constant 0 : index
    %106 = vector.load %arg16[%c0_59, %c0_60] : memref<1x128xf32, #tpu.memory_space<vmem>>, vector<1x128xf32>
    %107 = vector.broadcast %106 : vector<1x128xf32> to vector<8x128xf32>
    %108 = arith.addf %105, %107 : vector<8x128xf32>
    %cst_61 = arith.constant 0.000000e+00 : f32
    %109 = vector.broadcast %cst_61 : f32 to vector<8x128xf32>
    %110 = arith.maximumf %108, %109 : vector<8x128xf32>
    %111 = arith.truncf %110 : vector<8x128xf32> to vector<8x128xbf16>
    %c0_62 = arith.constant 0 : index
    %c0_63 = arith.constant 0 : index
    %112 = vector.load %arg17[%c0_62, %c0_63] : memref<128x128xbf16, #tpu.memory_space<vmem>>, vector<128x128xbf16>
    %cst_64 = arith.constant dense<0.000000e+00> : vector<8x128xf32>
    %113 = tpu.matmul %111, %112, %cst_64 {dimension_numbers = #tpu.dot_dimension_numbers<[1], [0], [0], [1], [0, 0, 1, 1], [], []>} : vector<8x128xbf16>, vector<128x128xbf16>, vector<8x128xf32> -> vector<8x128xf32>
    %c0_65 = arith.constant 0 : index
    %c0_66 = arith.constant 0 : index
    %114 = vector.load %arg18[%c0_65, %c0_66] : memref<1x128xf32, #tpu.memory_space<vmem>>, vector<1x128xf32>
    %115 = vector.broadcast %114 : vector<1x128xf32> to vector<8x128xf32>
    %116 = arith.addf %113, %115 : vector<8x128xf32>
    %cst_67 = arith.constant 0.000000e+00 : f32
    %117 = vector.broadcast %cst_67 : f32 to vector<8x128xf32>
    %118 = arith.maximumf %116, %117 : vector<8x128xf32>
    %119 = arith.truncf %118 : vector<8x128xf32> to vector<8x128xbf16>
    %c0_68 = arith.constant 0 : index
    %c0_69 = arith.constant 0 : index
    %120 = vector.load %arg19[%c0_68, %c0_69] : memref<128x128xbf16, #tpu.memory_space<vmem>>, vector<128x128xbf16>
    %cst_70 = arith.constant dense<0.000000e+00> : vector<8x128xf32>
    %121 = tpu.matmul %119, %120, %cst_70 {dimension_numbers = #tpu.dot_dimension_numbers<[1], [0], [0], [1], [0, 0, 1, 1], [], []>} : vector<8x128xbf16>, vector<128x128xbf16>, vector<8x128xf32> -> vector<8x128xf32>
    %c0_71 = arith.constant 0 : index
    %c0_72 = arith.constant 0 : index
    %122 = vector.load %arg20[%c0_71, %c0_72] : memref<1x128xf32, #tpu.memory_space<vmem>>, vector<1x128xf32>
    %123 = vector.broadcast %122 : vector<1x128xf32> to vector<8x128xf32>
    %124 = arith.addf %121, %123 : vector<8x128xf32>
    %c0_73 = arith.constant 0 : index
    %c0_74 = arith.constant 0 : index
    %125 = vector.load %arg21[%c0_73, %c0_74] : memref<8x128xf32, #tpu.memory_space<vmem>>, vector<8x128xf32>
    tpu.vector_store %arg21[%c0_73, %c0_74], %124 {strides = array<i32>} : memref<8x128xf32, #tpu.memory_space<vmem>>, vector<8x128xf32>,
    return
  }
  func.func @transform_0(%arg0: i32) -> (i32, i32) {
    %c0_i32 = arith.constant 0 : i32
    %c0_i32_0 = arith.constant 0 : i32
    %c0_i32_1 = arith.constant 0 : i32
    return %c0_i32, %c0_i32_0 : i32, i32
  }
  func.func @transform_1(%arg0: i32) -> (i32, i32) {
    %c0_i32 = arith.constant 0 : i32
    %c0_i32_0 = arith.constant 0 : i32
    %c0_i32_1 = arith.constant 0 : i32
    return %c0_i32, %c0_i32_0 : i32, i32
  }
  func.func @transform_2(%arg0: i32) -> (i32, i32) {
    %c0_i32 = arith.constant 0 : i32
    %c0_i32_0 = arith.constant 0 : i32
    %c0_i32_1 = arith.constant 0 : i32
    return %c0_i32, %c0_i32_0 : i32, i32
  }
  func.func @transform_3(%arg0: i32) -> (i32, i32) {
    %c0_i32 = arith.constant 0 : i32
    %c0_i32_0 = arith.constant 0 : i32
    %c0_i32_1 = arith.constant 0 : i32
    return %c0_i32, %c0_i32_0 : i32, i32
  }
  func.func @transform_4(%arg0: i32) -> (i32, i32) {
    %c0_i32 = arith.constant 0 : i32
    %c0_i32_0 = arith.constant 0 : i32
    %c0_i32_1 = arith.constant 0 : i32
    return %c0_i32, %c0_i32_0 : i32, i32
  }
  func.func @transform_5(%arg0: i32) -> (i32, i32) {
    %c0_i32 = arith.constant 0 : i32
    %c0_i32_0 = arith.constant 0 : i32
    %c0_i32_1 = arith.constant 0 : i32
    return %c0_i32, %c0_i32_0 : i32, i32
  }
  func.func @transform_6(%arg0: i32) -> (i32, i32) {
    %c0_i32 = arith.constant 0 : i32
    %c0_i32_0 = arith.constant 0 : i32
    %c0_i32_1 = arith.constant 0 : i32
    return %c0_i32, %c0_i32_0 : i32, i32
  }
  func.func @transform_7(%arg0: i32) -> (i32, i32) {
    %c0_i32 = arith.constant 0 : i32
    %c0_i32_0 = arith.constant 0 : i32
    %c0_i32_1 = arith.constant 0 : i32
    return %c0_i32, %c0_i32_0 : i32, i32
  }
  func.func @transform_8(%arg0: i32) -> (i32, i32) {
    %c0_i32 = arith.constant 0 : i32
    %c0_i32_0 = arith.constant 0 : i32
    %c0_i32_1 = arith.constant 0 : i32
    return %c0_i32, %c0_i32_0 : i32, i32
  }
  func.func @transform_9(%arg0: i32) -> (i32, i32) {
    %c0_i32 = arith.constant 0 : i32
    %c0_i32_0 = arith.constant 0 : i32
    %c0_i32_1 = arith.constant 0 : i32
    return %c0_i32, %c0_i32_0 : i32, i32
  }
  func.func @transform_10(%arg0: i32) -> (i32, i32) {
    %c0_i32 = arith.constant 0 : i32
    %c0_i32_0 = arith.constant 0 : i32
    %c0_i32_1 = arith.constant 0 : i32
    return %c0_i32, %c0_i32_0 : i32, i32
  }
  func.func @transform_11(%arg0: i32) -> (i32, i32) {
    %c0_i32 = arith.constant 0 : i32
    %c0_i32_0 = arith.constant 0 : i32
    %c0_i32_1 = arith.constant 0 : i32
    return %c0_i32, %c0_i32_0 : i32, i32
  }
  func.func @transform_12(%arg0: i32) -> (i32, i32) {
    %c0_i32 = arith.constant 0 : i32
    %c0_i32_0 = arith.constant 0 : i32
    %c0_i32_1 = arith.constant 0 : i32
    return %c0_i32, %c0_i32_0 : i32, i32
  }
  func.func @transform_13(%arg0: i32) -> (i32, i32) {
    %c0_i32 = arith.constant 0 : i32
    %c0_i32_0 = arith.constant 0 : i32
    %c0_i32_1 = arith.constant 0 : i32
    return %c0_i32, %c0_i32_0 : i32, i32
  }
  func.func @transform_14(%arg0: i32) -> (i32, i32, i32) {
    %c0_i32 = arith.constant 0 : i32
    %c0_i32_0 = arith.constant 0 : i32
    %c0_i32_1 = arith.constant 0 : i32
    %c0_i32_2 = arith.constant 0 : i32
    return %c0_i32, %c0_i32_0, %c0_i32_1 : i32, i32, i32
  }
  func.func @transform_15(%arg0: i32) -> (i32, i32) {
    %c0_i32 = arith.constant 0 : i32
    %c0_i32_0 = arith.constant 0 : i32
    %c0_i32_1 = arith.constant 0 : i32
    return %c0_i32, %c0_i32_0 : i32, i32
  }
  func.func @transform_16(%arg0: i32) -> (i32, i32) {
    %c0_i32 = arith.constant 0 : i32
    %c0_i32_0 = arith.constant 0 : i32
    %c0_i32_1 = arith.constant 0 : i32
    return %c0_i32, %c0_i32_0 : i32, i32
  }
  func.func @transform_17(%arg0: i32) -> (i32, i32) {
    %c0_i32 = arith.constant 0 : i32
    %c0_i32_0 = arith.constant 0 : i32
    %c0_i32_1 = arith.constant 0 : i32
    return %c0_i32, %c0_i32_0 : i32, i32
  }
  func.func @transform_18(%arg0: i32) -> (i32, i32) {
    %c0_i32 = arith.constant 0 : i32
    %c0_i32_0 = arith.constant 0 : i32
    %c0_i32_1 = arith.constant 0 : i32
    return %c0_i32, %c0_i32_0 : i32, i32
  }
  func.func @transform_19(%arg0: i32) -> (i32, i32) {
    %c0_i32 = arith.constant 0 : i32
    %c0_i32_0 = arith.constant 0 : i32
    %c0_i32_1 = arith.constant 0 : i32
    return %c0_i32, %c0_i32_0 : i32, i32
  }
  func.func @transform_20(%arg0: i32) -> (i32, i32) {
    %c0_i32 = arith.constant 0 : i32
    %c0_i32_0 = arith.constant 0 : i32
    %c0_i32_1 = arith.constant 0 : i32
    return %c0_i32, %c0_i32_0 : i32, i32
  }
}

</mosaic_0001>

<bundles_post_ra>
// kernel: gnn_model_forward.1
= control target key start
LH: loop header
LB: loop body
LE: loop exit
PB: predicated region body
PF: predicated region fallthrough
CT: control target
= control target key end

     0   :  { %s7875_s0 = inlined_call_operand.hbm [shape: bf16[384,128], index: 0, kind: input, shape index: {}]   ;;  %s7876_s1 = inlined_call_operand.hbm [shape: s8[384,384], index: 1, kind: input, shape index: {}]   ;;  %s7877_s2 = inlined_call_operand.hbm [shape: bf16[128,128], index: 2, kind: input, shape index: {}]   ;;  %s7878_s3 = inlined_call_operand.vmem [shape: f32[1,128], index: 3, kind: input, shape index: {}]   ;;  %s7879_s4 = inlined_call_operand.hbm [shape: bf16[128,128], index: 4, kind: input, shape index: {}]   ;;  %s7880_s5 = inlined_call_operand.vmem [shape: f32[1,128], index: 5, kind: input, shape index: {}]   ;;  %s7881_s6 = inlined_call_operand.hbm [shape: bf16[128,128], index: 6, kind: input, shape index: {}]   ;;  %s7882_s7 = inlined_call_operand.vmem [shape: f32[1,128], index: 7, kind: input, shape index: {}]   ;;  %s7883_s8 = inlined_call_operand.hbm [shape: bf16[128,128], index: 8, kind: input, shape index: {}]   ;;  %s7884_s9 = inlined_call_operand.vmem [shape: f32[1,128], index: 9, kind: input, shape index: {}]   ;;  %s7885_s10 = inlined_call_operand.hbm [shape: bf16[128,128], index: 10, kind: input, shape index: {}]   ;;  %s7886_s11 = inlined_call_operand.vmem [shape: f32[1,128], index: 11, kind: input, shape index: {}]   ;;  %s7887_s12 = inlined_call_operand.hbm [shape: bf16[128,128], index: 12, kind: input, shape index: {}]   ;;  %s7888_s13 = inlined_call_operand.vmem [shape: f32[1,128], index: 13, kind: input, shape index: {}]   ;;  %s7889_s14 = inlined_call_operand.hbm [shape: bf16[3,128,128], index: 14, kind: input, shape index: {}]   ;;  %s7890_s15 = inlined_call_operand.vmem [shape: f32[1,128], index: 15, kind: input, shape index: {}]   ;;  %s7891_s16 = inlined_call_operand.hbm [shape: bf16[128,128], index: 16, kind: input, shape index: {}]   ;;  %s7892_s17 = inlined_call_operand.vmem [shape: f32[1,128], index: 17, kind: input, shape index: {}]   ;;  %s7893_s18 = inlined_call_operand.hbm [shape: bf16[128,128], index: 18, kind: input, shape index: {}]   ;;  %s7894_s19 = inlined_call_operand.vmem [shape: f32[1,128], index: 19, kind: input, shape index: {}]   ;;  %s7895_s20 = inlined_call_operand.vmem [shape: f32[8,128], index: 20, kind: output, shape index: {}]  }
   0x1   :  { %8127 = sst [smem:[#allocation126_spill]] %s7875_s0 }
   0x2   :  { %8128 = sst [smem:[#allocation127_spill]] %s7876_s1 }
   0x3   :  { %8129 = sst [smem:[#allocation128_spill]] %s7877_s2 }
   0x4   :  { %8130 = sst [smem:[#allocation129_spill]] %s7878_s3 }
   0x5   :  { %8131 = sst [smem:[#allocation130_spill]] %s7879_s4 }
   0x6   :  { %8132 = sst [smem:[#allocation131_spill]] %s7895_s20 }
   0x7   :  { %25 = vsyncpa [#allocation3], 0 }
   0x8   :  { %26 = vsyncpa [#allocation5], 0 }
   0x9   :  { %27 = vsyncpa [#allocation8], 0 }
   0xa   :  { %28 = vsyncpa [#allocation11], 0 }
   0xb   :  { %29 = vsyncpa [#allocation14], 0  ;;  %s8133_s23 = sld [smem:[#allocation127_spill]] }
  0x11   :  { %s48_s24 = sshll.u32 %s8133_s23, 4  ;;  %s49_s24 = int_to_ptr.hbm [resolvable:$true] %s48_s24 }
  0x12   :  { %30 = vsyncpa [#allocation17], 0  ;;  %s5711_s2 = smov [#allocation4]   ;;  %s5712_s3 = smov 384  }
  0x13   :  { %s50_s25 = sshll.u32 %s5711_s2, 4  ;;  %s5713_s26 = smov 24   ;;  %s51_s25 = int_to_ptr.vmem [resolvable:$true] %s50_s25 }
  0x14   :  { %56 = dma.hbm_to_vmem [thread:$0]  %s49_s24, 4608, %s51_s25, [#allocation5], %s5712_s3, %s5712_s3, %s5713_s26  }
  0x15   :  { %s8134_s4 = sld [smem:[#allocation130_spill]]  ;;  %s5714_s30 = smov [#allocation7]  }
  0x16   :  { %s78_s0 = sshll.u32 %s5714_s30, 4  ;;  %s106_s1 = sshll.u32 %s7883_s8, 4  ;;  %s79_s0 = int_to_ptr.vmem [resolvable:$true] %s78_s0  ;;  %s107_s1 = int_to_ptr.hbm [resolvable:$true] %s106_s1 }
  0x17   :  { %s5715_s22 = smov 64   ;;  %s5716_s23 = smov 4  }
  0x18   :  { %s136_s25 = sshll.u32 %s7887_s12, 4  ;;  %s5717_s3 = smov [#allocation10]   ;;  %s137_s25 = int_to_ptr.hbm [resolvable:$true] %s136_s25 }
  0x19   :  { %s108_s26 = sshll.u32 %s5717_s3, 4  ;;  %s5718_s8 = smov [#allocation13]   ;;  %s109_s26 = int_to_ptr.vmem [resolvable:$true] %s108_s26 }
  0x1a   :  { %114 = dma.hbm_to_vmem [thread:$0]  %s107_s1, 1024, %s109_s26, [#allocation11], %s5715_s22, %s5715_s22, %s5716_s23  }
  0x1b   :  { %s76_s29 = sshll.u32 %s8134_s4, 4  ;;  %s138_s20 = sshll.u32 %s5718_s8, 4  ;;  %s77_s29 = int_to_ptr.hbm [resolvable:$true] %s76_s29  ;;  %s139_s20 = int_to_ptr.vmem [resolvable:$true] %s138_s20 }
  0x1c   :  { %84 = dma.hbm_to_vmem [thread:$0]  %s77_s29, 1024, %s79_s0, [#allocation8], %s5715_s22, %s5715_s22, %s5716_s23  }
  0x1d   :  { %s166_s4 = sshll.u32 %s7891_s16, 4  ;;  %s8135_s30 = sld [smem:[#allocation126_spill]]  ;;  %s167_s4 = int_to_ptr.hbm [resolvable:$true] %s166_s4 }
  0x1e   :  { %144 = dma.hbm_to_vmem [thread:$0]  %s137_s25, 1024, %s139_s20, [#allocation14], %s5715_s22, %s5715_s22, %s5716_s23  }
  0x1f   :  { %s5719_s21 = smov [#allocation16]   ;;  %s5720_s1 = smov [#allocation2]  }
  0x20   :  { %s168_s24 = sshll.u32 %s5719_s21, 4  ;;  %s37_s16 = sshll.u32 %s5720_s1, 4  ;;  %s169_s24 = int_to_ptr.vmem [resolvable:$true] %s168_s24  ;;  %s38_s16 = int_to_ptr.vmem [resolvable:$true] %s37_s16 }
  0x21   :  { %174 = dma.hbm_to_vmem [thread:$0]  %s167_s4, 1024, %s169_s24, [#allocation17], %s5715_s22, %s5715_s22, %s5716_s23  }
  0x22   :  { %s8136_s26 = sld [smem:[#allocation128_spill]]  ;;  %s91_s27 = sshll.u32 %s7881_s6, 4  ;;  %s92_s27 = int_to_ptr.hbm [resolvable:$true] %s91_s27 }
  0x23   :  { %s35_s0 = sshll.u32 %s8135_s30, 4  ;;  %s5721_s28 = smov [#allocation6]   ;;  %s36_s0 = int_to_ptr.hbm [resolvable:$true] %s35_s0 }
  0x24   :  { %43 = dma.hbm_to_vmem [thread:$0]  %s36_s0, 3072, %s38_s16, [#allocation3], %s5715_s22, %s5715_s22, %s5716_s23  }
  0x25   :  { %s63_s12 = sshll.u32 %s5721_s28, 4  ;;  %s5722_s4 = smov [#allocation9]   ;;  %s64_s12 = int_to_ptr.vmem [resolvable:$true] %s63_s12 }
  0x26   :  { %s93_s29 = sshll.u32 %s5722_s4, 4  ;;  %s121_s24 = sshll.u32 %s7885_s10, 4  ;;  %s94_s29 = int_to_ptr.vmem [resolvable:$true] %s93_s29  ;;  %s122_s24 = int_to_ptr.hbm [resolvable:$true] %s121_s24 }
  0x27   :  { %99 = dma.hbm_to_vmem [thread:$0]  %s92_s27, 1024, %s94_s29, [#allocation8], %s5715_s22, %s5715_s22, %s5716_s23  }
  0x28   :  { %s61_s8 = sshll.u32 %s8136_s26, 4  ;;  %s151_s1 = sshll.u32 %s7889_s14, 4  ;;  %s62_s8 = int_to_ptr.hbm [resolvable:$true] %s61_s8  ;;  %s152_s1 = int_to_ptr.hbm [resolvable:$true] %s151_s1 }
  0x29   :  { %69 = dma.hbm_to_vmem [thread:$0]  %s62_s8, 1024, %s64_s12, [#allocation5], %s5715_s22, %s5715_s22, %s5716_s23  }
  0x2a   :  { %s5723_s16 = smov [#allocation12]   ;;  %s5724_s3 = smov [#allocation15]  }
  0x2b   :  { %s123_s2 = sshll.u32 %s5723_s16, 4  ;;  %s153_s10 = sshll.u32 %s5724_s3, 4  ;;  %s124_s2 = int_to_ptr.vmem [resolvable:$true] %s123_s2  ;;  %s154_s10 = int_to_ptr.vmem [resolvable:$true] %s153_s10 }
  0x2c   :  { %129 = dma.hbm_to_vmem [thread:$0]  %s122_s24, 1024, %s124_s2, [#allocation11], %s5715_s22, %s5715_s22, %s5716_s23  }
  0x2d   :  { %s181_s25 = sshll.u32 %s7893_s18, 4  ;;  %s5725_s14 = smov [#allocation18]   ;;  %s182_s25 = int_to_ptr.hbm [resolvable:$true] %s181_s25 }
  0x2e   :  { %159 = dma.hbm_to_vmem [thread:$0]  %s152_s1, 3072, %s154_s10, [#allocation14], %s5715_s22, %s5715_s22, %s5716_s23  }
  0x2f   :  { %s183_s20 = sshll.u32 %s5725_s14, 4  ;;  %s184_s20 = int_to_ptr.vmem [resolvable:$true] %s183_s20 }
  0x30   :  { %189 = dma.hbm_to_vmem [thread:$0]  %s182_s25, 1024, %s184_s20, [#allocation17], %s5715_s22, %s5715_s22, %s5716_s23  }
  0x31   :  { %5699 = dma.done.wait [#allocation3], 3072  }
  0x32   :  { %5700 = vsyncadd [#allocation3], 4294964224 }
  0x33   :  { %5701 = dma.done.wait [#allocation5], 5632  }
  0x34   :  { %5702 = vsyncadd [#allocation5], 4294961664 }
  0x35   :  { %5703 = dma.done.wait [#allocation8], 2048  }
  0x36   :  { %5704 = vsyncadd [#allocation8], 4294965248 }
  0x37   :  { %5705 = dma.done.wait [#allocation11], 2048  }
  0x38   :  { %5706 = vsyncadd [#allocation11], 4294965248 }
  0x39   :  { %5707 = dma.done.wait [#allocation14], 4096  }
  0x3a   :  { %5708 = vsyncadd [#allocation14], 4294963200 }
  0x3b   :  { %5709 = dma.done.wait [#allocation17], 2048  }
  0x3c   :  { %5710 = vsyncadd [#allocation17], 4294965248  ;;  %v5277_v0 = vld [vmem:[#allocation2 + $0x38] sm:$0xff]  ;;  %v5276_v3 = vld [vmem:[#allocation2 + $0x30] sm:$0xff]  ;;  %s8209_s23 = sld [smem:[#allocation129_spill]] }
  0x3d   :  { %v5894_v1 = vld [vmem:[#allocation2 + $0xb8] sm:$0xff]  ;;  %872 = vmatpush.bf16.msra.mxu0 %v5277_v0  ;;  %5382 = vmatpush.bf16.msra.mxu3 %v5277_v0  ;;  %v5900_v4 = vld [vmem:[#allocation2 + $0xb0] sm:$0xff]  ;;  %v5275_v6 = vld [vmem:[#allocation2 + $0x28] sm:$0xff]  ;;  %s8460_s8 = sld [smem:[#allocation131_spill]] }
  0x3e   :  { %v5896_v2 = vld [vmem:[#allocation2 + $0x78] sm:$0xff]  ;;  %1130 = vmatpush.bf16.msra.mxu2 %v5894_v1  ;;  %v5902_v5 = vld [vmem:[#allocation2 + $0x70] sm:$0xff]  ;;  %v5906_v7 = vld [vmem:[#allocation2 + $0xa8] sm:$0xff] }
  0x3f   :  { %1001 = vmatpush.bf16.msra.mxu1 %v5896_v2  ;;  %v5908_v8 = vld [vmem:[#allocation2 + $0x68] sm:$0xff]  ;;  %v5274_v9 = vld [vmem:[#allocation2 + $0x20] sm:$0xff]  ;;  %v5273_v12 = vld [vmem:[#allocation2 + $0x18] sm:$0xff] }
  0x40   :  { %v5910_v10 = vld [vmem:[#allocation2 + $0xa0] sm:$0xff]  ;;  %v5918_v13 = vld [vmem:[#allocation2 + $0x98] sm:$0xff]  ;;  %v5272_v15 = vld [vmem:[#allocation2 + $0x10] sm:$0xff] }
  0x41   :  { %873 = vmatpush.bf16.msra.mxu0 %v5276_v3  ;;  %5383 = vmatpush.bf16.msra.mxu3 %v5276_v3  ;;  %v5914_v11 = vld [vmem:[#allocation2 + $0x60] sm:$0xff]  ;;  %v5920_v14 = vld [vmem:[#allocation2 + $0x58] sm:$0xff]  ;;  %v5922_v16 = vld [vmem:[#allocation2 + $0x90] sm:$0xff] }
  0x42   :  { %1131 = vmatpush.bf16.msra.mxu2 %v5900_v4  ;;  %v236_v17 = vld [vmem:[#allocation4] sm:$0xff]  ;;  %v266_v18 = vld [vmem:[#allocation4 + $0xf0] sm:$0xff]  ;;  %v237_v21 = vld [vmem:[#allocation4 + $0x8] sm:$0xff] }
  0x43   :  { %1002 = vmatpush.bf16.msra.mxu1 %v5902_v5  ;;  %v5926_v19 = vld [vmem:[#allocation2 + $0x50] sm:$0xff]  ;;  %v272_v22 = vunpack.c.0.s8 %v236_v17  ;;  %v275_v23 = vunpack.c.1.s8 %v236_v17  ;;  %v398_v24 = vunpack.c.2.s8 %v266_v18  ;;  %v401_v25 = vunpack.c.3.s8 %v266_v18  ;;  %v5271_v26 = vld [vmem:[#allocation2 + $0x8] sm:$0xff]  ;;  %v5270_v37 = vld [vmem:[#allocation2] sm:$0xff] }
  0x44   :  { %v238_v20 = vld [vmem:[#allocation4 + $0x10] sm:$0xff]  ;;  %v273_v29 = vunpack.c.0.s8 %v237_v21  ;;  %v276_v30 = vunpack.c.1.s8 %v237_v21  ;;  %v5930_v31 = vld [vmem:[#allocation2 + $0x88] sm:$0xff]  ;;  %v5936_v42 = vld [vmem:[#allocation2 + $0x80] sm:$0xff]  ;;  %v278_v49 = vunpack.c.2.s8 %v236_v17  ;;  %v281_v50 = vunpack.c.3.s8 %v236_v17 }
  0x45   :  { %874 = vmatpush.bf16.msra.mxu0 %v5275_v6  ;;  %5384 = vmatpush.bf16.msra.mxu3 %v5275_v6  ;;  %v274_v27 = vunpack.c.0.s8 %v238_v20  ;;  %v277_v28 = vunpack.c.1.s8 %v238_v20  ;;  %v5932_v32 = vld [vmem:[#allocation2 + $0x48] sm:$0xff]  ;;  %v416_v33 = vcvt.s32.f32 %v272_v22  ;;  %v419_v34 = vcvt.s32.f32 %v275_v23  ;;  %v5938_v43 = vld [vmem:[#allocation2 + $0x40] sm:$0xff] }
  0x46   :  { %1132 = vmatpush.bf16.msra.mxu2 %v5906_v7  ;;  %v542_v35 = vcvt.s32.f32 %v398_v24  ;;  %v545_v36 = vcvt.s32.f32 %v401_v25  ;;  %v417_v40 = vcvt.s32.f32 %v273_v29  ;;  %v420_v41 = vcvt.s32.f32 %v276_v30  ;;  %v269_v48 = vld [vmem:[#allocation4 + $0x108] sm:$0xff] }
  0x47   :  { %1003 = vmatpush.bf16.msra.mxu1 %v5908_v8  ;;  %v418_v38 = vcvt.s32.f32 %v274_v27  ;;  %v421_v39 = vcvt.s32.f32 %v277_v28  ;;  %v5940_v44 = vpack.c.bf16 %v419_v34, %v416_v33  ;;  %v404_v51 = vunpack.c.0.s8 %v269_v48 }
  0x48   :  { %v5942_v45 = vpack.c.bf16 %v545_v36, %v542_v35  ;;  %v5946_v47 = vpack.c.bf16 %v420_v41, %v417_v40  ;;  %v407_v52 = vunpack.c.1.s8 %v269_v48  ;;  %v280_v53 = vunpack.c.2.s8 %v238_v20 }
  0x49   :  { %875 = vmatpush.bf16.msra.mxu0 %v5274_v9  ;;  %5385 = vmatpush.bf16.msra.mxu3 %v5274_v9  ;;  %8137 = vst [vmem:[#allocation25_spill] sm:$0xff] %v5940_v44  ;;  %v5944_v46 = vpack.c.bf16 %v421_v39, %v418_v38  ;;  %v283_v54 = vunpack.c.3.s8 %v238_v20  ;;  %v279_v55 = vunpack.c.2.s8 %v237_v21  ;;  %v282_v56 = vunpack.c.3.s8 %v237_v21  ;;  %v241_v9 = vld [vmem:[#allocation4 + $0x28] sm:$0xff] }
  0x4a   :  { %1133 = vmatpush.bf16.msra.mxu2 %v5910_v10  ;;  %8138 = vst [vmem:[#allocation26_spill] sm:$0xff] %v5942_v45  ;;  %v422_v57 = vcvt.s32.f32 %v278_v49  ;;  %v425_v58 = vcvt.s32.f32 %v281_v50  ;;  %v548_v59 = vcvt.s32.f32 %v404_v51  ;;  %v551_v60 = vcvt.s32.f32 %v407_v52 }
  0x4b   :  { %1004 = vmatpush.bf16.msra.mxu1 %v5914_v11  ;;  %8139 = vst [vmem:[#allocation27_spill] sm:$0xff] %v5944_v46  ;;  %v424_v61 = vcvt.s32.f32 %v280_v53  ;;  %v427_v62 = vcvt.s32.f32 %v283_v54  ;;  %v423_v63 = vcvt.s32.f32 %v279_v55  ;;  %v426_v0 = vcvt.s32.f32 %v282_v56 }
  0x4c   :  { %8140 = vst [vmem:[#allocation28_spill] sm:$0xff] %v5946_v47  ;;  %v5960_v3 = vpack.c.bf16 %v551_v60, %v548_v59  ;;  %v410_v17 = vunpack.c.2.s8 %v269_v48  ;;  %v413_v18 = vunpack.c.3.s8 %v269_v48  ;;  %v286_v20 = vunpack.c.0.s8 %v241_v9  ;;  %v244_v59 = vld [vmem:[#allocation4 + $0x40] sm:$0xff]  ;;  %v243_v60 = vld [vmem:[#allocation4 + $0x38] sm:$0xff] }
  0x4d   :  { %876 = vmatpush.bf16.msra.mxu0 %v5273_v12  ;;  %5386 = vmatpush.bf16.msra.mxu3 %v5273_v12  ;;  %v5964_v6 = vpack.c.bf16 %v426_v0, %v423_v63  ;;  %v289_v21 = vunpack.c.1.s8 %v241_v9  ;;  %v295_v40 = vunpack.c.3.s8 %v241_v9 }
  0x4e   :  { %1134 = vmatpush.bf16.msra.mxu2 %v5918_v13  ;;  %8142 = vst [vmem:[#allocation30_spill] sm:$0xff] %v5960_v3  ;;  %v554_v25 = vcvt.s32.f32 %v410_v17  ;;  %v430_v27 = vcvt.s32.f32 %v286_v20 }
  0x4f   :  { %1005 = vmatpush.bf16.msra.mxu1 %v5920_v14  ;;  %8144 = vst [vmem:[#allocation32_spill] sm:$0xff] %v5964_v6  ;;  %v433_v28 = vcvt.s32.f32 %v289_v21  ;;  %v439_v53 = vcvt.s32.f32 %v295_v40 }
  0x51   :  { %877 = vmatpush.bf16.msra.mxu0 %v5272_v15  ;;  %5387 = vmatpush.bf16.msra.mxu3 %v5272_v15  ;;  %v5979_v34 = vpack.c.bf16 %v433_v28, %v430_v27  ;;  %v304_v28 = vunpack.c.2.s8 %v244_v59 }
  0x52   :  { %1135 = vmatpush.bf16.msra.mxu2 %v5922_v16 }
  0x53   :  { %1006 = vmatpush.bf16.msra.mxu1 %v5926_v19  ;;  %8147 = vst [vmem:[#allocation35_spill] sm:$0xff] %v5979_v34 }
  0x55   :  { %878 = vmatpush.bf16.msra.mxu0 %v5271_v26  ;;  %5388 = vmatpush.bf16.msra.mxu3 %v5271_v26  ;;  %v557_v26 = vcvt.s32.f32 %v413_v18 }
  0x56   :  { %1136 = vmatpush.bf16.msra.mxu2 %v5930_v31 }
  0x57   :  { %1007 = vmatpush.bf16.msra.mxu1 %v5932_v32  ;;  %v5976_v33 = vpack.c.bf16 %v557_v26, %v554_v25 }
  0x59   :  { %879 = vmatpush.bf16.msra.mxu0 %v5270_v37  ;;  %5389 = vmatpush.bf16.msra.mxu3 %v5270_v37  ;;  %8146 = vst [vmem:[#allocation34_spill] sm:$0xff] %v5976_v33 }
  0x5a   :  { %1137 = vmatpush.bf16.msra.mxu2 %v5936_v42 }
  0x5b   :  { %1008 = vmatpush.bf16.msra.mxu1 %v5938_v43 }
  0x5c   :  { %880 = vmatmul.bf16.vlgmr.msra.gmra.mxu0 %v5940_v44  ;;  %985 = vmatmul.bf16.vlgmr.msra.gmra.mxu3 %v5942_v45 }
  0x5d   :  { %5390 = vmatpush.bf16.msrb.mxu3 %v5896_v2  ;;  %1138 = vmatmul.bf16.vlgmr.msra.gmra.mxu2 %v5944_v46  ;;  %v5958_v2 = vpack.c.bf16 %v425_v58, %v422_v57 }
  0x5e   :  { %1009 = vmatmul.bf16.vlgmr.msra.gmra.mxu1 %v5946_v47 }
  0x5f   :  { %8141 = vst [vmem:[#allocation29_spill] sm:$0xff] %v5958_v2 }
  0x61   :  { %5391 = vmatpush.bf16.msrb.mxu3 %v5902_v5  ;;  %v5962_v5 = vpack.c.bf16 %v427_v62, %v424_v61 }
  0x63   :  { %8143 = vst [vmem:[#allocation31_spill] sm:$0xff] %v5962_v5 }
  0x65   :  { %5392 = vmatpush.bf16.msrb.mxu3 %v5908_v8  ;;  %v239_v8 = vld [vmem:[#allocation4 + $0x18] sm:$0xff] }
  0x66   :  { %v284_v12 = vunpack.c.0.s8 %v239_v8  ;;  %v287_v15 = vunpack.c.1.s8 %v239_v8  ;;  %v290_v36 = vunpack.c.2.s8 %v239_v8  ;;  %v293_v37 = vunpack.c.3.s8 %v239_v8 }
  0x67   :  { %v298_v8 = vunpack.c.0.s8 %v244_v59 }
  0x68   :  { %v428_v23 = vcvt.s32.f32 %v284_v12  ;;  %v431_v24 = vcvt.s32.f32 %v287_v15  ;;  %v434_v48 = vcvt.s32.f32 %v290_v36  ;;  %v437_v49 = vcvt.s32.f32 %v293_v37 }
  0x69   :  { %5393 = vmatpush.bf16.msrb.mxu3 %v5914_v11  ;;  %v240_v11 = vld [vmem:[#allocation4 + $0x20] sm:$0xff]  ;;  %v442_v20 = vcvt.s32.f32 %v298_v8 }
  0x6a   :  { %v288_v22 = vunpack.c.1.s8 %v240_v11  ;;  %v291_v41 = vunpack.c.2.s8 %v240_v11 }
  0x6c   :  { %885 = vmatmul.bf16.gmra.mxu0 %v5958_v2  ;;  %990 = vmatmul.bf16.gmra.mxu3 %v5960_v3  ;;  %v432_v30 = vcvt.s32.f32 %v288_v22  ;;  %v435_v54 = vcvt.s32.f32 %v291_v41 }
  0x6d   :  { %5394 = vmatpush.bf16.msrb.mxu3 %v5920_v14  ;;  %1143 = vmatmul.bf16.gmra.mxu2 %v5962_v5  ;;  %v285_v14 = vunpack.c.0.s8 %v240_v11 }
  0x6e   :  { %1014 = vmatmul.bf16.gmra.mxu1 %v5964_v6 }
  0x6f   :  { %v429_v29 = vcvt.s32.f32 %v285_v14 }
  0x71   :  { %5395 = vmatpush.bf16.msrb.mxu3 %v5926_v19  ;;  %v5974_v19 = vpack.c.bf16 %v431_v24, %v428_v23  ;;  %v5981_v35 = vpack.c.bf16 %v432_v30, %v429_v29  ;;  %v307_v29 = vunpack.c.3.s8 %v244_v59  ;;  %v303_v30 = vunpack.c.2.s8 %v243_v60 }
  0x73   :  { %8145 = vst [vmem:[#allocation33_spill] sm:$0xff] %v5974_v19  ;;  %v451_v40 = vcvt.s32.f32 %v307_v29  ;;  %v447_v41 = vcvt.s32.f32 %v303_v30  ;;  %v271_v29 = vld [vmem:[#allocation4 + $0x118] sm:$0xff] }
  0x74   :  { %8148 = vst [vmem:[#allocation36_spill] sm:$0xff] %v5981_v35 }
  0x75   :  { %5396 = vmatpush.bf16.msrb.mxu3 %v5932_v32  ;;  %v267_v32 = vld [vmem:[#allocation4 + $0xf8] sm:$0xff] }
  0x76   :  { %v399_v38 = vunpack.c.2.s8 %v267_v32  ;;  %v402_v39 = vunpack.c.3.s8 %v267_v32  ;;  %v306_v32 = vunpack.c.3.s8 %v243_v60 }
  0x78   :  { %v543_v50 = vcvt.s32.f32 %v399_v38  ;;  %v546_v51 = vcvt.s32.f32 %v402_v39 }
  0x79   :  { %5397 = vmatpush.bf16.msrb.mxu3 %v5938_v43  ;;  %v294_v43 = vunpack.c.3.s8 %v240_v11  ;;  %v300_v11 = vunpack.c.1.s8 %v243_v60 }
  0x7a   :  { %v5992_v56 = vpack.c.bf16 %v546_v51, %v543_v50 }
  0x7b   :  { %v438_v55 = vcvt.s32.f32 %v294_v43  ;;  %v444_v22 = vcvt.s32.f32 %v300_v11  ;;  %v450_v43 = vcvt.s32.f32 %v306_v32 }
  0x7c   :  { %890 = vmatmul.bf16.gmra.mxu0 %v5974_v19  ;;  %995 = vmatmul.bf16.gmra.mxu3 %v5976_v33  ;;  %8150 = vst [vmem:[#allocation38_spill] sm:$0xff] %v5992_v56 }
  0x7d   :  { %5398 = vmatpush.bf16.msra.mxu3 %v5894_v1  ;;  %1148 = vmatmul.bf16.gmra.mxu2 %v5979_v34  ;;  %v292_v1 = vunpack.c.2.s8 %v241_v9  ;;  %v5996_v58 = vpack.c.bf16 %v438_v55, %v435_v54  ;;  %v297_v9 = vunpack.c.0.s8 %v243_v60  ;;  %v6024_v51 = vpack.c.bf16 %v450_v43, %v447_v41  ;;  %v268_v54 = vld [vmem:[#allocation4 + $0x100] sm:$0xff]  ;;  %v247_v55 = vld [vmem:[#allocation4 + $0x58] sm:$0xff] }
  0x7e   :  { %1019 = vmatmul.bf16.gmra.mxu1 %v5981_v35 }
  0x7f   :  { %v436_v52 = vcvt.s32.f32 %v292_v1  ;;  %8152 = vst [vmem:[#allocation40_spill] sm:$0xff] %v5996_v58  ;;  %v441_v14 = vcvt.s32.f32 %v297_v9  ;;  %v448_v1 = vcvt.s32.f32 %v304_v28  ;;  %v5299_v9 = vld [vmem:[#allocation6 + $0x28] sm:$0xff]  ;;  %v5297_v28 = vld [vmem:[#allocation6 + $0x18] sm:$0xff] }
  0x80   :  { %8160 = vst [vmem:[#allocation48_spill] sm:$0xff] %v6024_v51 }
  0x81   :  { %5399 = vmatpush.bf16.msra.mxu3 %v5900_v4  ;;  %v5990_v4 = vpack.c.bf16 %v437_v49, %v434_v48  ;;  %v5994_v57 = vpack.c.bf16 %v439_v53, %v436_v52  ;;  %v6012_v25 = vpack.c.bf16 %v444_v22, %v441_v14  ;;  %v6022_v50 = vpack.c.bf16 %v451_v40, %v448_v1  ;;  %v5301_v52 = vld [vmem:[#allocation6 + $0x38] sm:$0xff]  ;;  %v245_v53 = vld [vmem:[#allocation4 + $0x48] sm:$0xff] }
  0x82   :  { %v311_v60 = vunpack.c.1.s8 %v245_v53  ;;  %v314_v30 = vunpack.c.2.s8 %v245_v53  ;;  %v317_v32 = vunpack.c.3.s8 %v245_v53  ;;  %v319_v1 = vunpack.c.3.s8 %v247_v55 }
  0x83   :  { %8149 = vst [vmem:[#allocation37_spill] sm:$0xff] %v5990_v4 }
  0x84   :  { %8151 = vst [vmem:[#allocation39_spill] sm:$0xff] %v5994_v57  ;;  %v458_v43 = vcvt.s32.f32 %v314_v30 }
  0x85   :  { %5400 = vmatpush.bf16.msra.mxu3 %v5906_v7  ;;  %v242_v7 = vld [vmem:[#allocation4 + $0x30] sm:$0xff]  ;;  %8156 = vst [vmem:[#allocation44_spill] sm:$0xff] %v6012_v25 }
  0x86   :  { %v296_v61 = vunpack.c.0.s8 %v242_v7  ;;  %v299_v62 = vunpack.c.1.s8 %v242_v7  ;;  %v305_v26 = vunpack.c.3.s8 %v242_v7  ;;  %8159 = vst [vmem:[#allocation47_spill] sm:$0xff] %v6022_v50 }
  0x88   :  { %v440_v12 = vcvt.s32.f32 %v296_v61  ;;  %v443_v15 = vcvt.s32.f32 %v299_v62  ;;  %v449_v37 = vcvt.s32.f32 %v305_v26  ;;  %v400_v61 = vunpack.c.2.s8 %v268_v54  ;;  %v5298_v26 = vld [vmem:[#allocation6 + $0x20] sm:$0xff] }
  0x89   :  { %5401 = vmatpush.bf16.msra.mxu3 %v5910_v10  ;;  %v270_v10 = vld [vmem:[#allocation4 + $0x110] sm:$0xff]  ;;  %v403_v62 = vunpack.c.3.s8 %v268_v54 }
  0x8a   :  { %v405_v63 = vunpack.c.0.s8 %v270_v10  ;;  %v408_v0 = vunpack.c.1.s8 %v270_v10  ;;  %v411_v27 = vunpack.c.2.s8 %v270_v10 }
  0x8c   :  { %895 = vmatmul.bf16.gmra.mxu0 %v5990_v4  ;;  %1114 = vmatmul.bf16.vlgmr.msrb.gmra.mxu3 %v5992_v56  ;;  %v549_v17 = vcvt.s32.f32 %v405_v63  ;;  %v552_v18 = vcvt.s32.f32 %v408_v0  ;;  %v555_v38 = vcvt.s32.f32 %v411_v27  ;;  %v310_v63 = vunpack.c.0.s8 %v247_v55 }
  0x8d   :  { %5402 = vmatpush.bf16.msra.mxu3 %v5918_v13  ;;  %1153 = vmatmul.bf16.gmra.mxu2 %v5994_v57  ;;  %v301_v13 = vunpack.c.1.s8 %v244_v59  ;;  %v308_v59 = vunpack.c.0.s8 %v245_v53  ;;  %v313_v0 = vunpack.c.1.s8 %v247_v55 }
  0x8e   :  { %1024 = vmatmul.bf16.gmra.mxu1 %v5996_v58  ;;  %v6008_v23 = vpack.c.bf16 %v552_v18, %v549_v17  ;;  %v547_v17 = vcvt.s32.f32 %v403_v62  ;;  %v454_v18 = vcvt.s32.f32 %v310_v63 }
  0x8f   :  { %v445_v21 = vcvt.s32.f32 %v301_v13  ;;  %v452_v11 = vcvt.s32.f32 %v308_v59  ;;  %v5295_v59 = vld [vmem:[#allocation6 + $0x8] sm:$0xff] }
  0x90   :  { %8154 = vst [vmem:[#allocation42_spill] sm:$0xff] %v6008_v23 }
  0x91   :  { %5403 = vmatpush.bf16.msra.mxu3 %v5922_v16  ;;  %v6006_v16 = vpack.c.bf16 %v443_v15, %v440_v12  ;;  %v6010_v24 = vpack.c.bf16 %v445_v21, %v442_v20  ;;  %v455_v12 = vcvt.s32.f32 %v311_v60  ;;  %v544_v15 = vcvt.s32.f32 %v400_v61 }
  0x92   :  { %v457_v20 = vcvt.s32.f32 %v313_v0  ;;  %v463_v61 = vcvt.s32.f32 %v319_v1 }
  0x93   :  { %8153 = vst [vmem:[#allocation41_spill] sm:$0xff] %v6006_v16  ;;  %v6030_v22 = vpack.c.bf16 %v455_v12, %v452_v11  ;;  %v249_v11 = vld [vmem:[#allocation4 + $0x68] sm:$0xff] }
  0x94   :  { %8155 = vst [vmem:[#allocation43_spill] sm:$0xff] %v6010_v24  ;;  %v6034_v27 = vpack.c.bf16 %v457_v20, %v454_v18  ;;  %v415_v18 = vunpack.c.3.s8 %v271_v29 }
  0x95   :  { %5404 = vmatpush.bf16.msra.mxu3 %v5930_v31  ;;  %v302_v31 = vunpack.c.2.s8 %v242_v7  ;;  %v246_v7 = vld [vmem:[#allocation4 + $0x50] sm:$0xff]  ;;  %8161 = vst [vmem:[#allocation49_spill] sm:$0xff] %v6030_v22 }
  0x96   :  { %v309_v8 = vunpack.c.0.s8 %v246_v7  ;;  %v312_v13 = vunpack.c.1.s8 %v246_v7  ;;  %8163 = vst [vmem:[#allocation51_spill] sm:$0xff] %v6034_v27  ;;  %v315_v40 = vunpack.c.2.s8 %v246_v7  ;;  %v318_v41 = vunpack.c.3.s8 %v246_v7  ;;  %v248_v7 = vld [vmem:[#allocation4 + $0x60] sm:$0xff] }
  0x97   :  { %v446_v36 = vcvt.s32.f32 %v302_v31  ;;  %v6032_v31 = vpack.c.bf16 %v547_v17, %v544_v15  ;;  %v320_v12 = vunpack.c.0.s8 %v248_v7  ;;  %v323_v15 = vunpack.c.1.s8 %v248_v7 }
  0x98   :  { %v453_v21 = vcvt.s32.f32 %v309_v8  ;;  %v456_v14 = vcvt.s32.f32 %v312_v13  ;;  %v459_v62 = vcvt.s32.f32 %v315_v40  ;;  %v462_v63 = vcvt.s32.f32 %v318_v41  ;;  %v5294_v8 = vld [vmem:[#allocation6] sm:$0xff] }
  0x99   :  { %5405 = vmatpush.bf16.msra.mxu3 %v5936_v42  ;;  %v414_v42 = vunpack.c.3.s8 %v270_v10  ;;  %v6018_v48 = vpack.c.bf16 %v449_v37, %v446_v36  ;;  %v5300_v10 = vld [vmem:[#allocation6 + $0x30] sm:$0xff]  ;;  %8162 = vst [vmem:[#allocation50_spill] sm:$0xff] %v6032_v31  ;;  %v406_v36 = vunpack.c.0.s8 %v271_v29  ;;  %v409_v37 = vunpack.c.1.s8 %v271_v29 }
  0x9a   :  { %v412_v17 = vunpack.c.2.s8 %v271_v29  ;;  %v467_v30 = vcvt.s32.f32 %v323_v15 }
  0x9b   :  { %v558_v39 = vcvt.s32.f32 %v414_v42  ;;  %8157 = vst [vmem:[#allocation45_spill] sm:$0xff] %v6018_v48  ;;  %v6036_v42 = vpack.c.bf16 %v456_v14, %v453_v21  ;;  %v550_v54 = vcvt.s32.f32 %v406_v36  ;;  %v321_v14 = vunpack.c.0.s8 %v249_v11 }
  0x9c   :  { %900 = vmatmul.bf16.gmra.mxu0 %v6006_v16  ;;  %1119 = vmatmul.bf16.gmra.mxu3 %v6008_v23  ;;  %v559_v36 = vcvt.s32.f32 %v415_v18 }
  0x9d   :  { %1158 = vmatmul.bf16.gmra.mxu2 %v6010_v24  ;;  %v6020_v49 = vpack.c.bf16 %v558_v39, %v555_v38  ;;  %1351 = vmatpush.bf16.msrb.mxu3 %v5301_v52  ;;  %8164 = vst [vmem:[#allocation52_spill] sm:$0xff] %v6036_v42  ;;  %v5296_v38 = vld [vmem:[#allocation6 + $0x10] sm:$0xff]  ;;  %v316_v39 = vunpack.c.2.s8 %v247_v55  ;;  %v461_v52 = vcvt.s32.f32 %v317_v32  ;;  %v6048_v55 = vpack.c.bf16 %v462_v63, %v459_v62 }
  0x9e   :  { %1029 = vmatmul.bf16.gmra.mxu1 %v6012_v25  ;;  %v556_v32 = vcvt.s32.f32 %v412_v17  ;;  %v326_v63 = vunpack.c.2.s8 %v248_v7 }
  0x9f   :  { %8158 = vst [vmem:[#allocation46_spill] sm:$0xff] %v6020_v49  ;;  %v460_v60 = vcvt.s32.f32 %v316_v39  ;;  %v6042_v0 = vpack.c.bf16 %v461_v52, %v458_v43  ;;  %v465_v39 = vcvt.s32.f32 %v321_v14 }
  0xa0   :  { %8168 = vst [vmem:[#allocation56_spill] sm:$0xff] %v6048_v55  ;;  %v6056_v41 = vpack.c.bf16 %v559_v36, %v556_v32 }
  0xa1   :  { %1352 = vmatpush.bf16.msrb.mxu3 %v5300_v10  ;;  %v553_v10 = vcvt.s32.f32 %v409_v37  ;;  %8165 = vst [vmem:[#allocation53_spill] sm:$0xff] %v6042_v0  ;;  %v6046_v13 = vpack.c.bf16 %v463_v61, %v460_v60 }
  0xa2   :  { %8170 = vst [vmem:[#allocation58_spill] sm:$0xff] %v6056_v41 }
  0xa3   :  { %v6044_v53 = vpack.c.bf16 %v553_v10, %v550_v54  ;;  %8167 = vst [vmem:[#allocation55_spill] sm:$0xff] %v6046_v13  ;;  %v632_v10 = vld [vmem:[#allocation2] sm:$0xff]  }
  0xa4   :  { %v681_v61 = vunpack.c.h.bf16 %v632_v10 }
  0xa5   :  { %1353 = vmatpush.bf16.msrb.mxu3 %v5299_v9  ;;  %8166 = vst [vmem:[#allocation54_spill] sm:$0xff] %v6044_v53  ;;  %v250_v9 = vld [vmem:[#allocation4 + $0x70] sm:$0xff] }
  0xa6   :  { %v322_v20 = vunpack.c.0.s8 %v250_v9  ;;  %v325_v21 = vunpack.c.1.s8 %v250_v9  ;;  %v328_v15 = vunpack.c.2.s8 %v250_v9  ;;  %v331_v17 = vunpack.c.3.s8 %v250_v9 }
  0xa8   :  { %v466_v37 = vcvt.s32.f32 %v322_v20  ;;  %v327_v20 = vunpack.c.2.s8 %v249_v11  ;;  %v472_v32 = vcvt.s32.f32 %v328_v15  ;;  %v475_v36 = vcvt.s32.f32 %v331_v17 }
  0xa9   :  { %1354 = vmatpush.bf16.msrb.mxu3 %v5298_v26  ;;  %v324_v26 = vunpack.c.1.s8 %v249_v11 }
  0xab   :  { %v468_v1 = vcvt.s32.f32 %v324_v26 }
  0xac   :  { %905 = vmatmul.bf16.gmra.mxu0 %v6018_v48  ;;  %1124 = vmatmul.bf16.gmra.mxu3 %v6020_v49  ;;  %v6072_v49 = vpack.c.bf16 %v475_v36, %v472_v32 }
  0xad   :  { %1163 = vmatmul.bf16.gmra.mxu2 %v6022_v50  ;;  %1355 = vmatpush.bf16.msrb.mxu3 %v5297_v28  ;;  %v464_v28 = vcvt.s32.f32 %v320_v12  ;;  %v6060_v29 = vpack.c.bf16 %v468_v1, %v465_v39 }
  0xae   :  { %1034 = vmatmul.bf16.gmra.mxu1 %v6024_v51  ;;  %8174 = vst [vmem:[#allocation62_spill] sm:$0xff] %v6072_v49 }
  0xaf   :  { %v6054_v40 = vpack.c.bf16 %v467_v30, %v464_v28  ;;  %8172 = vst [vmem:[#allocation60_spill] sm:$0xff] %v6060_v29  ;;  %v470_v28 = vcvt.s32.f32 %v326_v63  ;;  %v253_v63 = vld [vmem:[#allocation4 + $0x88] sm:$0xff] }
  0xb1   :  { %1356 = vmatpush.bf16.msrb.mxu3 %v5296_v38  ;;  %v469_v38 = vcvt.s32.f32 %v325_v21  ;;  %8169 = vst [vmem:[#allocation57_spill] sm:$0xff] %v6054_v40  ;;  %v330_v21 = vunpack.c.3.s8 %v249_v11 }
  0xb3   :  { %v6058_v52 = vpack.c.bf16 %v469_v38, %v466_v37  ;;  %v471_v37 = vcvt.s32.f32 %v327_v20  ;;  %v474_v38 = vcvt.s32.f32 %v330_v21  ;;  %v337_v21 = vunpack.c.1.s8 %v253_v63 }
  0xb5   :  { %1357 = vmatpush.bf16.msrb.mxu3 %v5295_v59  ;;  %8171 = vst [vmem:[#allocation59_spill] sm:$0xff] %v6058_v52  ;;  %v680_v59 = vunpack.c.l.bf16 %v632_v10 }
  0xb9   :  { %1358 = vmatpush.bf16.msrb.mxu3 %v5294_v8  ;;  %v329_v8 = vunpack.c.3.s8 %v248_v7 }
  0xbb   :  { %v473_v30 = vcvt.s32.f32 %v329_v8 }
  0xbc   :  { %910 = vmatmul.bf16.gmra.mxu0 %v6030_v22  ;;  %1243 = vmatmul.bf16.vlgmr.msra.gmra.mxu3 %v6032_v31 }
  0xbd   :  { %1168 = vmatmul.bf16.gmra.mxu2 %v6034_v27  ;;  %v6070_v7 = vpack.c.bf16 %v473_v30, %v470_v28 }
  0xbe   :  { %1039 = vmatmul.bf16.gmra.mxu1 %v6036_v42 }
  0xbf   :  { %8173 = vst [vmem:[#allocation61_spill] sm:$0xff] %v6070_v7 }
  0xcc   :  { %915 = vmatmul.bf16.gmra.mxu0 %v6042_v0  ;;  %1248 = vmatmul.bf16.gmra.mxu3 %v6044_v53 }
  0xcd   :  { %1173 = vmatmul.bf16.gmra.mxu2 %v6046_v13 }
  0xce   :  { %1044 = vmatmul.bf16.gmra.mxu1 %v6048_v55 }
  0xd9   :  { %v881_v43 = vpop.f32.mrf.mxu0 }
  0xda   :  { %v882_v14 = vadd.f32 %v881_v43, %v680_v59  ;;  %v6074_v43 = vpack.c.bf16 %v474_v38, %v471_v37 }
  0xdb   :  { %v1010_v54 = vpop.f32.mrf.mxu1 }
  0xdc   :  { %920 = vmatmul.bf16.gmra.mxu0 %v6054_v40  ;;  %1253 = vmatmul.bf16.gmra.mxu3 %v6056_v41  ;;  %v1011_v39 = vadd.f32 %v1010_v54, %v882_v14  ;;  %8175 = vst [vmem:[#allocation63_spill] sm:$0xff] %v6074_v43  ;;  %v251_v54 = vld [vmem:[#allocation4 + $0x78] sm:$0xff] }
  0xdd   :  { %1178 = vmatmul.bf16.gmra.mxu2 %v6058_v52  ;;  %v332_v17 = vunpack.c.0.s8 %v251_v54 }
  0xde   :  { %1049 = vmatmul.bf16.gmra.mxu1 %v6060_v29  ;;  %v5306_v29 = vld [vmem:[#allocation7 + $0x20] sm:$0xff] }
  0xdf   :  { %v6066_v60 = vpop.f32.mrf.mxu3  ;;  %v476_v36 = vcvt.s32.f32 %v332_v17  ;;  %v636_v17 = vld [vmem:[#allocation2 + $0x10] sm:$0xff]  }
  0xe0   :  { %v1139_v62 = vpop.f32.mrf.mxu2 }
  0xe1   :  { %v883_v12 = vpop.f32.mrf.mxu0  ;;  %v1140_v53 = vadd.f32 %v1139_v62, %v1011_v39  ;;  %v481_v39 = vcvt.s32.f32 %v337_v21 }
  0xe2   :  { %v884_v26 = vadd.f32 %v883_v12, %v681_v61  ;;  %v634_v61 = vld [vmem:[#allocation2 + $0x8] sm:$0xff]   ;;  %v252_v12 = vld [vmem:[#allocation4 + $0x80] sm:$0xff] }
  0xe3   :  { %v1012_v18 = vpop.f32.mrf.mxu1  ;;  %v682_v8 = vunpack.c.l.bf16 %v634_v61  ;;  %v336_v28 = vunpack.c.1.s8 %v252_v12 }
  0xe4   :  { %v1013_v1 = vadd.f32 %v1012_v18, %v884_v26  ;;  %v335_v18 = vunpack.c.1.s8 %v251_v54  ;;  %v333_v26 = vunpack.c.0.s8 %v252_v12 }
  0xe6   :  { %v479_v37 = vcvt.s32.f32 %v335_v18 }
  0xe7   :  { %v6068_v10 = vpop.f32.mrf.mxu3 }
  0xe8   :  { %v1141_v41 = vpop.f32.mrf.mxu2 }
  0xe9   :  { %v1142_v9 = vadd.f32 %v1141_v41, %v1013_v1  ;;  %v886_v31 = vpop.f32.mrf.mxu0  ;;  %v683_v41 = vunpack.c.h.bf16 %v634_v61  ;;  %v477_v1 = vcvt.s32.f32 %v333_v26  ;;  %v343_v26 = vunpack.c.3.s8 %v253_v63 }
  0xea   :  { %v887_v30 = vadd.f32 %v886_v31, %v682_v8 }
  0xeb   :  { %v1015_v11 = vpop.f32.mrf.mxu1  ;;  %v1259_v59 = vpack.c.bf16 %v1142_v9, %v1140_v53  ;;  %v334_v53 = vunpack.c.0.s8 %v253_v63  ;;  %v480_v9 = vcvt.s32.f32 %v336_v28 }
  0xec   :  { %925 = vmatmul.bf16.gmra.mxu0 %v6070_v7 }
  0xed   :  { %1183 = vmatmul.bf16.gmra.mxu2 %v6072_v49  ;;  %1359 = vmatmul.bf16.vlgmr.msrb.gmra.mxu3 %v1259_v59  ;;  %v478_v38 = vcvt.s32.f32 %v334_v53  ;;  %v1016_v59 = vadd.f32 %v1015_v11, %v887_v30  ;;  %v6083_v49 = vpack.c.bf16 %v479_v37, %v476_v36  ;;  %v6087_v8 = vpack.c.bf16 %v480_v9, %v477_v1 }
  0xee   :  { %1054 = vmatmul.bf16.gmra.mxu1 %v6074_v43  ;;  %v684_v11 = vunpack.c.l.bf16 %v636_v17  ;;  %v341_v53 = vunpack.c.3.s8 %v251_v54  ;;  %v487_v1 = vcvt.s32.f32 %v343_v26 }
  0xef   :  { %v6079_v62 = vpop.f32.mrf.mxu3  ;;  %8176 = vst [vmem:[#allocation64_spill] sm:$0xff] %v6083_v49  ;;  %v6085_v27 = vpack.c.bf16 %v481_v39, %v478_v38  ;;  %v674_v38 = vld [vmem:[#allocation2 + $0xa8] sm:$0xff]  }
  0xf0   :  { %v1144_v15 = vpop.f32.mrf.mxu2  ;;  %8178 = vst [vmem:[#allocation66_spill] sm:$0xff] %v6087_v8  ;;  %v485_v37 = vcvt.s32.f32 %v341_v53 }
  0xf1   :  { %v888_v20 = vpop.f32.mrf.mxu0  ;;  %v1145_v52 = vadd.f32 %v1144_v15, %v1016_v59  ;;  %8177 = vst [vmem:[#allocation65_spill] sm:$0xff] %v6085_v27  ;;  %v685_v15 = vunpack.c.h.bf16 %v636_v17 }
  0xf2   :  { %v889_v32 = vadd.f32 %v888_v20, %v683_v41  ;;  %v338_v20 = vunpack.c.2.s8 %v251_v54  ;;  %v722_v54 = vunpack.c.l.bf16 %v674_v38 }
  0xf3   :  { %v1017_v14 = vpop.f32.mrf.mxu1 }
  0xf4   :  { %v1018_v61 = vadd.f32 %v1017_v14, %v889_v32  ;;  %v340_v14 = vunpack.c.2.s8 %v253_v63  ;;  %v482_v36 = vcvt.s32.f32 %v338_v20  ;;  %v987_v53 = vadd.f32 %v6066_v60, %v722_v54 }
  0xf6   :  { %v484_v39 = vcvt.s32.f32 %v340_v14  ;;  %v6096_v3 = vpack.c.bf16 %v485_v37, %v482_v36  ;;  %v723_v37 = vunpack.c.h.bf16 %v674_v38 }
  0xf7   :  { %v6081_v23 = vpop.f32.mrf.mxu3 }
  0xf8   :  { %v1146_v56 = vpop.f32.mrf.mxu2  ;;  %8179 = vst [vmem:[#allocation67_spill] sm:$0xff] %v6096_v3 }
  0xf9   :  { %v1147_v13 = vadd.f32 %v1146_v56, %v1018_v61  ;;  %v891_v33 = vpop.f32.mrf.mxu0 }
  0xfa   :  { %v892_v30 = vadd.f32 %v891_v33, %v684_v11  ;;  %v6098_v33 = vpack.c.bf16 %v487_v1, %v484_v39 }
  0xfb   :  { %v1020_v31 = vpop.f32.mrf.mxu1  ;;  %v1260_v41 = vpack.c.bf16 %v1147_v13, %v1145_v52  ;;  %v339_v13 = vunpack.c.2.s8 %v252_v12  ;;  %v342_v52 = vunpack.c.3.s8 %v252_v12 }
  0xfc   :  { %930 = vmatmul.bf16.gmra.mxu0 %v6083_v49  ;;  %v1021_v61 = vadd.f32 %v1020_v31, %v892_v30  ;;  %8180 = vst [vmem:[#allocation68_spill] sm:$0xff] %v6098_v33  ;;  %v6105_v31 = vld [vmem:[#allocation4 + $0x90] sm:$0xff] }
  0xfd   :  { %1188 = vmatmul.bf16.gmra.mxu2 %v6085_v27  ;;  %1364 = vmatmul.bf16.gmra.mxu3 %v1260_v41  ;;  %v483_v9 = vcvt.s32.f32 %v339_v13  ;;  %v486_v59 = vcvt.s32.f32 %v342_v52  ;;  %v344_v13 = vunpack.c.0.s8 %v6105_v31  ;;  %v347_v52 = vunpack.c.1.s8 %v6105_v31 }
  0xfe   :  { %1059 = vmatmul.bf16.gmra.mxu1 %v6087_v8 }
  0xff   :  { %v6092_v18 = vpop.f32.mrf.mxu3  ;;  %v491_v54 = vcvt.s32.f32 %v347_v52 }
 0x100   :  { %v1149_v56 = vpop.f32.mrf.mxu2 }
 0x101   :  { %v893_v21 = vpop.f32.mrf.mxu0  ;;  %v1150_v63 = vadd.f32 %v1149_v56, %v1021_v61 }
 0x102   :  { %v894_v32 = vadd.f32 %v893_v21, %v685_v15  ;;  %v6100_v15 = vpack.c.bf16 %v486_v59, %v483_v9  ;;  %v638_v21 = vld [vmem:[#allocation2 + $0x18] sm:$0xff]  }
 0x103   :  { %v1022_v28 = vpop.f32.mrf.mxu1  ;;  %v686_v56 = vunpack.c.l.bf16 %v638_v21  ;;  %v687_v26 = vunpack.c.h.bf16 %v638_v21  ;;  %v989_v21 = vadd.f32 %v6068_v10, %v723_v37 }
 0x104   :  { %v1023_v41 = vadd.f32 %v1022_v28, %v894_v32  ;;  %8181 = vst [vmem:[#allocation69_spill] sm:$0xff] %v6100_v15  ;;  %v6110_v28 = vld [vmem:[#allocation4 + $0x98] sm:$0xff] }
 0x105   :  { %v345_v1 = vunpack.c.0.s8 %v6110_v28  ;;  %v348_v9 = vunpack.c.1.s8 %v6110_v28 }
 0x107   :  { %v6094_v17 = vpop.f32.mrf.mxu3 }
 0x108   :  { %v1151_v27 = vpop.f32.mrf.mxu2 }
 0x109   :  { %v1152_v50 = vadd.f32 %v1151_v27, %v1023_v41  ;;  %v896_v12 = vpop.f32.mrf.mxu0  ;;  %v6108_v27 = vld [vmem:[#allocation4 + $0xa0] sm:$0xff]  ;;  %v488_v41 = vcvt.s32.f32 %v344_v13 }
 0x10a   :  { %v346_v32 = vunpack.c.0.s8 %v6108_v27  ;;  %v349_v36 = vunpack.c.1.s8 %v6108_v27  ;;  %v897_v59 = vadd.f32 %v896_v12, %v686_v56 }
 0x10b   :  { %v1025_v11 = vpop.f32.mrf.mxu1  ;;  %v1261_v20 = vpack.c.bf16 %v1152_v50, %v1150_v63  ;;  %v676_v63 = vld [vmem:[#allocation2 + $0xb0] sm:$0xff]   ;;  %v6123_v8 = vpack.c.bf16 %v491_v54, %v488_v41 }
 0x10c   :  { %935 = vmatmul.bf16.gmra.mxu0 %v6096_v3  ;;  %v1026_v45 = vadd.f32 %v1025_v11, %v897_v59  ;;  %v724_v38 = vunpack.c.l.bf16 %v676_v63  ;;  %v640_v11 = vld [vmem:[#allocation2 + $0x20] sm:$0xff]   ;;  %v351_v59 = vunpack.c.2.s8 %v6110_v28 }
 0x10d   :  { %1193 = vmatmul.bf16.gmra.mxu2 %v6098_v33  ;;  %1369 = vmatmul.bf16.gmra.mxu3 %v1261_v20  ;;  %v490_v20 = vcvt.s32.f32 %v346_v32  ;;  %v492_v33 = vcvt.s32.f32 %v348_v9  ;;  %8182 = vst [vmem:[#allocation70_spill] sm:$0xff] %v6123_v8 }
 0x10e   :  { %1064 = vmatmul.bf16.gmra.mxu1 %v6100_v15  ;;  %v992_v32 = vadd.f32 %v6079_v62, %v724_v38  ;;  %v352_v62 = vunpack.c.2.s8 %v6108_v27 }
 0x10f   :  { %v1115_v14 = vpop.f32.mrf.mxu3 }
 0x110   :  { %v6112_v50 = vadd.f32 %v1115_v14, %v987_v53  ;;  %v1154_v60 = vpop.f32.mrf.mxu2  ;;  %v493_v53 = vcvt.s32.f32 %v349_v36  ;;  %v489_v14 = vcvt.s32.f32 %v345_v1  ;;  %v353_v36 = vunpack.c.3.s8 %v6105_v31 }
 0x111   :  { %v898_v30 = vpop.f32.mrf.mxu0  ;;  %v1155_v12 = vadd.f32 %v1154_v60, %v1026_v45  ;;  %v725_v1 = vunpack.c.h.bf16 %v676_v63 }
 0x112   :  { %v899_v61 = vadd.f32 %v898_v30, %v687_v26  ;;  %v6125_v13 = vpack.c.bf16 %v493_v53, %v490_v20  ;;  %v6127_v30 = vpack.c.bf16 %v492_v33, %v489_v14  ;;  %v350_v33 = vunpack.c.2.s8 %v6105_v31 }
 0x113   :  { %v1027_v39 = vpop.f32.mrf.mxu1  ;;  %v497_v53 = vcvt.s32.f32 %v353_v36  ;;  %v496_v14 = vcvt.s32.f32 %v352_v62  ;;  %v994_v31 = vadd.f32 %v6081_v23, %v725_v1  ;;  %v257_v62 = vld [vmem:[#allocation4 + $0xa8] sm:$0xff] }
 0x114   :  { %v1028_v24 = vadd.f32 %v1027_v39, %v899_v61  ;;  %8183 = vst [vmem:[#allocation71_spill] sm:$0xff] %v6125_v13  ;;  %v355_v39 = vunpack.c.3.s8 %v6108_v27  ;;  %v354_v61 = vunpack.c.3.s8 %v6110_v28  ;;  %v494_v20 = vcvt.s32.f32 %v350_v33 }
 0x115   :  { %8184 = vst [vmem:[#allocation72_spill] sm:$0xff] %v6127_v30 }
 0x116   :  { %v499_v38 = vcvt.s32.f32 %v355_v39 }
 0x117   :  { %v1117_v57 = vpop.f32.mrf.mxu3 }
 0x118   :  { %v6121_v15 = vadd.f32 %v1117_v57, %v989_v21  ;;  %v1156_v34 = vpop.f32.mrf.mxu2  ;;  %v688_v57 = vunpack.c.l.bf16 %v640_v11  ;;  %v678_v21 = vld [vmem:[#allocation2 + $0xb8] sm:$0xff]  }
 0x119   :  { %v1157_v56 = vadd.f32 %v1156_v34, %v1028_v24  ;;  %v901_v26 = vpop.f32.mrf.mxu0  ;;  %v689_v34 = vunpack.c.h.bf16 %v640_v11  ;;  %v726_v63 = vunpack.c.l.bf16 %v678_v21 }
 0x11a   :  { %v902_v41 = vadd.f32 %v901_v26, %v688_v57 }
 0x11b   :  { %v1030_v52 = vpop.f32.mrf.mxu1  ;;  %v1262_v10 = vpack.c.bf16 %v1157_v56, %v1155_v12  ;;  %v495_v12 = vcvt.s32.f32 %v351_v59  ;;  %v498_v56 = vcvt.s32.f32 %v354_v61  ;;  %v258_v59 = vld [vmem:[#allocation4 + $0xb0] sm:$0xff] }
 0x11c   :  { %940 = vmatmul.bf16.gmra.mxu0 %v6123_v8 }
 0x11d   :  { %1198 = vmatmul.bf16.gmra.mxu2 %v6125_v13  ;;  %1374 = vmatmul.bf16.gmra.mxu3 %v1262_v10  ;;  %v1031_v10 = vadd.f32 %v1030_v52, %v902_v41  ;;  %v6144_v13 = vpack.c.bf16 %v497_v53, %v494_v20  ;;  %v6148_v36 = vpack.c.bf16 %v498_v56, %v495_v12  ;;  %v642_v52 = vld [vmem:[#allocation2 + $0x28] sm:$0xff]   ;;  %v359_v20 = vunpack.c.1.s8 %v257_v62 }
 0x11e   :  { %1069 = vmatmul.bf16.gmra.mxu1 %v6127_v30  ;;  %v690_v39 = vunpack.c.l.bf16 %v642_v52  ;;  %v357_v12 = vunpack.c.0.s8 %v258_v59  ;;  %v360_v56 = vunpack.c.1.s8 %v258_v59 }
 0x11f   :  { %v1120_v45 = vpop.f32.mrf.mxu3  ;;  %8185 = vst [vmem:[#allocation73_spill] sm:$0xff] %v6144_v13 }
 0x120   :  { %v6133_v24 = vadd.f32 %v1120_v45, %v992_v32  ;;  %v1159_v60 = vpop.f32.mrf.mxu2  ;;  %8187 = vst [vmem:[#allocation75_spill] sm:$0xff] %v6148_v36 }
 0x121   :  { %v903_v37 = vpop.f32.mrf.mxu0  ;;  %v1160_v28 = vadd.f32 %v1159_v60, %v1031_v10  ;;  %v259_v60 = vld [vmem:[#allocation4 + $0xb8] sm:$0xff] }
 0x122   :  { %v904_v54 = vadd.f32 %v903_v37, %v689_v34  ;;  %v6146_v34 = vpack.c.bf16 %v499_v38, %v496_v14  ;;  %v997_v37 = vadd.f32 %v6092_v18, %v726_v63  ;;  %v358_v53 = vunpack.c.0.s8 %v259_v60 }
 0x123   :  { %v1032_v9 = vpop.f32.mrf.mxu1  ;;  %v361_v14 = vunpack.c.1.s8 %v259_v60  ;;  %v727_v38 = vunpack.c.h.bf16 %v678_v21  ;;  %v503_v63 = vcvt.s32.f32 %v359_v20 }
 0x124   :  { %v1033_v32 = vadd.f32 %v1032_v9, %v904_v54  ;;  %8186 = vst [vmem:[#allocation74_spill] sm:$0xff] %v6146_v34  ;;  %v691_v9 = vunpack.c.h.bf16 %v642_v52  ;;  %v356_v54 = vunpack.c.0.s8 %v257_v62 }
 0x127   :  { %v1122_v27 = vpop.f32.mrf.mxu3 }
 0x128   :  { %v6142_v11 = vadd.f32 %v1122_v27, %v994_v31  ;;  %v1161_v45 = vpop.f32.mrf.mxu2  ;;  %v500_v27 = vcvt.s32.f32 %v356_v54 }
 0x129   :  { %v1162_v26 = vadd.f32 %v1161_v45, %v1033_v32  ;;  %v906_v57 = vpop.f32.mrf.mxu0  ;;  %v502_v45 = vcvt.s32.f32 %v358_v53  ;;  %v362_v53 = vunpack.c.2.s8 %v257_v62 }
 0x12a   :  { %v907_v10 = vadd.f32 %v906_v57, %v690_v39  ;;  %v6159_v21 = vpack.c.bf16 %v503_v63, %v500_v27 }
 0x12b   :  { %v1035_v33 = vpop.f32.mrf.mxu1  ;;  %v1263_v23 = vpack.c.bf16 %v1162_v26, %v1160_v28  ;;  %v505_v28 = vcvt.s32.f32 %v361_v14  ;;  %v999_v26 = vadd.f32 %v6094_v17, %v727_v38  ;;  %v644_v17 = vld [vmem:[#allocation2 + $0x30] sm:$0xff]   ;;  %v365_v14 = vunpack.c.3.s8 %v257_v62 }
 0x12c   :  { %945 = vmatmul.bf16.gmra.mxu0 %v6144_v13  ;;  %v1036_v52 = vadd.f32 %v1035_v33, %v907_v10  ;;  %8188 = vst [vmem:[#allocation76_spill] sm:$0xff] %v6159_v21  ;;  %v506_v27 = vcvt.s32.f32 %v362_v53  ;;  %v646_v53 = vld [vmem:[#allocation2 + $0x38] sm:$0xff]  }
 0x12d   :  { %1203 = vmatmul.bf16.gmra.mxu2 %v6146_v34  ;;  %1379 = vmatmul.bf16.gmra.mxu3 %v1263_v23  ;;  %v501_v23 = vcvt.s32.f32 %v357_v12  ;;  %v6161_v39 = vpack.c.bf16 %v505_v28, %v502_v45  ;;  %v363_v12 = vunpack.c.2.s8 %v258_v59  ;;  %v509_v63 = vcvt.s32.f32 %v365_v14 }
 0x12e   :  { %1074 = vmatmul.bf16.gmra.mxu1 %v6148_v36  ;;  %v694_v14 = vunpack.c.l.bf16 %v646_v53 }
 0x12f   :  { %v1125_v1 = vpop.f32.mrf.mxu3  ;;  %8189 = vst [vmem:[#allocation77_spill] sm:$0xff] %v6161_v39 }
 0x130   :  { %v6154_v61 = vadd.f32 %v1125_v1, %v997_v37  ;;  %v1164_v41 = vpop.f32.mrf.mxu2  ;;  %v504_v37 = vcvt.s32.f32 %v360_v56  ;;  %v366_v56 = vunpack.c.3.s8 %v258_v59 }
 0x131   :  { %v908_v18 = vpop.f32.mrf.mxu0  ;;  %v1165_v5 = vadd.f32 %v1164_v41, %v1036_v52 }
 0x132   :  { %v909_v32 = vadd.f32 %v908_v18, %v691_v9  ;;  %v6163_v54 = vpack.c.bf16 %v504_v37, %v501_v23  ;;  %v693_v18 = vunpack.c.h.bf16 %v644_v17  ;;  %v510_v23 = vcvt.s32.f32 %v366_v56 }
 0x133   :  { %v1037_v31 = vpop.f32.mrf.mxu1 }
 0x134   :  { %v1038_v1 = vadd.f32 %v1037_v31, %v909_v32  ;;  %8190 = vst [vmem:[#allocation78_spill] sm:$0xff] %v6163_v54  ;;  %v364_v31 = vunpack.c.2.s8 %v259_v60 }
 0x136   :  { %v508_v45 = vcvt.s32.f32 %v364_v31  ;;  %v695_v31 = vunpack.c.h.bf16 %v646_v53 }
 0x137   :  { %v1127_v34 = vpop.f32.mrf.mxu3 }
 0x138   :  { %v6157_v36 = vadd.f32 %v1127_v34, %v999_v26  ;;  %v1166_v30 = vpop.f32.mrf.mxu2  ;;  %v692_v34 = vunpack.c.l.bf16 %v644_v17  ;;  %v507_v26 = vcvt.s32.f32 %v363_v12 }
 0x139   :  { %v1167_v43 = vadd.f32 %v1166_v30, %v1038_v1  ;;  %v911_v57 = vpop.f32.mrf.mxu0 }
 0x13a   :  { %v912_v10 = vadd.f32 %v911_v57, %v692_v34 }
 0x13b   :  { %v1040_v9 = vpop.f32.mrf.mxu1  ;;  %v1264_v20 = vpack.c.bf16 %v1167_v43, %v1165_v5  ;;  %v367_v5 = vunpack.c.3.s8 %v259_v60 }
 0x13c   :  { %950 = vmatmul.bf16.gmra.mxu0 %v6159_v21  ;;  %v1041_v37 = vadd.f32 %v1040_v9, %v912_v10 }
 0x13d   :  { %1208 = vmatmul.bf16.gmra.mxu2 %v6161_v39  ;;  %1384 = vmatmul.bf16.gmra.mxu3 %v1264_v20  ;;  %v511_v28 = vcvt.s32.f32 %v367_v5  ;;  %v6174_v20 = vpack.c.bf16 %v509_v63, %v506_v27  ;;  %v261_v5 = vld [vmem:[#allocation4 + $0xc8] sm:$0xff] }
 0x13e   :  { %1079 = vmatmul.bf16.gmra.mxu1 %v6163_v54 }
 0x13f   :  { %v1244_v33 = vpop.f32.mrf.mxu3  ;;  %8191 = vst [vmem:[#allocation79_spill] sm:$0xff] %v6174_v20  ;;  %v6176_v57 = vpack.c.bf16 %v511_v28, %v508_v45  ;;  %v369_v28 = vunpack.c.0.s8 %v261_v5 }
 0x140   :  { %v1169_v41 = vpop.f32.mrf.mxu2  ;;  %v6169_v30 = vadd.f32 %v1244_v33, %v6112_v50 }
 0x141   :  { %v913_v38 = vpop.f32.mrf.mxu0  ;;  %v1170_v60 = vadd.f32 %v1169_v41, %v1041_v37  ;;  %8192 = vst [vmem:[#allocation80_spill] sm:$0xff] %v6176_v57  ;;  %v262_v41 = vld [vmem:[#allocation4 + $0xd0] sm:$0xff] }
 0x142   :  { %v914_v32 = vadd.f32 %v913_v38, %v693_v18  ;;  %v6180_v18 = vpack.c.bf16 %v510_v23, %v507_v26  ;;  %v370_v27 = vunpack.c.0.s8 %v262_v41  ;;  %v373_v63 = vunpack.c.1.s8 %v262_v41 }
 0x143   :  { %v1042_v43 = vpop.f32.mrf.mxu1  ;;  %v372_v26 = vunpack.c.1.s8 %v261_v5 }
 0x144   :  { %v1043_v52 = vadd.f32 %v1042_v43, %v914_v32  ;;  %8193 = vst [vmem:[#allocation81_spill] sm:$0xff] %v6180_v18 }
 0x147   :  { %v1246_v50 = vpop.f32.mrf.mxu3 }
 0x148   :  { %v1171_v1 = vpop.f32.mrf.mxu2  ;;  %v6172_v62 = vadd.f32 %v1246_v50, %v6121_v15  ;;  %v260_v15 = vld [vmem:[#allocation4 + $0xc0] sm:$0xff] }
 0x149   :  { %v1172_v17 = vadd.f32 %v1171_v1, %v1043_v52  ;;  %v916_v59 = vpop.f32.mrf.mxu0  ;;  %v368_v56 = vunpack.c.0.s8 %v260_v15  ;;  %v371_v10 = vunpack.c.1.s8 %v260_v15  ;;  %v514_v1 = vcvt.s32.f32 %v370_v27 }
 0x14a   :  { %v917_v23 = vadd.f32 %v916_v59, %v694_v14 }
 0x14b   :  { %v1045_v33 = vpop.f32.mrf.mxu1  ;;  %v1265_v9 = vpack.c.bf16 %v1172_v17, %v1170_v60  ;;  %v512_v52 = vcvt.s32.f32 %v368_v56  ;;  %v515_v50 = vcvt.s32.f32 %v371_v10  ;;  %v517_v60 = vcvt.s32.f32 %v373_v63  ;;  %v648_v10 = vld [vmem:[#allocation2 + $0x40] sm:$0xff]  }
 0x14c   :  { %955 = vmatmul.bf16.gmra.mxu0 %v6174_v20  ;;  %v513_v17 = vcvt.s32.f32 %v369_v28  ;;  %v1046_v53 = vadd.f32 %v1045_v33, %v917_v23  ;;  %v374_v63 = vunpack.c.2.s8 %v260_v15  ;;  %v375_v23 = vunpack.c.2.s8 %v261_v5 }
 0x14d   :  { %1213 = vmatmul.bf16.gmra.mxu2 %v6176_v57  ;;  %1389 = vmatmul.bf16.gmra.mxu3 %v1265_v9  ;;  %v516_v9 = vcvt.s32.f32 %v372_v26  ;;  %v6191_v39 = vpack.c.bf16 %v515_v50, %v512_v52  ;;  %v6193_v59 = vpack.c.bf16 %v517_v60, %v514_v1  ;;  %v376_v26 = vunpack.c.2.s8 %v262_v41 }
 0x14e   :  { %1084 = vmatmul.bf16.gmra.mxu1 %v6180_v18  ;;  %v518_v1 = vcvt.s32.f32 %v374_v63 }
 0x14f   :  { %v1249_v38 = vpop.f32.mrf.mxu3  ;;  %8194 = vst [vmem:[#allocation82_spill] sm:$0xff] %v6191_v39  ;;  %v6197_v56 = vpack.c.bf16 %v516_v9, %v513_v17  ;;  %v520_v17 = vcvt.s32.f32 %v376_v26 }
 0x150   :  { %v1174_v43 = vpop.f32.mrf.mxu2  ;;  %v6186_v12 = vadd.f32 %v1249_v38, %v6133_v24  ;;  %8195 = vst [vmem:[#allocation83_spill] sm:$0xff] %v6193_v59 }
 0x151   :  { %v918_v32 = vpop.f32.mrf.mxu0  ;;  %v1175_v18 = vadd.f32 %v1174_v43, %v1046_v53  ;;  %8196 = vst [vmem:[#allocation84_spill] sm:$0xff] %v6197_v56  ;;  %v697_v43 = vunpack.c.h.bf16 %v648_v10  ;;  %v519_v53 = vcvt.s32.f32 %v375_v23 }
 0x152   :  { %v919_v37 = vadd.f32 %v918_v32, %v695_v31 }
 0x153   :  { %v1047_v45 = vpop.f32.mrf.mxu1 }
 0x154   :  { %v1048_v34 = vadd.f32 %v1047_v45, %v919_v37  ;;  %v377_v45 = vunpack.c.3.s8 %v260_v15  ;;  %v378_v37 = vunpack.c.3.s8 %v261_v5 }
 0x156   :  { %v521_v60 = vcvt.s32.f32 %v377_v45  ;;  %v650_v45 = vld [vmem:[#allocation2 + $0x48] sm:$0xff]  }
 0x157   :  { %v1251_v24 = vpop.f32.mrf.mxu3  ;;  %v698_v26 = vunpack.c.l.bf16 %v650_v45 }
 0x158   :  { %v1176_v38 = vpop.f32.mrf.mxu2  ;;  %v6189_v57 = vadd.f32 %v1251_v24, %v6142_v11  ;;  %v696_v11 = vunpack.c.l.bf16 %v648_v10  ;;  %v522_v24 = vcvt.s32.f32 %v378_v37 }
 0x159   :  { %v1177_v54 = vadd.f32 %v1176_v38, %v1048_v34  ;;  %v921_v46 = vpop.f32.mrf.mxu0 }
 0x15a   :  { %v922_v52 = vadd.f32 %v921_v46, %v696_v11 }
 0x15b   :  { %v1050_v31 = vpop.f32.mrf.mxu1  ;;  %v1266_v33 = vpack.c.bf16 %v1177_v54, %v1175_v18  ;;  %v379_v54 = vunpack.c.3.s8 %v262_v41 }
 0x15c   :  { %960 = vmatmul.bf16.gmra.mxu0 %v6191_v39  ;;  %v1051_v38 = vadd.f32 %v1050_v31, %v922_v52 }
 0x15d   :  { %1218 = vmatmul.bf16.gmra.mxu2 %v6193_v59  ;;  %1394 = vmatmul.bf16.gmra.mxu3 %v1266_v33  ;;  %v523_v9 = vcvt.s32.f32 %v379_v54  ;;  %v699_v54 = vunpack.c.h.bf16 %v650_v45 }
 0x15e   :  { %1089 = vmatmul.bf16.gmra.mxu1 %v6197_v56 }
 0x15f   :  { %v1254_v34 = vpop.f32.mrf.mxu3  ;;  %v6210_v46 = vpack.c.bf16 %v523_v9, %v520_v17 }
 0x160   :  { %v1179_v32 = vpop.f32.mrf.mxu2  ;;  %v6203_v27 = vadd.f32 %v1254_v34, %v6154_v61  ;;  %v6208_v34 = vpack.c.bf16 %v521_v60, %v518_v1 }
 0x161   :  { %v923_v28 = vpop.f32.mrf.mxu0  ;;  %v1180_v41 = vadd.f32 %v1179_v32, %v1051_v38  ;;  %8198 = vst [vmem:[#allocation86_spill] sm:$0xff] %v6210_v46  ;;  %v6221_v32 = vld [vmem:[#allocation4 + $0xe8] sm:$0xff] }
 0x162   :  { %v924_v50 = vadd.f32 %v923_v28, %v697_v43  ;;  %8197 = vst [vmem:[#allocation85_spill] sm:$0xff] %v6208_v34  ;;  %v6214_v43 = vpack.c.bf16 %v522_v24, %v519_v53  ;;  %v5309_v28 = vld [vmem:[#allocation7 + $0x38] sm:$0xff]  ;;  %v382_v60 = vunpack.c.0.s8 %v6221_v32  ;;  %v385_v17 = vunpack.c.1.s8 %v6221_v32 }
 0x163   :  { %v1052_v18 = vpop.f32.mrf.mxu1  ;;  %1620 = vmatpush.bf16.msrb.mxu0 %v5309_v28 }
 0x164   :  { %v1053_v33 = vadd.f32 %v1052_v18, %v924_v50  ;;  %8199 = vst [vmem:[#allocation87_spill] sm:$0xff] %v6214_v43  ;;  %v6223_v18 = vld [vmem:[#allocation4 + $0xe0] sm:$0xff]  ;;  %v5308_v50 = vld [vmem:[#allocation7 + $0x30] sm:$0xff]  ;;  %v529_v45 = vcvt.s32.f32 %v385_v17 }
 0x165   :  { %v381_v9 = vunpack.c.0.s8 %v6223_v18  ;;  %v384_v53 = vunpack.c.1.s8 %v6223_v18  ;;  %v5304_v17 = vld [vmem:[#allocation7 + $0x10] sm:$0xff] }
 0x167   :  { %v1256_v61 = vpop.f32.mrf.mxu3  ;;  %1621 = vmatpush.bf16.msrb.mxu0 %v5308_v50  ;;  %v525_v28 = vcvt.s32.f32 %v381_v9  ;;  %v528_v11 = vcvt.s32.f32 %v384_v53  ;;  %v388_v53 = vunpack.c.2.s8 %v6221_v32 }
 0x168   :  { %v1181_v10 = vpop.f32.mrf.mxu2  ;;  %v6206_v15 = vadd.f32 %v1256_v61, %v6157_v36  ;;  %v6218_v36 = vld [vmem:[#allocation4 + $0xd8] sm:$0xff] }
 0x169   :  { %v1182_v14 = vadd.f32 %v1181_v10, %v1053_v33  ;;  %v926_v5 = vpop.f32.mrf.mxu0  ;;  %v380_v37 = vunpack.c.0.s8 %v6218_v36  ;;  %v383_v52 = vunpack.c.1.s8 %v6218_v36 }
 0x16a   :  { %v927_v24 = vadd.f32 %v926_v5, %v698_v26 }
 0x16b   :  { %v1267_v63 = vpack.c.bf16 %v1182_v14, %v1180_v41  ;;  %v1055_v31 = vpop.f32.mrf.mxu1  ;;  %v524_v61 = vcvt.s32.f32 %v380_v37  ;;  %v527_v10 = vcvt.s32.f32 %v383_v52  ;;  %v5307_v41 = vld [vmem:[#allocation7 + $0x28] sm:$0xff]  ;;  %v6239_v37 = vpack.c.bf16 %v528_v11, %v525_v28 }
 0x16c   :  { %965 = vmatmul.bf16.gmra.mxu0 %v6208_v34  ;;  %v386_v11 = vunpack.c.2.s8 %v6218_v36  ;;  %v5303_v28 = vld [vmem:[#allocation7 + $0x8] sm:$0xff] }
 0x16d   :  { %1223 = vmatmul.bf16.gmra.mxu2 %v6210_v46  ;;  %1399 = vmatmul.bf16.gmra.mxu3 %v1267_v63  ;;  %v526_v63 = vcvt.s32.f32 %v382_v60  ;;  %v1056_v46 = vadd.f32 %v1055_v31, %v927_v24  ;;  %v6235_v34 = vpack.c.bf16 %v527_v10, %v524_v61  ;;  %8202 = vst [vmem:[#allocation90_spill] sm:$0xff] %v6239_v37  ;;  %v652_v60 = vld [vmem:[#allocation2 + $0x50] sm:$0xff]   ;;  %v5305_v31 = vld [vmem:[#allocation7 + $0x18] sm:$0xff]  ;;  %v391_v24 = vunpack.c.3.s8 %v6221_v32 }
 0x16e   :  { %1094 = vmatmul.bf16.gmra.mxu1 %v6214_v43  ;;  %1622 = vmatpush.bf16.msrb.mxu0 %v5307_v41 }
 0x16f   :  { %8200 = vst [vmem:[#allocation88_spill] sm:$0xff] %v6235_v34 }
 0x170   :  { %v1184_v14 = vpop.f32.mrf.mxu2  ;;  %v6225_v23 = vpop.f32.mrf.mxu3 }
 0x171   :  { %v928_v1 = vpop.f32.mrf.mxu0  ;;  %v1185_v50 = vadd.f32 %v1184_v14, %v1056_v46  ;;  %v700_v46 = vunpack.c.l.bf16 %v652_v60 }
 0x172   :  { %v929_v38 = vadd.f32 %v928_v1, %v699_v54  ;;  %v6237_v54 = vpack.c.bf16 %v529_v45, %v526_v63  ;;  %1623 = vmatpush.bf16.msrb.mxu0 %v5306_v29  ;;  %v389_v29 = vunpack.c.3.s8 %v6218_v36  ;;  %v530_v63 = vcvt.s32.f32 %v386_v11 }
 0x173   :  { %v1057_v33 = vpop.f32.mrf.mxu1 }
 0x174   :  { %v1058_v59 = vadd.f32 %v1057_v33, %v929_v38  ;;  %8201 = vst [vmem:[#allocation89_spill] sm:$0xff] %v6237_v54  ;;  %v387_v38 = vunpack.c.2.s8 %v6223_v18  ;;  %v390_v33 = vunpack.c.3.s8 %v6223_v18  ;;  %v533_v45 = vcvt.s32.f32 %v389_v29  ;;  %v5302_v18 = vld [vmem:[#allocation7] sm:$0xff] }
 0x176   :  { %1624 = vmatpush.bf16.msrb.mxu0 %v5305_v31  ;;  %v531_v36 = vcvt.s32.f32 %v387_v38  ;;  %v5430_v38 = vld [vmem:[#allocation4 + $0xf0] sm:$0xff] }
 0x178   :  { %v1186_v43 = vpop.f32.mrf.mxu2  ;;  %v6233_v56 = vpop.f32.mrf.mxu3 }
 0x179   :  { %v1187_v5 = vadd.f32 %v1186_v43, %v1058_v59  ;;  %v931_v26 = vpop.f32.mrf.mxu0  ;;  %v701_v59 = vunpack.c.h.bf16 %v652_v60 }
 0x17a   :  { %1625 = vmatpush.bf16.msrb.mxu0 %v5304_v17  ;;  %v932_v61 = vadd.f32 %v931_v26, %v700_v46 }
 0x17b   :  { %v1268_v52 = vpack.c.bf16 %v1187_v5, %v1185_v50  ;;  %v1060_v1 = vpop.f32.mrf.mxu1  ;;  %v532_v50 = vcvt.s32.f32 %v388_v53  ;;  %v535_v5 = vcvt.s32.f32 %v391_v24  ;;  %v654_v53 = vld [vmem:[#allocation2 + $0x58] sm:$0xff]  }
 0x17c   :  { %970 = vmatmul.bf16.gmra.mxu0 %v6235_v34  ;;  %v1061_v60 = vadd.f32 %v1060_v1, %v932_v61  ;;  %v702_v1 = vunpack.c.l.bf16 %v654_v53  ;;  %v703_v24 = vunpack.c.h.bf16 %v654_v53  ;;  %v395_v61 = vunpack.c.1.s8 %v5430_v38 }
 0x17d   :  { %1228 = vmatmul.bf16.gmra.mxu2 %v6237_v54  ;;  %1404 = vmatmul.bf16.gmra.mxu3 %v1268_v52  ;;  %v534_v52 = vcvt.s32.f32 %v390_v33  ;;  %v392_v33 = vunpack.c.0.s8 %v5430_v38 }
 0x17e   :  { %1099 = vmatmul.bf16.gmra.mxu1 %v6239_v37  ;;  %1626 = vmatpush.bf16.msrb.mxu0 %v5303_v28  ;;  %v6254_v37 = vpack.c.bf16 %v533_v45, %v530_v63  ;;  %v5432_v28 = vld [vmem:[#allocation4 + $0xf8] sm:$0xff] }
 0x17f   :  { %v6258_v11 = vpack.c.bf16 %v534_v52, %v531_v36 }
 0x180   :  { %v1189_v43 = vpop.f32.mrf.mxu2  ;;  %v6244_v14 = vpop.f32.mrf.mxu3  ;;  %8203 = vst [vmem:[#allocation91_spill] sm:$0xff] %v6254_v37 }
 0x181   :  { %v933_v9 = vpop.f32.mrf.mxu0  ;;  %v1190_v17 = vadd.f32 %v1189_v43, %v1061_v60  ;;  %8205 = vst [vmem:[#allocation93_spill] sm:$0xff] %v6258_v11 }
 0x182   :  { %v934_v10 = vadd.f32 %v933_v9, %v701_v59  ;;  %v6256_v59 = vpack.c.bf16 %v535_v5, %v532_v50  ;;  %1627 = vmatpush.bf16.msrb.mxu0 %v5302_v18  ;;  %v393_v50 = vunpack.c.0.s8 %v5432_v28  ;;  %v396_v5 = vunpack.c.1.s8 %v5432_v28 }
 0x183   :  { %v1062_v41 = vpop.f32.mrf.mxu1  ;;  %v539_v18 = vcvt.s32.f32 %v395_v61 }
 0x184   :  { %v1063_v31 = vadd.f32 %v1062_v41, %v934_v10  ;;  %8204 = vst [vmem:[#allocation92_spill] sm:$0xff] %v6256_v59  ;;  %v5431_v41 = vld [vmem:[#allocation4 + $0x100] sm:$0xff]  ;;  %v540_v53 = vcvt.s32.f32 %v396_v5 }
 0x185   :  { %v394_v63 = vunpack.c.0.s8 %v5431_v41  ;;  %v397_v45 = vunpack.c.1.s8 %v5431_v41 }
 0x188   :  { %v1191_v54 = vpop.f32.mrf.mxu2  ;;  %v6252_v32 = vpop.f32.mrf.mxu3 }
 0x189   :  { %v1192_v26 = vadd.f32 %v1191_v54, %v1063_v31  ;;  %v936_v46 = vpop.f32.mrf.mxu0  ;;  %v536_v31 = vcvt.s32.f32 %v392_v33  ;;  %v656_v33 = vld [vmem:[#allocation2 + $0x60] sm:$0xff]  }
 0x18a   :  { %v937_v36 = vadd.f32 %v936_v46, %v702_v1  ;;  %v705_v61 = vunpack.c.h.bf16 %v656_v33 }
 0x18b   :  { %v1269_v29 = vpack.c.bf16 %v1192_v26, %v1190_v17  ;;  %v1065_v9 = vpop.f32.mrf.mxu1  ;;  %v538_v17 = vcvt.s32.f32 %v394_v63  ;;  %v541_v26 = vcvt.s32.f32 %v397_v45  ;;  %v6267_v34 = vpack.c.bf16 %v539_v18, %v536_v31 }
 0x18c   :  { %975 = vmatmul.bf16.gmra.mxu0 %v6254_v37 }
 0x18d   :  { %1233 = vmatmul.bf16.gmra.mxu2 %v6256_v59  ;;  %1409 = vmatmul.bf16.gmra.mxu3 %v1269_v29  ;;  %v537_v29 = vcvt.s32.f32 %v393_v50  ;;  %v1066_v59 = vadd.f32 %v1065_v9, %v937_v36  ;;  %8206 = vst [vmem:[#allocation94_spill] sm:$0xff] %v6267_v34  ;;  %v6269_v28 = vpack.c.bf16 %v541_v26, %v538_v17  ;;  %v704_v9 = vunpack.c.l.bf16 %v656_v33 }
 0x18e   :  { %1104 = vmatmul.bf16.gmra.mxu1 %v6258_v11 }
 0x18f   :  { %8207 = vst [vmem:[#allocation95_spill] sm:$0xff] %v6269_v28  ;;  %v6271_v46 = vpack.c.bf16 %v540_v53, %v537_v29 }
 0x190   :  { %v1194_v43 = vpop.f32.mrf.mxu2  ;;  %v6263_v54 = vpop.f32.mrf.mxu3 }
 0x191   :  { %v938_v10 = vpop.f32.mrf.mxu0  ;;  %v1195_v41 = vadd.f32 %v1194_v43, %v1066_v59  ;;  %8208 = vst [vmem:[#allocation96_spill] sm:$0xff] %v6271_v46 }
 0x192   :  { %v939_v52 = vadd.f32 %v938_v10, %v703_v24 }
 0x193   :  { %v1067_v60 = vpop.f32.mrf.mxu1 }
 0x194   :  { %v1068_v11 = vadd.f32 %v1067_v60, %v939_v52 }
 0x198   :  { %v1196_v37 = vpop.f32.mrf.mxu2  ;;  %v6265_v38 = vpop.f32.mrf.mxu3 }
 0x199   :  { %v1197_v39 = vadd.f32 %v1196_v37, %v1068_v11  ;;  %v941_v55 = vpop.f32.mrf.mxu0  ;;  %v6279_v37 = vld [vmem:[%s8209_s23] ss:$0 sm:$0xff] }
 0x19a   :  { %v1363_v43 = vadd.f32 %v6279_v37, %v6233_v56  ;;  %v942_v10 = vadd.f32 %v941_v55, %v704_v9  ;;  %v1361_v50 = vadd.f32 %v6279_v37, %v6225_v23  ;;  %v658_v56 = vld [vmem:[#allocation2 + $0x68] sm:$0xff]  }
 0x19b   :  { %v1270_v1 = vpack.c.bf16 %v1197_v39, %v1195_v41  ;;  %v1070_v24 = vpop.f32.mrf.mxu1  ;;  %v706_v55 = vunpack.c.l.bf16 %v658_v56  ;;  %v707_v33 = vunpack.c.h.bf16 %v658_v56 }
 0x19c   :  { %980 = vmatmul.bf16.gmra.mxu0 %v6267_v34  ;;  %v1481_v5 = vmax.f32 %v1363_v43, 0.0  ;;  %v1071_v36 = vadd.f32 %v1070_v24, %v942_v10  ;;  %v1480_v60 = vmax.f32 %v1361_v50, 0.0  ;;  %v1366_v10 = vadd.f32 %v6279_v37, %v6244_v14 }
 0x19d   :  { %1238 = vmatmul.bf16.gmra.mxu2 %v6269_v28  ;;  %1414 = vmatmul.bf16.gmra.mxu3 %v1270_v1 }
 0x19e   :  { %1109 = vmatmul.bf16.gmra.mxu1 %v6271_v46  ;;  %v1528_v53 = vpack.c.bf16 %v1481_v5, %v1480_v60  ;;  %v1482_v5 = vmax.f32 %v1366_v10, 0.0 }
 0x1a0   :  { %v1199_v59 = vpop.f32.mrf.mxu2  ;;  %v6281_v11 = vpop.f32.mrf.mxu3 }
 0x1a1   :  { %v943_v39 = vpop.f32.mrf.mxu0  ;;  %v1200_v17 = vadd.f32 %v1199_v59, %v1071_v36 }
 0x1a2   :  { %v944_v63 = vadd.f32 %v943_v39, %v705_v61  ;;  %v1368_v61 = vadd.f32 %v6279_v37, %v6252_v32  ;;  %v660_v32 = vld [vmem:[#allocation2 + $0x70] sm:$0xff]  }
 0x1a3   :  { %v1072_v45 = vpop.f32.mrf.mxu1  ;;  %v709_v56 = vunpack.c.h.bf16 %v660_v32 }
 0x1a4   :  { %v1073_v52 = vadd.f32 %v1072_v45, %v944_v63  ;;  %v1483_v63 = vmax.f32 %v1368_v61, 0.0 }
 0x1a8   :  { %v1201_v31 = vpop.f32.mrf.mxu2  ;;  %v6287_v18 = vpop.f32.mrf.mxu3 }
 0x1a9   :  { %v1202_v26 = vadd.f32 %v1201_v31, %v1073_v52  ;;  %v946_v29 = vpop.f32.mrf.mxu0 }
 0x1aa   :  { %v947_v39 = vadd.f32 %v946_v29, %v706_v55  ;;  %v708_v29 = vunpack.c.l.bf16 %v660_v32 }
 0x1ab   :  { %v1271_v41 = vpack.c.bf16 %v1202_v26, %v1200_v17  ;;  %v1075_v1 = vpop.f32.mrf.mxu1  ;;  %v1529_v26 = vpack.c.bf16 %v1483_v63, %v1482_v5 }
 0x1ac   :  { %1628 = vmatmul.bf16.vlgmr.msrb.gmra.mxu0 %v1528_v53  ;;  %v1076_v45 = vadd.f32 %v1075_v1, %v947_v39  ;;  %v1371_v39 = vadd.f32 %v6279_v37, %v6263_v54 }
 0x1ad   :  { %1419 = vmatmul.bf16.gmra.mxu3 %v1271_v41 }
 0x1ae   :  { %v1484_v63 = vmax.f32 %v1371_v39, 0.0 }
 0x1b0   :  { %v1204_v9 = vpop.f32.mrf.mxu2  ;;  %v6289_v23 = vpop.f32.mrf.mxu3 }
 0x1b1   :  { %v948_v24 = vpop.f32.mrf.mxu0  ;;  %v1205_v60 = vadd.f32 %v1204_v9, %v1076_v45 }
 0x1b2   :  { %v949_v43 = vadd.f32 %v948_v24, %v707_v33  ;;  %v1373_v33 = vadd.f32 %v6279_v37, %v6265_v38  ;;  %v662_v38 = vld [vmem:[#allocation2 + $0x78] sm:$0xff]  }
 0x1b3   :  { %v1077_v59 = vpop.f32.mrf.mxu1  ;;  %v711_v32 = vunpack.c.h.bf16 %v662_v38 }
 0x1b4   :  { %v1078_v50 = vadd.f32 %v1077_v59, %v949_v43  ;;  %v1485_v43 = vmax.f32 %v1373_v33, 0.0 }
 0x1b8   :  { %v1206_v36 = vpop.f32.mrf.mxu2  ;;  %v6295_v52 = vpop.f32.mrf.mxu3 }
 0x1b9   :  { %v1207_v31 = vadd.f32 %v1206_v36, %v1078_v50  ;;  %v951_v17 = vpop.f32.mrf.mxu0 }
 0x1ba   :  { %v952_v24 = vadd.f32 %v951_v17, %v708_v29  ;;  %v710_v17 = vunpack.c.l.bf16 %v662_v38 }
 0x1bb   :  { %v1272_v53 = vpack.c.bf16 %v1207_v31, %v1205_v60  ;;  %v1080_v41 = vpop.f32.mrf.mxu1  ;;  %v1530_v31 = vpack.c.bf16 %v1485_v43, %v1484_v63 }
 0x1bc   :  { %1633 = vmatmul.bf16.gmra.mxu0 %v1529_v26  ;;  %v1081_v59 = vadd.f32 %v1080_v41, %v952_v24  ;;  %v1376_v24 = vadd.f32 %v6279_v37, %v6281_v11 }
 0x1bd   :  { %1424 = vmatmul.bf16.gmra.mxu3 %v1272_v53 }
 0x1be   :  { %v1486_v43 = vmax.f32 %v1376_v24, 0.0 }
 0x1c0   :  { %v1209_v55 = vpop.f32.mrf.mxu2  ;;  %v6297_v14 = vpop.f32.mrf.mxu3 }
 0x1c1   :  { %v953_v1 = vpop.f32.mrf.mxu0  ;;  %v1210_v5 = vadd.f32 %v1209_v55, %v1081_v59 }
 0x1c2   :  { %v954_v61 = vadd.f32 %v953_v1, %v709_v56  ;;  %v1378_v56 = vadd.f32 %v6279_v37, %v6287_v18  ;;  %v664_v18 = vld [vmem:[#allocation2 + $0x80] sm:$0xff]  }
 0x1c3   :  { %v1082_v9 = vpop.f32.mrf.mxu1  ;;  %v713_v38 = vunpack.c.h.bf16 %v664_v18 }
 0x1c4   :  { %v1083_v10 = vadd.f32 %v1082_v9, %v954_v61  ;;  %v1487_v61 = vmax.f32 %v1378_v56, 0.0 }
 0x1c8   :  { %v1211_v45 = vpop.f32.mrf.mxu2  ;;  %v6303_v50 = vpop.f32.mrf.mxu3 }
 0x1c9   :  { %v1212_v36 = vadd.f32 %v1211_v45, %v1083_v10  ;;  %v956_v60 = vpop.f32.mrf.mxu0 }
 0x1ca   :  { %v957_v1 = vadd.f32 %v956_v60, %v710_v17  ;;  %v712_v60 = vunpack.c.l.bf16 %v664_v18 }
 0x1cb   :  { %v1273_v26 = vpack.c.bf16 %v1212_v36, %v1210_v5  ;;  %v1085_v53 = vpop.f32.mrf.mxu1  ;;  %v1531_v36 = vpack.c.bf16 %v1487_v61, %v1486_v43 }
 0x1cc   :  { %1638 = vmatmul.bf16.gmra.mxu0 %v1530_v31  ;;  %v1086_v9 = vadd.f32 %v1085_v53, %v957_v1  ;;  %v1381_v1 = vadd.f32 %v6279_v37, %v6289_v23 }
 0x1cd   :  { %1429 = vmatmul.bf16.gmra.mxu3 %v1273_v26 }
 0x1ce   :  { %v1488_v61 = vmax.f32 %v1381_v1, 0.0 }
 0x1d0   :  { %v1214_v29 = vpop.f32.mrf.mxu2  ;;  %v6305_v54 = vpop.f32.mrf.mxu3 }
 0x1d1   :  { %v958_v41 = vpop.f32.mrf.mxu0  ;;  %v1215_v63 = vadd.f32 %v1214_v29, %v1086_v9 }
 0x1d2   :  { %v959_v33 = vadd.f32 %v958_v41, %v711_v32  ;;  %v1383_v32 = vadd.f32 %v6279_v37, %v6295_v52  ;;  %v666_v52 = vld [vmem:[#allocation2 + $0x88] sm:$0xff]  }
 0x1d3   :  { %v1087_v55 = vpop.f32.mrf.mxu1  ;;  %v715_v18 = vunpack.c.h.bf16 %v666_v52 }
 0x1d4   :  { %v1088_v39 = vadd.f32 %v1087_v55, %v959_v33  ;;  %v1489_v33 = vmax.f32 %v1383_v32, 0.0 }
 0x1d8   :  { %v1216_v59 = vpop.f32.mrf.mxu2  ;;  %v6311_v10 = vpop.f32.mrf.mxu3 }
 0x1d9   :  { %v1217_v45 = vadd.f32 %v1216_v59, %v1088_v39  ;;  %v961_v5 = vpop.f32.mrf.mxu0 }
 0x1da   :  { %v962_v41 = vadd.f32 %v961_v5, %v712_v60  ;;  %v714_v5 = vunpack.c.l.bf16 %v666_v52 }
 0x1db   :  { %v1274_v31 = vpack.c.bf16 %v1217_v45, %v1215_v63  ;;  %v1090_v26 = vpop.f32.mrf.mxu1  ;;  %v1532_v45 = vpack.c.bf16 %v1489_v33, %v1488_v61 }
 0x1dc   :  { %1643 = vmatmul.bf16.gmra.mxu0 %v1531_v36  ;;  %v1091_v55 = vadd.f32 %v1090_v26, %v962_v41  ;;  %v1386_v41 = vadd.f32 %v6279_v37, %v6297_v14 }
 0x1dd   :  { %1434 = vmatmul.bf16.gmra.mxu3 %v1274_v31 }
 0x1de   :  { %v1490_v33 = vmax.f32 %v1386_v41, 0.0 }
 0x1e0   :  { %v1219_v17 = vpop.f32.mrf.mxu2  ;;  %v6313_v11 = vpop.f32.mrf.mxu3 }
 0x1e1   :  { %v963_v53 = vpop.f32.mrf.mxu0  ;;  %v1220_v43 = vadd.f32 %v1219_v17, %v1091_v55 }
 0x1e2   :  { %v964_v56 = vadd.f32 %v963_v53, %v713_v38  ;;  %v1388_v38 = vadd.f32 %v6279_v37, %v6303_v50  ;;  %v668_v50 = vld [vmem:[#allocation2 + $0x90] sm:$0xff]  }
 0x1e3   :  { %v1092_v29 = vpop.f32.mrf.mxu1  ;;  %v717_v52 = vunpack.c.h.bf16 %v668_v50 }
 0x1e4   :  { %v1093_v24 = vadd.f32 %v1092_v29, %v964_v56  ;;  %v1491_v56 = vmax.f32 %v1388_v38, 0.0 }
 0x1e8   :  { %v1221_v9 = vpop.f32.mrf.mxu2  ;;  %v6319_v39 = vpop.f32.mrf.mxu3 }
 0x1e9   :  { %v1222_v59 = vadd.f32 %v1221_v9, %v1093_v24  ;;  %v966_v63 = vpop.f32.mrf.mxu0 }
 0x1ea   :  { %v967_v53 = vadd.f32 %v966_v63, %v714_v5  ;;  %v716_v63 = vunpack.c.l.bf16 %v668_v50 }
 0x1eb   :  { %v1275_v36 = vpack.c.bf16 %v1222_v59, %v1220_v43  ;;  %v1095_v31 = vpop.f32.mrf.mxu1  ;;  %v1533_v59 = vpack.c.bf16 %v1491_v56, %v1490_v33 }
 0x1ec   :  { %1648 = vmatmul.bf16.gmra.mxu0 %v1532_v45  ;;  %v1096_v29 = vadd.f32 %v1095_v31, %v967_v53  ;;  %v1391_v53 = vadd.f32 %v6279_v37, %v6305_v54 }
 0x1ed   :  { %1439 = vmatmul.bf16.gmra.mxu3 %v1275_v36 }
 0x1ee   :  { %v1492_v56 = vmax.f32 %v1391_v53, 0.0 }
 0x1f0   :  { %v1224_v60 = vpop.f32.mrf.mxu2  ;;  %v6321_v23 = vpop.f32.mrf.mxu3 }
 0x1f1   :  { %v968_v26 = vpop.f32.mrf.mxu0  ;;  %v1225_v61 = vadd.f32 %v1224_v60, %v1096_v29 }
 0x1f2   :  { %v969_v32 = vadd.f32 %v968_v26, %v715_v18  ;;  %v1393_v18 = vadd.f32 %v6279_v37, %v6311_v10  ;;  %v670_v10 = vld [vmem:[#allocation2 + $0x98] sm:$0xff]  }
 0x1f3   :  { %v1097_v17 = vpop.f32.mrf.mxu1  ;;  %v719_v50 = vunpack.c.h.bf16 %v670_v10 }
 0x1f4   :  { %v1098_v1 = vadd.f32 %v1097_v17, %v969_v32  ;;  %v1493_v32 = vmax.f32 %v1393_v18, 0.0 }
 0x1f8   :  { %v1226_v55 = vpop.f32.mrf.mxu2  ;;  %v6327_v24 = vpop.f32.mrf.mxu3 }
 0x1f9   :  { %v1227_v9 = vadd.f32 %v1226_v55, %v1098_v1  ;;  %v971_v43 = vpop.f32.mrf.mxu0 }
 0x1fa   :  { %v972_v26 = vadd.f32 %v971_v43, %v716_v63  ;;  %v718_v43 = vunpack.c.l.bf16 %v670_v10  ;;  %v672_v10 = vld [vmem:[#allocation2 + $0xa0] sm:$0xff]  }
 0x1fb   :  { %v1276_v45 = vpack.c.bf16 %v1227_v9, %v1225_v61  ;;  %v1100_v36 = vpop.f32.mrf.mxu1  ;;  %v1534_v9 = vpack.c.bf16 %v1493_v32, %v1492_v56 }
 0x1fc   :  { %1653 = vmatmul.bf16.gmra.mxu0 %v1533_v59  ;;  %v1101_v17 = vadd.f32 %v1100_v36, %v972_v26  ;;  %v1396_v26 = vadd.f32 %v6279_v37, %v6313_v11 }
 0x1fd   :  { %1444 = vmatmul.bf16.gmra.mxu3 %v1276_v45 }
 0x1fe   :  { %v1494_v32 = vmax.f32 %v1396_v26, 0.0 }
 0x200   :  { %v1229_v5 = vpop.f32.mrf.mxu2  ;;  %v6329_v14 = vpop.f32.mrf.mxu3 }
 0x201   :  { %v973_v31 = vpop.f32.mrf.mxu0  ;;  %v1230_v33 = vadd.f32 %v1229_v5, %v1101_v17 }
 0x202   :  { %v974_v38 = vadd.f32 %v973_v31, %v717_v52  ;;  %v1398_v52 = vadd.f32 %v6279_v37, %v6319_v39  ;;  %v720_v39 = vunpack.c.l.bf16 %v672_v10 }
 0x203   :  { %v1102_v60 = vpop.f32.mrf.mxu1 }
 0x204   :  { %v1103_v41 = vadd.f32 %v1102_v60, %v974_v38  ;;  %v1495_v38 = vmax.f32 %v1398_v52, 0.0 }
 0x208   :  { %v1231_v29 = vpop.f32.mrf.mxu2  ;;  %v6335_v1 = vpop.f32.mrf.mxu3 }
 0x209   :  { %v1232_v55 = vadd.f32 %v1231_v29, %v1103_v41  ;;  %v976_v61 = vpop.f32.mrf.mxu0 }
 0x20a   :  { %v977_v31 = vadd.f32 %v976_v61, %v718_v43  ;;  %v721_v61 = vunpack.c.h.bf16 %v672_v10  ;;  %v1408_v10 = vadd.f32 %v6279_v37, %v6335_v1 }
 0x20b   :  { %v1277_v59 = vpack.c.bf16 %v1232_v55, %v1230_v33  ;;  %v1105_v45 = vpop.f32.mrf.mxu1  ;;  %v1535_v55 = vpack.c.bf16 %v1495_v38, %v1494_v32  ;;  %v6352_v32 = vld [vmem:[%s7880_s5] ss:$0 sm:$0xff] }
 0x20c   :  { %1658 = vmatmul.bf16.gmra.mxu0 %v1534_v9  ;;  %v1106_v60 = vadd.f32 %v1105_v45, %v977_v31  ;;  %v1403_v45 = vadd.f32 %v6279_v37, %v6327_v24 }
 0x20d   :  { %1449 = vmatmul.bf16.gmra.mxu3 %v1277_v59 }
 0x210   :  { %v1234_v63 = vpop.f32.mrf.mxu2  ;;  %v6337_v54 = vpop.f32.mrf.mxu3 }
 0x211   :  { %v978_v36 = vpop.f32.mrf.mxu0  ;;  %v1235_v56 = vadd.f32 %v1234_v63, %v1106_v60  ;;  %v1401_v63 = vadd.f32 %v6279_v37, %v6321_v23 }
 0x212   :  { %v979_v18 = vadd.f32 %v978_v36, %v719_v50 }
 0x213   :  { %v1107_v5 = vpop.f32.mrf.mxu1  ;;  %v1496_v38 = vmax.f32 %v1401_v63, 0.0 }
 0x214   :  { %v1108_v53 = vadd.f32 %v1107_v5, %v979_v18  ;;  %v1497_v18 = vmax.f32 %v1403_v45, 0.0  ;;  %v1499_v45 = vmax.f32 %v1408_v10, 0.0 }
 0x218   :  { %v1236_v17 = vpop.f32.mrf.mxu2  ;;  %v1412_v41 = vpop.f32.mrf.mxu3 }
 0x219   :  { %v1237_v29 = vadd.f32 %v1236_v17, %v1108_v53  ;;  %v981_v33 = vpop.f32.mrf.mxu0 }
 0x21a   :  { %v982_v36 = vadd.f32 %v981_v33, %v720_v39 }
 0x21b   :  { %v1278_v9 = vpack.c.bf16 %v1237_v29, %v1235_v56  ;;  %v1110_v59 = vpop.f32.mrf.mxu1  ;;  %v1536_v29 = vpack.c.bf16 %v1497_v18, %v1496_v38 }
 0x21c   :  { %1663 = vmatmul.bf16.gmra.mxu0 %v1535_v55  ;;  %v1111_v5 = vadd.f32 %v1110_v59, %v982_v36 }
 0x21d   :  { %1454 = vmatmul.bf16.gmra.mxu3 %v1278_v9 }
 0x220   :  { %v1239_v43 = vpop.f32.mrf.mxu2  ;;  %v6343_v50 = vpop.f32.mrf.mxu3 }
 0x221   :  { %v983_v11 = vpop.f32.mrf.mxu0  ;;  %v1240_v17 = vadd.f32 %v1239_v43, %v1111_v5 }
 0x222   :  { %v984_v52 = vadd.f32 %v983_v11, %v721_v61  ;;  %v1406_v61 = vadd.f32 %v6279_v37, %v6329_v14  ;;  %v8210_v14 = vpack.c.bf16 %v6172_v62, %v6169_v30 }
 0x223   :  { %v1112_v31 = vpop.f32.mrf.mxu1 }
 0x224   :  { %v1113_v26 = vadd.f32 %v1112_v31, %v984_v52  ;;  %v1498_v52 = vmax.f32 %v1406_v61, 0.0 }
 0x228   :  { %v1241_v60 = vpop.f32.mrf.mxu2  ;;  %v1417_v53 = vpop.f32.mrf.mxu3 }
 0x229   :  { %v1242_v56 = vadd.f32 %v1241_v60, %v1113_v26  ;;  %v1629_v24 = vpop.f32.mrf.mxu0  ;;  %v1537_v26 = vpack.c.bf16 %v1499_v45, %v1498_v52 }
 0x22a   :  { %v1630_v55 = vadd.f32 %v6352_v32, %v1629_v24  ;;  %v1413_v24 = vadd.f32 %v6279_v37, %v1412_v41 }
 0x22b   :  { %v1279_v33 = vpack.c.bf16 %v1242_v56, %v1240_v17 }
 0x22c   :  { %1668 = vmatmul.bf16.gmra.mxu0 %v1536_v29  ;;  %v1749_v23 = vmax.f32 %v1630_v55, 0.0 }
 0x22d   :  { %1459 = vmatmul.bf16.gmra.mxu3 %v1279_v33  ;;  %v1411_v33 = vadd.f32 %v6279_v37, %v6337_v54  ;;  %v8211_v54 = vpack.c.bf16 %v6189_v57, %v6186_v12 }
 0x22e   :  { %v6362_v43 = vpack.c.bf16 %v1749_v23, %v1749_v23 }
 0x230   :  { %v6355_v9 = vpop.f32.mrf.mxu3  ;;  %v1941_v31 = vunpack.c.l.b16 %v6362_v43 }
 0x231   :  { %v1631_v59 = vpop.f32.mrf.mxu0 }
 0x232   :  { %v1632_v39 = vadd.f32 %v6352_v32, %v1631_v59  ;;  %v1501_v59 = vmax.f32 %v1413_v24, 0.0 }
 0x234   :  { %v1750_v11 = vmax.f32 %v1632_v39, 0.0  ;;  %v1500_v39 = vmax.f32 %v1411_v33, 0.0 }
 0x236   :  { %v6364_v36 = vpack.c.bf16 %v1750_v11, %v1750_v11  ;;  %v1538_v45 = vpack.c.bf16 %v1501_v59, %v1500_v39 }
 0x238   :  { %v1422_v63 = vpop.f32.mrf.mxu3  ;;  %v1942_v18 = vunpack.c.l.b16 %v6364_v36 }
 0x239   :  { %v1634_v5 = vpop.f32.mrf.mxu0 }
 0x23a   :  { %v6368_v1 = vpack.c.b16 %v1942_v18, %v1941_v31  ;;  %v1635_v38 = vadd.f32 %v6352_v32, %v1634_v5 }
 0x23c   :  { %1673 = vmatmul.bf16.gmra.mxu0 %v1537_v26  ;;  %v1751_v60 = vmax.f32 %v1635_v38, 0.0  ;;  %v1418_v26 = vadd.f32 %v6279_v37, %v1417_v53 }
 0x23d   :  { %1464 = vmatmul.bf16.gmra.mxu3 %v8210_v14  ;;  %v1416_v14 = vadd.f32 %v6279_v37, %v6343_v50  ;;  %v8212_v50 = vpack.c.bf16 %v6206_v15, %v6203_v27 }
 0x23e   :  { %v6378_v55 = vpack.c.bf16 %v1751_v60, %v1751_v60  ;;  %v1503_v24 = vmax.f32 %v1418_v26, 0.0 }
 0x23f   :  { %v1502_v33 = vmax.f32 %v1416_v14, 0.0 }
 0x240   :  { %v1425_v17 = vpop.f32.mrf.mxu3  ;;  %v1943_v30 = vunpack.c.l.b16 %v6378_v55 }
 0x241   :  { %v1636_v56 = vpop.f32.mrf.mxu0  ;;  %v1539_v59 = vpack.c.bf16 %v1503_v24, %v1502_v33 }
 0x242   :  { %v1637_v29 = vadd.f32 %v6352_v32, %v1636_v56 }
 0x244   :  { %v1752_v23 = vmax.f32 %v1637_v29, 0.0 }
 0x246   :  { %v6380_v10 = vpack.c.bf16 %v1752_v23, %v1752_v23 }
 0x248   :  { %v1427_v61 = vpop.f32.mrf.mxu3  ;;  %v1944_v62 = vunpack.c.l.b16 %v6380_v10 }
 0x249   :  { %v1639_v11 = vpop.f32.mrf.mxu0 }
 0x24a   :  { %v6384_v41 = vpack.c.b16 %v1944_v62, %v1943_v30  ;;  %v1640_v52 = vadd.f32 %v6352_v32, %v1639_v11 }
 0x24c   :  { %1678 = vmatmul.bf16.gmra.mxu0 %v1538_v45  ;;  %v1753_v31 = vmax.f32 %v1640_v52, 0.0  ;;  %v1423_v45 = vadd.f32 %v6279_v37, %v1422_v63 }
 0x24d   :  { %1469 = vmatmul.bf16.gmra.mxu3 %v8211_v54  ;;  %v1421_v54 = vadd.f32 %v6279_v37, %v6355_v9  ;;  %v1428_v9 = vadd.f32 %v6279_v37, %v1427_v61 }
 0x24e   :  { %v6394_v60 = vpack.c.bf16 %v1753_v31, %v1753_v31 }
 0x250   :  { %v1430_v18 = vpop.f32.mrf.mxu3  ;;  %v1945_v57 = vunpack.c.l.b16 %v6394_v60 }
 0x251   :  { %v1641_v5 = vpop.f32.mrf.mxu0 }
 0x252   :  { %v1642_v38 = vadd.f32 %v6352_v32, %v1641_v5 }
 0x254   :  { %v1754_v56 = vmax.f32 %v1642_v38, 0.0  ;;  %v1505_v38 = vmax.f32 %v1423_v45, 0.0 }
 0x256   :  { %v6396_v29 = vpack.c.bf16 %v1754_v56, %v1754_v56  ;;  %v1504_v56 = vmax.f32 %v1421_v54, 0.0 }
 0x258   :  { %v1946_v12 = vunpack.c.l.b16 %v6396_v29  ;;  %v1432_v53 = vpop.f32.mrf.mxu3  ;;  %v1540_v33 = vpack.c.bf16 %v1505_v38, %v1504_v56 }
 0x259   :  { %v1644_v23 = vpop.f32.mrf.mxu0 }
 0x25a   :  { %v6400_v39 = vpack.c.b16 %v1946_v12, %v1945_v57  ;;  %v1645_v30 = vadd.f32 %v6352_v32, %v1644_v23  ;;  %v1426_v23 = vadd.f32 %v6279_v37, %v1425_v17 }
 0x25c   :  { %1683 = vmatmul.bf16.gmra.mxu0 %v1539_v59  ;;  %v1755_v62 = vmax.f32 %v1645_v30, 0.0  ;;  %v1507_v59 = vmax.f32 %v1428_v9, 0.0  ;;  %v1506_v30 = vmax.f32 %v1426_v23, 0.0 }
 0x25d   :  { %1474 = vmatmul.bf16.gmra.mxu3 %v8212_v50 }
 0x25e   :  { %v6410_v31 = vpack.c.bf16 %v1755_v62, %v1755_v62 }
 0x260   :  { %v1435_v26 = vpop.f32.mrf.mxu3  ;;  %v1947_v27 = vunpack.c.l.b16 %v6410_v31 }
 0x261   :  { %v1646_v11 = vpop.f32.mrf.mxu0  ;;  %v1436_v9 = vadd.f32 %v6279_v37, %v1435_v26 }
 0x262   :  { %v1647_v52 = vadd.f32 %v6352_v32, %v1646_v11  ;;  %v1541_v11 = vpack.c.bf16 %v1507_v59, %v1506_v30 }
 0x263   :  { %v1510_v30 = vmax.f32 %v1436_v9, 0.0 }
 0x264   :  { %v1756_v5 = vmax.f32 %v1647_v52, 0.0  ;;  %v1433_v52 = vadd.f32 %v6279_v37, %v1432_v53 }
 0x266   :  { %v6412_v14 = vpack.c.bf16 %v1756_v5, %v1756_v5  ;;  %v1431_v5 = vadd.f32 %v6279_v37, %v1430_v18  ;;  %v1509_v38 = vmax.f32 %v1433_v52, 0.0 }
 0x268   :  { %8213 = vst [vmem:[#allocation97_spill] sm:$0xff] %v6412_v14  ;;  %v1948_v15 = vunpack.c.l.b16 %v6412_v14  ;;  %v1437_v57 = vpop.f32.mrf.mxu3  ;;  %v1508_v56 = vmax.f32 %v1431_v5, 0.0 }
 0x269   :  { %v1649_v24 = vpop.f32.mrf.mxu0  ;;  %v1438_v17 = vadd.f32 %v6279_v37, %v1437_v57 }
 0x26a   :  { %v6416_v63 = vpack.c.b16 %v1948_v15, %v1947_v27  ;;  %v1542_v15 = vpack.c.bf16 %v1509_v38, %v1508_v56 }
 0x26b   :  { %v1511_v23 = vmax.f32 %v1438_v17, 0.0 }
 0x26c   :  { %1688 = vmatmul.bf16.gmra.mxu0 %v1540_v33 }
 0x26d   :  { %v1543_v28 = vpack.c.bf16 %v1511_v23, %v1510_v30 }
 0x270   :  { %v1440_v50 = vpop.f32.mrf.mxu3 }
 0x271   :  { %v1651_v12 = vpop.f32.mrf.mxu0  ;;  %v1441_v9 = vadd.f32 %v6279_v37, %v1440_v50 }
 0x278   :  { %v1442_v54 = vpop.f32.mrf.mxu3 }
 0x279   :  { %v1654_v62 = vpop.f32.mrf.mxu0  ;;  %v1443_v57 = vadd.f32 %v6279_v37, %v1442_v54 }
 0x27a   :  { %v1655_v23 = vadd.f32 %v6352_v32, %v1654_v62 }
 0x27c   :  { %1693 = vmatmul.bf16.gmra.mxu0 %v1541_v11 }
 0x280   :  { %v1445_v61 = vpop.f32.mrf.mxu3 }
 0x281   :  { %v1656_v45 = vpop.f32.mrf.mxu0 }
 0x282   :  { %v1657_v26 = vadd.f32 %v6352_v32, %v1656_v45  ;;  %v1650_v45 = vadd.f32 %v6352_v32, %v1649_v24 }
 0x288   :  { %v1447_v59 = vpop.f32.mrf.mxu3 }
 0x289   :  { %v1659_v27 = vpop.f32.mrf.mxu0 }
 0x28a   :  { %v1660_v52 = vadd.f32 %v6352_v32, %v1659_v27  ;;  %v1652_v27 = vadd.f32 %v6352_v32, %v1651_v12 }
 0x28c   :  { %1698 = vmatmul.bf16.gmra.mxu0 %v1542_v15 }
 0x290   :  { %v6427_v38 = vpop.f32.mrf.mxu3 }
 0x291   :  { %v1661_v33 = vpop.f32.mrf.mxu0 }
 0x292   :  { %v1662_v18 = vadd.f32 %v6352_v32, %v1661_v33 }
 0x294   :  { %v1762_v15 = vmax.f32 %v1662_v18, 0.0  ;;  %v1512_v18 = vmax.f32 %v1441_v9, 0.0 }
 0x296   :  { %v6437_v46 = vpack.c.bf16 %v1762_v15, %v1762_v15 }
 0x298   :  { %8214 = vst [vmem:[#allocation98_spill] sm:$0xff] %v6437_v46  ;;  %v1452_v15 = vpop.f32.mrf.mxu3 }
 0x299   :  { %v1664_v11 = vpop.f32.mrf.mxu0 }
 0x29a   :  { %v1665_v53 = vadd.f32 %v6352_v32, %v1664_v11  ;;  %v1513_v11 = vmax.f32 %v1443_v57, 0.0 }
 0x29c   :  { %1703 = vmatmul.bf16.gmra.mxu0 %v1543_v28  ;;  %v1763_v5 = vmax.f32 %v1665_v53, 0.0  ;;  %v1761_v28 = vmax.f32 %v1660_v52, 0.0  ;;  %v1760_v53 = vmax.f32 %v1657_v26, 0.0  ;;  %v1758_v52 = vmax.f32 %v1652_v27, 0.0 }
 0x29d   :  { %v1544_v12 = vpack.c.bf16 %v1513_v11, %v1512_v18  ;;  %v1954_v26 = vunpack.c.l.b16 %v6437_v46 }
 0x29e   :  { %v6434_v30 = vpack.c.bf16 %v1763_v5, %v1763_v5  ;;  %v6442_v34 = vpack.c.bf16 %v1761_v28, %v1761_v28 }
 0x2a0   :  { %8216 = vst [vmem:[#allocation100_spill] sm:$0xff] %v6442_v34  ;;  %v1955_v50 = vunpack.c.l.b16 %v6434_v30  ;;  %v1953_v9 = vunpack.c.l.b16 %v6442_v34 }
 0x2a1   :  { %v1666_v56 = vpop.f32.mrf.mxu0 }
 0x2a2   :  { %v1667_v17 = vadd.f32 %v6352_v32, %v1666_v56  ;;  %v1759_v56 = vmax.f32 %v1655_v23, 0.0  ;;  %v6453_v23 = vpack.c.bf16 %v1758_v52, %v1758_v52  ;;  %v1995_v28 = vpack.c.b16 %v1954_v26, %v1953_v9 }
 0x2a3   :  { %v1446_v52 = vadd.f32 %v6279_v37, %v1445_v61 }
 0x2a4   :  { %v1764_v33 = vmax.f32 %v1667_v17, 0.0  ;;  %v6446_v17 = vpack.c.bf16 %v1760_v53, %v1760_v53  ;;  %v6449_v14 = vpack.c.bf16 %v1759_v56, %v1759_v56  ;;  %8219 = vst [vmem:[#allocation103_spill] sm:$0xff] %v6453_v23  ;;  %v1448_v56 = vadd.f32 %v6279_v37, %v1447_v59 }
 0x2a6   :  { %v6439_v54 = vpack.c.bf16 %v1764_v33, %v1764_v33  ;;  %8217 = vst [vmem:[#allocation101_spill] sm:$0xff] %v6446_v17  ;;  %v1757_v33 = vmax.f32 %v1650_v45, 0.0  ;;  %v1952_v27 = vunpack.c.l.b16 %v6446_v17  ;;  %v1951_v18 = vunpack.c.l.b16 %v6449_v14 }
 0x2a7   :  { %8218 = vst [vmem:[#allocation102_spill] sm:$0xff] %v6449_v14 }
 0x2a8   :  { %8215 = vst [vmem:[#allocation99_spill] sm:$0xff] %v6439_v54  ;;  %v1956_v62 = vunpack.c.l.b16 %v6439_v54  ;;  %v6456_v53 = vpack.c.bf16 %v1757_v33, %v1757_v33  ;;  %v1455_v33 = vpop.f32.mrf.mxu3  ;;  %v1514_v54 = vmax.f32 %v1446_v52, 0.0 }
 0x2a9   :  { %v1669_v5 = vpop.f32.mrf.mxu0 }
 0x2aa   :  { %v1996_v57 = vpack.c.b16 %v1956_v62, %v1955_v50  ;;  %v1670_v24 = vadd.f32 %v6352_v32, %v1669_v5  ;;  %8220 = vst [vmem:[#allocation104_spill] sm:$0xff] %v6456_v53  ;;  %v1994_v62 = vpack.c.b16 %v1952_v27, %v1951_v18  ;;  %v1950_v5 = vunpack.c.l.b16 %v6453_v23 }
 0x2ab   :  { %v1949_v26 = vunpack.c.l.b16 %v6456_v53 }
 0x2ac   :  { %1708 = vmatmul.bf16.gmra.mxu0 %v1544_v12  ;;  %2037 = vmatpush.bf16.msrb.mxu1 %v1996_v57  ;;  %v1765_v11 = vmax.f32 %v1670_v24, 0.0  ;;  %v1515_v24 = vmax.f32 %v1448_v56, 0.0 }
 0x2ae   :  { %v6463_v12 = vpack.c.bf16 %v1765_v11, %v1765_v11 }
 0x2b0   :  { %2038 = vmatpush.bf16.msrb.mxu1 %v1995_v28  ;;  %8221 = vst [vmem:[#allocation105_spill] sm:$0xff] %v6463_v12  ;;  %v1993_v28 = vpack.c.b16 %v1950_v5, %v1949_v26  ;;  %v1957_v59 = vunpack.c.l.b16 %v6463_v12  ;;  %v1453_v5 = vadd.f32 %v6279_v37, %v1452_v15 }
 0x2b1   :  { %v1671_v45 = vpop.f32.mrf.mxu0 }
 0x2b2   :  { %v1672_v50 = vadd.f32 %v6352_v32, %v1671_v45  ;;  %v1545_v45 = vpack.c.bf16 %v1515_v24, %v1514_v54  ;;  %v1517_v24 = vmax.f32 %v1453_v5, 0.0  ;;  %v1456_v5 = vadd.f32 %v6279_v37, %v1455_v33 }
 0x2b4   :  { %v1766_v57 = vmax.f32 %v1672_v50, 0.0  ;;  %2039 = vmatpush.bf16.msrb.mxu1 %v1994_v62  ;;  %v1457_v50 = vpop.f32.mrf.mxu3 }
 0x2b6   :  { %v6466_v9 = vpack.c.bf16 %v1766_v57, %v1766_v57  ;;  %v1451_v57 = vadd.f32 %v6279_v37, %v6427_v38 }
 0x2b8   :  { %2040 = vmatpush.bf16.msrb.mxu1 %v1993_v28  ;;  %v1958_v27 = vunpack.c.l.b16 %v6466_v9 }
 0x2b9   :  { %v1674_v18 = vpop.f32.mrf.mxu0 }
 0x2ba   :  { %v6470_v61 = vpack.c.b16 %v1958_v27, %v1957_v59  ;;  %v1675_v11 = vadd.f32 %v6352_v32, %v1674_v18 }
 0x2bc   :  { %1713 = vmatmul.bf16.gmra.mxu0 %v1545_v45  ;;  %2041 = vmatpush.bf16.msrb.mxu1 %v6416_v63  ;;  %v1767_v56 = vmax.f32 %v1675_v11, 0.0  ;;  %v1516_v63 = vmax.f32 %v1451_v57, 0.0  ;;  %v1460_v59 = vpop.f32.mrf.mxu3 }
 0x2be   :  { %v6479_v54 = vpack.c.bf16 %v1767_v56, %v1767_v56  ;;  %v1546_v18 = vpack.c.bf16 %v1517_v24, %v1516_v63  ;;  %v1458_v56 = vadd.f32 %v6279_v37, %v1457_v50  ;;  %v1518_v63 = vmax.f32 %v1456_v5, 0.0 }
 0x2bf   :  { %v1461_v5 = vadd.f32 %v6279_v37, %v1460_v59 }
 0x2c0   :  { %2042 = vmatpush.bf16.msrb.mxu1 %v6400_v39  ;;  %8222 = vst [vmem:[#allocation106_spill] sm:$0xff] %v6479_v54  ;;  %v1959_v39 = vunpack.c.l.b16 %v6479_v54 }
 0x2c1   :  { %v1676_v62 = vpop.f32.mrf.mxu0 }
 0x2c2   :  { %v1677_v52 = vadd.f32 %v6352_v32, %v1676_v62 }
 0x2c4   :  { %v1768_v26 = vmax.f32 %v1677_v52, 0.0  ;;  %2043 = vmatpush.bf16.msrb.mxu1 %v6384_v41  ;;  %v1462_v62 = vpop.f32.mrf.mxu3 }
 0x2c6   :  { %v6482_v28 = vpack.c.bf16 %v1768_v26, %v1768_v26  ;;  %v1519_v26 = vmax.f32 %v1458_v56, 0.0  ;;  %v1463_v56 = vadd.f32 %v6279_v37, %v1462_v62 }
 0x2c8   :  { %8223 = vst [vmem:[#allocation107_spill] sm:$0xff] %v6482_v28  ;;  %2044 = vmatpush.bf16.msrb.mxu1 %v6368_v1  ;;  %v1960_v15 = vunpack.c.l.b16 %v6482_v28 }
 0x2c9   :  { %v1679_v27 = vpop.f32.mrf.mxu0 }
 0x2ca   :  { %v6487_v45 = vpack.c.b16 %v1960_v15, %v1959_v39  ;;  %v1680_v38 = vadd.f32 %v6352_v32, %v1679_v27 }
 0x2cb   :  { %2045 = vmatmul.bf16.vlgmr.msrb.gmra.mxu1 %v5940_v44 }
 0x2cc   :  { %1718 = vmatmul.bf16.gmra.mxu0 %v1546_v18  ;;  %v1769_v41 = vmax.f32 %v1680_v38, 0.0  ;;  %v1547_v18 = vpack.c.bf16 %v1519_v26, %v1518_v63  ;;  %v1465_v33 = vpop.f32.mrf.mxu3  ;;  %v1521_v26 = vmax.f32 %v1463_v56, 0.0 }
 0x2ce   :  { %v6494_v52 = vpack.c.bf16 %v1769_v41, %v1769_v41 }
 0x2d0   :  { %8224 = vst [vmem:[#allocation108_spill] sm:$0xff] %v6494_v52  ;;  %v1961_v39 = vunpack.c.l.b16 %v6494_v52 }
 0x2d1   :  { %v1681_v11 = vpop.f32.mrf.mxu0 }
 0x2d2   :  { %v1682_v1 = vadd.f32 %v6352_v32, %v1681_v11 }
 0x2d4   :  { %v1770_v57 = vmax.f32 %v1682_v1, 0.0 }
 0x2d6   :  { %v6496_v24 = vpack.c.bf16 %v1770_v57, %v1770_v57 }
 0x2d8   :  { %8225 = vst [vmem:[#allocation109_spill] sm:$0xff] %v6496_v24  ;;  %v1962_v15 = vunpack.c.l.b16 %v6496_v24 }
 0x2d9   :  { %v1684_v27 = vpop.f32.mrf.mxu0 }
 0x2da   :  { %v6500_v38 = vpack.c.b16 %v1962_v15, %v1961_v39  ;;  %v1685_v50 = vadd.f32 %v6352_v32, %v1684_v27  ;;  %v1467_v39 = vpop.f32.mrf.mxu3  ;;  %v1520_v15 = vmax.f32 %v1461_v5, 0.0 }
 0x2db   :  { %2050 = vmatmul.bf16.gmra.mxu1 %v5958_v2 }
 0x2dc   :  { %1723 = vmatmul.bf16.gmra.mxu0 %v1547_v18  ;;  %v1771_v41 = vmax.f32 %v1685_v50, 0.0  ;;  %v1548_v2 = vpack.c.bf16 %v1521_v26, %v1520_v15 }
 0x2de   :  { %v6507_v57 = vpack.c.bf16 %v1771_v41, %v1771_v41  ;;  %v1468_v41 = vadd.f32 %v6279_v37, %v1467_v39 }
 0x2e0   :  { %8226 = vst [vmem:[#allocation110_spill] sm:$0xff] %v6507_v57  ;;  %v1963_v27 = vunpack.c.l.b16 %v6507_v57 }
 0x2e1   :  { %v1686_v11 = vpop.f32.mrf.mxu0 }
 0x2e2   :  { %v1687_v1 = vadd.f32 %v6352_v32, %v1686_v11  ;;  %v1470_v59 = vpop.f32.mrf.mxu3  ;;  %v1523_v11 = vmax.f32 %v1468_v41, 0.0 }
 0x2e4   :  { %v1772_v44 = vmax.f32 %v1687_v1, 0.0 }
 0x2e6   :  { %v6509_v63 = vpack.c.bf16 %v1772_v44, %v1772_v44  ;;  %v1466_v44 = vadd.f32 %v6279_v37, %v1465_v33 }
 0x2e8   :  { %8227 = vst [vmem:[#allocation111_spill] sm:$0xff] %v6509_v63  ;;  %v1964_v18 = vunpack.c.l.b16 %v6509_v63  ;;  %v1522_v56 = vmax.f32 %v1466_v44, 0.0 }
 0x2e9   :  { %v1689_v50 = vpop.f32.mrf.mxu0 }
 0x2ea   :  { %v6513_v24 = vpack.c.b16 %v1964_v18, %v1963_v27  ;;  %v1549_v5 = vpack.c.bf16 %v1523_v11, %v1522_v56  ;;  %v1472_v57 = vpop.f32.mrf.mxu3  ;;  %v1471_v27 = vadd.f32 %v6279_v37, %v1470_v59 }
 0x2eb   :  { %2055 = vmatmul.bf16.gmra.mxu1 %v5974_v19  ;;  %v1473_v15 = vadd.f32 %v6279_v37, %v1472_v57 }
 0x2ec   :  { %1728 = vmatmul.bf16.gmra.mxu0 %v1548_v2  ;;  %v1524_v19 = vmax.f32 %v1471_v27, 0.0 }
 0x2ed   :  { %v1525_v18 = vmax.f32 %v1473_v15, 0.0 }
 0x2ef   :  { %v1550_v39 = vpack.c.bf16 %v1525_v18, %v1524_v19 }
 0x2f1   :  { %v1691_v62 = vpop.f32.mrf.mxu0 }
 0x2f2   :  { %v1475_v2 = vpop.f32.mrf.mxu3 }
 0x2f3   :  { %v1476_v11 = vadd.f32 %v6279_v37, %v1475_v2 }
 0x2f9   :  { %v1694_v1 = vpop.f32.mrf.mxu0 }
 0x2fa   :  { %v1477_v33 = vpop.f32.mrf.mxu3  ;;  %v1695_v2 = vadd.f32 %v6352_v32, %v1694_v1 }
 0x2fb   :  { %2060 = vmatmul.bf16.gmra.mxu1 %v5990_v4  ;;  %v1478_v44 = vadd.f32 %v6279_v37, %v1477_v33 }
 0x2fc   :  { %1733 = vmatmul.bf16.gmra.mxu0 %v1549_v5  ;;  %v1526_v5 = vmax.f32 %v1476_v11, 0.0 }
 0x2fd   :  { %v1527_v56 = vmax.f32 %v1478_v44, 0.0 }
 0x2ff   :  { %v1551_v57 = vpack.c.bf16 %v1527_v56, %v1526_v5 }
 0x301   :  { %v1696_v26 = vpop.f32.mrf.mxu0 }
 0x309   :  { %v1699_v63 = vpop.f32.mrf.mxu0 }
 0x30a   :  { %v1700_v15 = vadd.f32 %v6352_v32, %v1699_v63  ;;  %v1690_v63 = vadd.f32 %v6352_v32, %v1689_v50 }
 0x30b   :  { %2065 = vmatmul.bf16.gmra.mxu1 %v6006_v16 }
 0x30c   :  { %1738 = vmatmul.bf16.gmra.mxu0 %v1550_v39  ;;  %v1697_v39 = vadd.f32 %v6352_v32, %v1696_v26  ;;  %v1777_v44 = vmax.f32 %v1700_v15, 0.0 }
 0x30e   :  { %v1776_v5 = vmax.f32 %v1697_v39, 0.0  ;;  %v6539_v26 = vpack.c.bf16 %v1777_v44, %v1777_v44 }
 0x310   :  { %8231 = vst [vmem:[#allocation115_spill] sm:$0xff] %v6539_v26  ;;  %v1969_v50 = vunpack.c.l.b16 %v6539_v26 }
 0x311   :  { %v1701_v41 = vpop.f32.mrf.mxu0 }
 0x312   :  { %v1702_v19 = vadd.f32 %v6352_v32, %v1701_v41 }
 0x314   :  { %v1778_v33 = vmax.f32 %v1702_v19, 0.0 }
 0x319   :  { %v1704_v4 = vpop.f32.mrf.mxu0 }
 0x31a   :  { %v1705_v59 = vadd.f32 %v6352_v32, %v1704_v4  ;;  %v1692_v4 = vadd.f32 %v6352_v32, %v1691_v62 }
 0x31b   :  { %2070 = vmatmul.bf16.gmra.mxu1 %v6018_v48 }
 0x31c   :  { %1743 = vmatmul.bf16.gmra.mxu0 %v1551_v57  ;;  %v1779_v27 = vmax.f32 %v1705_v59, 0.0  ;;  %v6534_v57 = vpack.c.bf16 %v1778_v33, %v1778_v33  ;;  %v1775_v59 = vmax.f32 %v1695_v2, 0.0  ;;  %v1773_v33 = vmax.f32 %v1690_v63, 0.0 }
 0x31e   :  { %v6531_v11 = vpack.c.bf16 %v1779_v27, %v1779_v27  ;;  %8229 = vst [vmem:[#allocation113_spill] sm:$0xff] %v6534_v57  ;;  %v1774_v27 = vmax.f32 %v1692_v4, 0.0  ;;  %v1970_v39 = vunpack.c.l.b16 %v6534_v57  ;;  %v6555_v48 = vpack.c.bf16 %v1773_v33, %v1773_v33 }
 0x320   :  { %8228 = vst [vmem:[#allocation112_spill] sm:$0xff] %v6531_v11  ;;  %v1971_v19 = vunpack.c.l.b16 %v6531_v11  ;;  %v6552_v2 = vpack.c.bf16 %v1774_v27, %v1774_v27  ;;  %v2003_v44 = vpack.c.b16 %v1970_v39, %v1969_v50 }
 0x321   :  { %v1706_v18 = vpop.f32.mrf.mxu0  ;;  %8235 = vst [vmem:[#allocation119_spill] sm:$0xff] %v6555_v48 }
 0x322   :  { %v1707_v37 = vadd.f32 %v6352_v32, %v1706_v18  ;;  %v6545_v18 = vpack.c.bf16 %v1776_v5, %v1776_v5  ;;  %8234 = vst [vmem:[#allocation118_spill] sm:$0xff] %v6552_v2  ;;  %v1966_v63 = vunpack.c.l.b16 %v6552_v2 }
 0x324   :  { %v1780_v56 = vmax.f32 %v1707_v37, 0.0  ;;  %8232 = vst [vmem:[#allocation116_spill] sm:$0xff] %v6545_v18  ;;  %v6549_v37 = vpack.c.bf16 %v1775_v59, %v1775_v59  ;;  %v1965_v59 = vunpack.c.l.b16 %v6555_v48 }
 0x326   :  { %v6536_v41 = vpack.c.bf16 %v1780_v56, %v1780_v56  ;;  %8233 = vst [vmem:[#allocation117_spill] sm:$0xff] %v6549_v37  ;;  %v1968_v56 = vunpack.c.l.b16 %v6545_v18  ;;  %v1967_v4 = vunpack.c.l.b16 %v6549_v37 }
 0x328   :  { %8230 = vst [vmem:[#allocation114_spill] sm:$0xff] %v6536_v41  ;;  %v1972_v1 = vunpack.c.l.b16 %v6536_v41 }
 0x329   :  { %v6543_v15 = vpop.f32.mrf.mxu0 }
 0x32a   :  { %v2004_v62 = vpack.c.b16 %v1972_v1, %v1971_v19  ;;  %v2002_v19 = vpack.c.b16 %v1968_v56, %v1967_v4  ;;  %v2001_v1 = vpack.c.b16 %v1966_v63, %v1965_v59 }
 0x32b   :  { %2075 = vmatmul.bf16.gmra.mxu1 %v6030_v22 }
 0x32c   :  { %2166 = vmatpush.bf16.msrb.mxu2 %v2004_v62 }
 0x330   :  { %2167 = vmatpush.bf16.msrb.mxu2 %v2003_v44 }
 0x331   :  { %v6558_v5 = vpop.f32.mrf.mxu0 }
 0x334   :  { %2168 = vmatpush.bf16.msrb.mxu2 %v2002_v19 }
 0x338   :  { %2169 = vmatpush.bf16.msrb.mxu2 %v2001_v1 }
 0x339   :  { %v6562_v27 = vpop.f32.mrf.mxu0 }
 0x33b   :  { %2080 = vmatmul.bf16.gmra.mxu1 %v6042_v0 }
 0x33c   :  { %2170 = vmatpush.bf16.msrb.mxu2 %v6513_v24 }
 0x340   :  { %2171 = vmatpush.bf16.msrb.mxu2 %v6500_v38 }
 0x341   :  { %v6567_v62 = vpop.f32.mrf.mxu0 }
 0x344   :  { %2172 = vmatpush.bf16.msrb.mxu2 %v6487_v45 }
 0x348   :  { %2173 = vmatpush.bf16.msrb.mxu2 %v6470_v61  ;;  %v6575_v50 = vpop.f32.mrf.mxu1 }
 0x349   :  { %v6571_v39 = vpop.f32.mrf.mxu0 }
 0x34b   :  { %2085 = vmatmul.bf16.gmra.mxu1 %v6054_v40  ;;  %2174 = vmatmul.bf16.vlgmr.msrb.gmra.mxu2 %v5946_v47 }
 0x350   :  { %v6579_v24 = vpop.f32.mrf.mxu1 }
 0x351   :  { %v1721_v33 = vpop.f32.mrf.mxu0 }
 0x358   :  { %v6581_v45 = vpop.f32.mrf.mxu1 }
 0x359   :  { %v1724_v44 = vpop.f32.mrf.mxu0 }
 0x35b   :  { %2090 = vmatmul.bf16.gmra.mxu1 %v6070_v7  ;;  %2179 = vmatmul.bf16.gmra.mxu2 %v5964_v6 }
 0x360   :  { %v6585_v4 = vpop.f32.mrf.mxu1 }
 0x361   :  { %v1726_v38 = vpop.f32.mrf.mxu0 }
 0x368   :  { %v6589_v63 = vpop.f32.mrf.mxu1 }
 0x369   :  { %v1729_v61 = vpop.f32.mrf.mxu0 }
 0x36b   :  { %2095 = vmatmul.bf16.gmra.mxu1 %v6083_v49  ;;  %2184 = vmatmul.bf16.gmra.mxu2 %v5981_v35 }
 0x370   :  { %v6591_v1 = vpop.f32.mrf.mxu1 }
 0x371   :  { %v1731_v56 = vpop.f32.mrf.mxu0 }
 0x378   :  { %v6595_v49 = vpop.f32.mrf.mxu1 }
 0x379   :  { %v1734_v19 = vpop.f32.mrf.mxu0 }
 0x37a   :  { %v1735_v41 = vadd.f32 %v6352_v32, %v1734_v19 }
 0x37b   :  { %2100 = vmatmul.bf16.gmra.mxu1 %v6096_v3  ;;  %2189 = vmatmul.bf16.gmra.mxu2 %v5996_v58 }
 0x380   :  { %v6597_v47 = vpop.f32.mrf.mxu1 }
 0x381   :  { %v1736_v59 = vpop.f32.mrf.mxu0 }
 0x389   :  { %v1739_v6 = vpop.f32.mrf.mxu0 }
 0x38a   :  { %v1740_v40 = vadd.f32 %v6352_v32, %v1739_v6 }
 0x38b   :  { %2105 = vmatmul.bf16.gmra.mxu1 %v6123_v8  ;;  %2194 = vmatmul.bf16.gmra.mxu2 %v6012_v25  ;;  %v1737_v25 = vadd.f32 %v6352_v32, %v1736_v59 }
 0x38c   :  { %v1793_v11 = vmax.f32 %v1740_v40, 0.0 }
 0x38e   :  { %v6617_v59 = vpack.c.bf16 %v1793_v11, %v1793_v11 }
 0x390   :  { %8239 = vst [vmem:[#allocation123_spill] sm:$0xff] %v6617_v59 }
 0x391   :  { %v1741_v35 = vpop.f32.mrf.mxu0 }
 0x392   :  { %v1742_v3 = vadd.f32 %v6352_v32, %v1741_v35  ;;  %v1792_v35 = vmax.f32 %v1737_v25, 0.0 }
 0x394   :  { %v1794_v22 = vmax.f32 %v1742_v3, 0.0  ;;  %v1791_v3 = vmax.f32 %v1735_v41, 0.0  ;;  %v6622_v19 = vpack.c.bf16 %v1792_v35, %v1792_v35 }
 0x396   :  { %v6612_v26 = vpack.c.bf16 %v1794_v22, %v1794_v22  ;;  %8240 = vst [vmem:[#allocation124_spill] sm:$0xff] %v6622_v19  ;;  %v6628_v41 = vpack.c.bf16 %v1791_v3, %v1791_v3  ;;  %v1984_v35 = vunpack.c.l.b16 %v6622_v19  ;;  %v8256_v19 = vld [vmem:[#allocation94_spill] sm:$0xff] }
 0x398   :  { %8237 = vst [vmem:[#allocation121_spill] sm:$0xff] %v6612_v26  ;;  %v1986_v25 = vunpack.c.l.b16 %v6612_v26  ;;  %v1983_v3 = vunpack.c.l.b16 %v6628_v41  ;;  %v8253_v26 = vld [vmem:[#allocation69_spill] sm:$0xff] }
 0x399   :  { %v1744_v7 = vpop.f32.mrf.mxu0  ;;  %8241 = vst [vmem:[#allocation125_spill] sm:$0xff] %v6628_v41 }
 0x39a   :  { %v1745_v58 = vadd.f32 %v6352_v32, %v1744_v7  ;;  %v1732_v7 = vadd.f32 %v6352_v32, %v1731_v56 }
 0x39b   :  { %2110 = vmatmul.bf16.gmra.mxu1 %v6144_v13  ;;  %2199 = vmatmul.bf16.gmra.mxu2 %v6024_v51  ;;  %v6609_v51 = vpop.f32.mrf.mxu1 }
 0x39c   :  { %v1795_v0 = vmax.f32 %v1745_v58, 0.0  ;;  %v1730_v58 = vadd.f32 %v6352_v32, %v1729_v61  ;;  %v1790_v40 = vmax.f32 %v1732_v7, 0.0  ;;  %v1985_v61 = vunpack.c.l.b16 %v6617_v59 }
 0x39e   :  { %v6607_v57 = vpack.c.bf16 %v1795_v0, %v1795_v0  ;;  %v1789_v11 = vmax.f32 %v1730_v58, 0.0  ;;  %v6632_v7 = vpack.c.bf16 %v1790_v40, %v1790_v40 }
 0x3a0   :  { %8236 = vst [vmem:[#allocation120_spill] sm:$0xff] %v6607_v57  ;;  %v6639_v58 = vpack.c.bf16 %v1789_v11, %v1789_v11  ;;  %v1712_v11 = vadd.f32 %v6352_v32, %v6558_v5 }
 0x3a1   :  { %v1746_v8 = vpop.f32.mrf.mxu0 }
 0x3a2   :  { %v1747_v16 = vadd.f32 %v6352_v32, %v1746_v8  ;;  %v1987_v8 = vunpack.c.l.b16 %v6607_v57 }
 0x3a4   :  { %v1796_v13 = vmax.f32 %v1747_v16, 0.0  ;;  %v1727_v16 = vadd.f32 %v6352_v32, %v1726_v38  ;;  %v1722_v38 = vadd.f32 %v6352_v32, %v1721_v33  ;;  %v1717_v33 = vadd.f32 %v6352_v32, %v6567_v62 }
 0x3a6   :  { %v6614_v6 = vpack.c.bf16 %v1796_v13, %v1796_v13  ;;  %v1725_v13 = vadd.f32 %v6352_v32, %v1724_v44  ;;  %v1788_v56 = vmax.f32 %v1727_v16, 0.0  ;;  %v1786_v16 = vmax.f32 %v1722_v38, 0.0 }
 0x3a8   :  { %8238 = vst [vmem:[#allocation122_spill] sm:$0xff] %v6614_v6  ;;  %v1988_v0 = vunpack.c.l.b16 %v6614_v6  ;;  %v1787_v44 = vmax.f32 %v1725_v13, 0.0  ;;  %v6644_v40 = vpack.c.bf16 %v1788_v56, %v1788_v56  ;;  %v1981_v13 = vunpack.c.l.b16 %v6639_v58 }
 0x3a9   :  { %v6654_v62 = vpack.c.bf16 %v1786_v16, %v1786_v16  ;;  %v8242_v16 = vld [vmem:[#allocation56_spill] sm:$0xff] }
 0x3aa   :  { %v2012_v22 = vpack.c.b16 %v1988_v0, %v1987_v8  ;;  %v2011_v8 = vpack.c.b16 %v1986_v25, %v1985_v61  ;;  %v6635_v0 = vpop.f32.mrf.mxu1  ;;  %v2010_v25 = vpack.c.b16 %v1984_v35, %v1983_v3  ;;  %v1715_v61 = vadd.f32 %v6352_v32, %v6562_v27 }
 0x3ab   :  { %2115 = vmatmul.bf16.gmra.mxu1 %v6159_v21  ;;  %2204 = vmatmul.bf16.gmra.mxu2 %v6036_v42  ;;  %v1720_v42 = vadd.f32 %v6352_v32, %v6571_v39  ;;  %v6649_v39 = vpack.c.bf16 %v1787_v44, %v1787_v44  ;;  %v1980_v38 = vunpack.c.l.b16 %v6644_v40  ;;  %v1710_v35 = vadd.f32 %v6352_v32, %v6543_v15 }
 0x3ac   :  { %2295 = vmatpush.bf16.msra.mxu3 %v2012_v22  ;;  %v1982_v22 = vunpack.c.l.b16 %v6632_v7  ;;  %v1783_v3 = vmax.f32 %v1715_v61, 0.0  ;;  %v1978_v5 = vunpack.c.l.b16 %v6654_v62 }
 0x3ad   :  { %v1785_v21 = vmax.f32 %v1720_v42, 0.0  ;;  %v1979_v42 = vunpack.c.l.b16 %v6649_v39 }
 0x3ae   :  { %v2009_v56 = vpack.c.b16 %v1982_v22, %v1981_v13  ;;  %v1781_v22 = vmax.f32 %v1710_v35, 0.0  ;;  %v6669_v32 = vpack.c.bf16 %v1783_v3, %v1783_v3 }
 0x3af   :  { %v6659_v27 = vpack.c.bf16 %v1785_v21, %v1785_v21 }
 0x3b0   :  { %2296 = vmatpush.bf16.msra.mxu3 %v2011_v8  ;;  %v1784_v8 = vmax.f32 %v1717_v33, 0.0  ;;  %v2008_v33 = vpack.c.b16 %v1980_v38, %v1979_v42 }
 0x3b1   :  { %v1977_v21 = vunpack.c.l.b16 %v6659_v27 }
 0x3b2   :  { %v6662_v44 = vpop.f32.mrf.mxu1  ;;  %v6664_v6 = vpack.c.bf16 %v1784_v8, %v1784_v8  ;;  %v1975_v8 = vunpack.c.l.b16 %v6669_v32 }
 0x3b3   :  { %v2007_v13 = vpack.c.b16 %v1978_v5, %v1977_v21  ;;  %v8244_v5 = vld [vmem:[#allocation60_spill] sm:$0xff] }
 0x3b4   :  { %2297 = vmatpush.bf16.msra.mxu3 %v2010_v25  ;;  %v1782_v25 = vmax.f32 %v1712_v11, 0.0  ;;  %v1976_v61 = vunpack.c.l.b16 %v6664_v6  ;;  %v6675_v11 = vpack.c.bf16 %v1781_v22, %v1781_v22  ;;  %v8245_v22 = vld [vmem:[#allocation27_spill] sm:$0xff] }
 0x3b6   :  { %v6672_v15 = vpack.c.bf16 %v1782_v25, %v1782_v25  ;;  %v1973_v35 = vunpack.c.l.b16 %v6675_v11  ;;  %v8036_v25 = vunpack.c.l.bf16 %v6362_v43 }
 0x3b8   :  { %2298 = vmatpush.bf16.msra.mxu3 %v2009_v56  ;;  %v1974_v38 = vunpack.c.l.b16 %v6672_v15  ;;  %v2006_v56 = vpack.c.b16 %v1976_v61, %v1975_v8  ;;  %v2047_v21 = vadd.f32 %v6575_v50, %v8036_v25  ;;  %v8247_v50 = vld [vmem:[#allocation63_spill] sm:$0xff] }
 0x3b9   :  { %v8248_v25 = vld [vmem:[#allocation31_spill] sm:$0xff] }
 0x3ba   :  { %v6679_v42 = vpop.f32.mrf.mxu1  ;;  %v2005_v3 = vpack.c.b16 %v1974_v38, %v1973_v35  ;;  %v8037_v38 = vunpack.c.l.bf16 %v6364_v36 }
 0x3bb   :  { %2120 = vmatmul.bf16.gmra.mxu1 %v6174_v20  ;;  %2209 = vmatmul.bf16.gmra.mxu2 %v8242_v16  ;;  %v8249_v20 = vld [vmem:[#allocation88_spill] sm:$0xff] }
 0x3bc   :  { %2299 = vmatpush.bf16.msra.mxu3 %v2008_v33  ;;  %v8243_v33 = vld [vmem:[#allocation82_spill] sm:$0xff] }
 0x3c0   :  { %2300 = vmatpush.bf16.msra.mxu3 %v2007_v13 }
 0x3c2   :  { %v6689_v61 = vpop.f32.mrf.mxu1 }
 0x3c4   :  { %2301 = vmatpush.bf16.msra.mxu3 %v2006_v56  ;;  %v2049_v56 = vadd.f32 %v6579_v24, %v8037_v38 }
 0x3c8   :  { %2302 = vmatpush.bf16.msra.mxu3 %v2005_v3 }
 0x3ca   :  { %v6697_v3 = vpop.f32.mrf.mxu1 }
 0x3cb   :  { %2125 = vmatmul.bf16.gmra.mxu1 %v8243_v33  ;;  %2214 = vmatmul.bf16.gmra.mxu2 %v8244_v5  ;;  %v8246_v33 = vld [vmem:[#allocation85_spill] sm:$0xff] }
 0x3cc   :  { %2303 = vmatmul.bf16.vlgmr.msra.gmra.mxu3 %v8245_v22  ;;  %v8039_v22 = vunpack.c.l.bf16 %v6378_v55 }
 0x3ce   :  { %v2175_v13 = vpop.f32.mrf.mxu2 }
 0x3cf   :  { %v6691_v8 = vadd.f32 %v2175_v13, %v2047_v21  ;;  %v2052_v21 = vadd.f32 %v6581_v45, %v8039_v22  ;;  %v8250_v45 = vld [vmem:[#allocation66_spill] sm:$0xff] }
 0x3d2   :  { %v6710_v24 = vpop.f32.mrf.mxu1 }
 0x3d6   :  { %v2177_v35 = vpop.f32.mrf.mxu2 }
 0x3d7   :  { %v6699_v5 = vadd.f32 %v2177_v35, %v2049_v56  ;;  %v8042_v56 = vunpack.c.l.bf16 %v6380_v10 }
 0x3d9   :  { %v2054_v35 = vadd.f32 %v6585_v4, %v8042_v56  ;;  %v8046_v4 = vunpack.c.l.bf16 %v6396_v29 }
 0x3db   :  { %2130 = vmatmul.bf16.gmra.mxu1 %v8246_v33  ;;  %2219 = vmatmul.bf16.gmra.mxu2 %v8247_v50  ;;  %v6719_v50 = vpop.f32.mrf.mxu1 }
 0x3dc   :  { %2308 = vmatmul.bf16.gmra.mxu3 %v8248_v25  ;;  %v8045_v25 = vunpack.c.l.bf16 %v6394_v60 }
 0x3de   :  { %v2180_v13 = vpop.f32.mrf.mxu2 }
 0x3df   :  { %v6708_v16 = vadd.f32 %v2180_v13, %v2052_v21  ;;  %v8251_v21 = vld [vmem:[#allocation35_spill] sm:$0xff]  ;;  %v2057_v13 = vadd.f32 %v6589_v63, %v8045_v25 }
 0x3e0   :  { %v8254_v63 = vld [vmem:[#allocation39_spill] sm:$0xff] }
 0x3e6   :  { %v2182_v38 = vpop.f32.mrf.mxu2 }
 0x3e7   :  { %v6716_v33 = vadd.f32 %v2182_v38, %v2054_v35  ;;  %v2059_v38 = vadd.f32 %v6591_v1, %v8046_v4  ;;  %v6733_v35 = vpop.f32.mrf.mxu1  ;;  %v8255_v4 = vld [vmem:[#allocation97_spill] sm:$0xff] }
 0x3eb   :  { %2135 = vmatmul.bf16.gmra.mxu1 %v8249_v20  ;;  %2224 = vmatmul.bf16.gmra.mxu2 %v8250_v45  ;;  %v8252_v45 = vld [vmem:[#allocation91_spill] sm:$0xff] }
 0x3ec   :  { %2313 = vmatmul.bf16.gmra.mxu3 %v8251_v21  ;;  %v8051_v21 = vunpack.c.l.bf16 %v6410_v31 }
 0x3ee   :  { %v2185_v22 = vpop.f32.mrf.mxu2 }
 0x3ef   :  { %v6727_v57 = vadd.f32 %v2185_v22, %v2057_v13  ;;  %v2062_v22 = vadd.f32 %v6595_v49, %v8051_v21  ;;  %v6744_v25 = vpop.f32.mrf.mxu1  ;;  %v8257_v49 = vld [vmem:[#allocation72_spill] sm:$0xff]  ;;  %v8258_v21 = vld [vmem:[#allocation43_spill] sm:$0xff] }
 0x3f6   :  { %v2187_v56 = vpop.f32.mrf.mxu2 }
 0x3f7   :  { %v6735_v20 = vadd.f32 %v2187_v56, %v2059_v38  ;;  %v8054_v56 = vunpack.c.l.bf16 %v8255_v4 }
 0x3f9   :  { %v2064_v38 = vadd.f32 %v6597_v47, %v8054_v56  ;;  %v8057_v47 = vunpack.c.l.bf16 %v6453_v23 }
 0x3fb   :  { %2140 = vmatmul.bf16.gmra.mxu1 %v8252_v45  ;;  %2229 = vmatmul.bf16.gmra.mxu2 %v8253_v26  ;;  %v6754_v26 = vpop.f32.mrf.mxu1 }
 0x3fc   :  { %2318 = vmatmul.bf16.gmra.mxu3 %v8254_v63  ;;  %v8056_v63 = vunpack.c.l.bf16 %v6456_v53  ;;  %v8260_v53 = vld [vmem:[#allocation75_spill] sm:$0xff] }
 0x3fe   :  { %v2190_v13 = vpop.f32.mrf.mxu2 }
 0x3ff   :  { %v6746_v1 = vadd.f32 %v2190_v13, %v2062_v22  ;;  %v2067_v22 = vadd.f32 %v6609_v51, %v8056_v63  ;;  %v5317_v51 = vld [vmem:[#allocation9 + $0x38] sm:$0xff] }
 0x400   :  { %2516 = vmatpush.bf16.msra.mxu0 %v5317_v51  ;;  %v8063_v51 = vunpack.c.l.bf16 %v6442_v34 }
 0x406   :  { %v2192_v45 = vpop.f32.mrf.mxu2 }
 0x407   :  { %v6752_v59 = vadd.f32 %v2192_v45, %v2064_v38  ;;  %v6766_v45 = vpop.f32.mrf.mxu1  ;;  %v2069_v38 = vadd.f32 %v6635_v0, %v8057_v47 }
 0x40b   :  { %2145 = vmatmul.bf16.gmra.mxu1 %v8256_v19  ;;  %2234 = vmatmul.bf16.gmra.mxu2 %v8257_v49  ;;  %v8259_v49 = vld [vmem:[#allocation26_spill] sm:$0xff] }
 0x40c   :  { %2323 = vmatmul.bf16.gmra.mxu3 %v8258_v21  ;;  %v8059_v21 = vunpack.c.l.bf16 %v6449_v14  ;;  %v8264_v14 = vld [vmem:[#allocation51_spill] sm:$0xff] }
 0x40e   :  { %v2195_v13 = vpop.f32.mrf.mxu2 }
 0x40f   :  { %v6763_v41 = vadd.f32 %v2195_v13, %v2067_v22  ;;  %v8261_v22 = vld [vmem:[#allocation47_spill] sm:$0xff]  ;;  %v2072_v13 = vadd.f32 %v6662_v44, %v8059_v21  ;;  %v6780_v63 = vpop.f32.mrf.mxu1  ;;  %v5314_v21 = vld [vmem:[#allocation9 + $0x20] sm:$0xff] }
 0x416   :  { %v2197_v56 = vpop.f32.mrf.mxu2 }
 0x417   :  { %v6771_v19 = vadd.f32 %v2197_v56, %v2069_v38  ;;  %v5316_v56 = vld [vmem:[#allocation9 + $0x30] sm:$0xff]  ;;  %v5315_v38 = vld [vmem:[#allocation9 + $0x28] sm:$0xff]  ;;  %v6788_v23 = vpop.f32.mrf.mxu1 }
 0x418   :  { %2517 = vmatpush.bf16.msra.mxu0 %v5316_v56  ;;  %v5313_v56 = vld [vmem:[#allocation9 + $0x18] sm:$0xff] }
 0x41b   :  { %2150 = vmatmul.bf16.gmra.mxu1 %v8259_v49  ;;  %2239 = vmatmul.bf16.gmra.mxu2 %v8260_v53  ;;  %v8061_v49 = vunpack.c.l.bf16 %v6446_v17 }
 0x41c   :  { %2328 = vmatmul.bf16.gmra.mxu3 %v8261_v22  ;;  %2518 = vmatpush.bf16.msra.mxu0 %v5315_v38 }
 0x41d   :  { %v2074_v53 = vadd.f32 %v6679_v42, %v8061_v49  ;;  %v2077_v42 = vadd.f32 %v6689_v61, %v8063_v51  ;;  %v5310_v61 = vld [vmem:[#allocation9] sm:$0xff]  ;;  %v8267_v51 = vld [vmem:[#allocation55_spill] sm:$0xff] }
 0x41e   :  { %v2200_v0 = vpop.f32.mrf.mxu2 }
 0x41f   :  { %v6782_v47 = vadd.f32 %v2200_v0, %v2072_v13  ;;  %v8262_v13 = vld [vmem:[#allocation30_spill] sm:$0xff] }
 0x420   :  { %2519 = vmatpush.bf16.msra.mxu0 %v5314_v21  ;;  %v8263_v0 = vld [vmem:[#allocation78_spill] sm:$0xff] }
 0x421   :  { %v5311_v21 = vld [vmem:[#allocation9 + $0x8] sm:$0xff] }
 0x424   :  { %2520 = vmatpush.bf16.msra.mxu0 %v5313_v56  ;;  %v8067_v56 = vunpack.c.l.bf16 %v6434_v30 }
 0x426   :  { %v2202_v22 = vpop.f32.mrf.mxu2 }
 0x427   :  { %v6790_v44 = vadd.f32 %v2202_v22, %v2074_v53  ;;  %v5312_v53 = vld [vmem:[#allocation9 + $0x10] sm:$0xff]  ;;  %v6801_v22 = vpop.f32.mrf.mxu1 }
 0x428   :  { %2521 = vmatpush.bf16.msra.mxu0 %v5312_v53  ;;  %v8266_v53 = vld [vmem:[#allocation81_spill] sm:$0xff] }
 0x42b   :  { %2155 = vmatmul.bf16.gmra.mxu1 %v8262_v13  ;;  %2244 = vmatmul.bf16.gmra.mxu2 %v8263_v0  ;;  %v8064_v13 = vunpack.c.l.bf16 %v6437_v46 }
 0x42c   :  { %2333 = vmatmul.bf16.gmra.mxu3 %v8264_v14  ;;  %2522 = vmatpush.bf16.msra.mxu0 %v5311_v21 }
 0x42d   :  { %v2079_v0 = vadd.f32 %v6697_v3, %v8064_v13  ;;  %v2082_v3 = vadd.f32 %v6710_v24, %v8067_v56 }
 0x42e   :  { %v2205_v38 = vpop.f32.mrf.mxu2 }
 0x42f   :  { %v6799_v49 = vadd.f32 %v2205_v38, %v2077_v42  ;;  %v6810_v42 = vpop.f32.mrf.mxu1  ;;  %v8265_v38 = vld [vmem:[#allocation34_spill] sm:$0xff] }
 0x430   :  { %2523 = vmatpush.bf16.msra.mxu0 %v5310_v61 }
 0x436   :  { %v2207_v14 = vpop.f32.mrf.mxu2 }
 0x437   :  { %v6807_v17 = vadd.f32 %v2207_v14, %v2079_v0  ;;  %v8268_v14 = vld [vmem:[#allocation99_spill] sm:$0xff] }
 0x438   :  { %v8069_v0 = vunpack.c.l.bf16 %v8268_v14  ;;  %v8071_v14 = vunpack.c.l.bf16 %v6466_v9 }
 0x43a   :  { %v2084_v61 = vadd.f32 %v6719_v50, %v8069_v0 }
 0x43b   :  { %2160 = vmatmul.bf16.gmra.mxu1 %v8265_v38  ;;  %2249 = vmatmul.bf16.gmra.mxu2 %v8266_v53  ;;  %v8072_v53 = vunpack.c.l.bf16 %v6463_v12  ;;  %v8269_v38 = vld [vmem:[#allocation84_spill] sm:$0xff] }
 0x43c   :  { %2338 = vmatmul.bf16.gmra.mxu3 %v8267_v51  ;;  %v8270_v51 = vld [vmem:[#allocation59_spill] sm:$0xff] }
 0x43d   :  { %v2087_v24 = vadd.f32 %v6733_v35, %v8072_v53  ;;  %v8074_v35 = vunpack.c.l.bf16 %v6479_v54 }
 0x43e   :  { %v2210_v21 = vpop.f32.mrf.mxu2 }
 0x43f   :  { %v6818_v13 = vadd.f32 %v2210_v21, %v2082_v3 }
 0x446   :  { %v2212_v34 = vpop.f32.mrf.mxu2 }
 0x447   :  { %v6824_v46 = vadd.f32 %v2212_v34, %v2084_v61  ;;  %v2089_v34 = vadd.f32 %v6744_v25, %v8071_v14  ;;  %v2092_v25 = vadd.f32 %v6754_v26, %v8074_v35  ;;  %v8075_v26 = vunpack.c.l.bf16 %v6494_v52  ;;  %v8275_v35 = vld [vmem:[#allocation109_spill] sm:$0xff] }
 0x44b   :  { %2254 = vmatmul.bf16.gmra.mxu2 %v8269_v38 }
 0x44c   :  { %2343 = vmatmul.bf16.gmra.mxu3 %v8270_v51 }
 0x44e   :  { %v2215_v3 = vpop.f32.mrf.mxu2 }
 0x44f   :  { %v6832_v21 = vadd.f32 %v2215_v3, %v2087_v24  ;;  %v2304_v56 = vpop.f32.mrf.mxu3  ;;  %v8271_v24 = vld [vmem:[#allocation87_spill] sm:$0xff]  ;;  %v8272_v3 = vld [vmem:[#allocation62_spill] sm:$0xff] }
 0x450   :  { %v2305_v51 = vadd.f32 %v2304_v56, %v6691_v8  ;;  %v8073_v8 = vunpack.c.l.bf16 %v6482_v28 }
 0x456   :  { %v2217_v50 = vpop.f32.mrf.mxu2 }
 0x457   :  { %v6838_v61 = vadd.f32 %v2217_v50, %v2089_v34  ;;  %v2306_v0 = vpop.f32.mrf.mxu3 }
 0x458   :  { %v2307_v38 = vadd.f32 %v2306_v0, %v6699_v5  ;;  %v2094_v5 = vadd.f32 %v6766_v45, %v8073_v8  ;;  %v2097_v45 = vadd.f32 %v6780_v63, %v8075_v26 }
 0x45a   :  { %v2424_v12 = vpack.c.bf16 %v2307_v38, %v2305_v51 }
 0x45b   :  { %2259 = vmatmul.bf16.gmra.mxu2 %v8271_v24 }
 0x45c   :  { %2348 = vmatmul.bf16.gmra.mxu3 %v8272_v3  ;;  %2524 = vmatmul.bf16.vlgmr.msra.gmra.mxu0 %v2424_v12 }
 0x45e   :  { %v2220_v14 = vpop.f32.mrf.mxu2 }
 0x45f   :  { %v6848_v34 = vadd.f32 %v2220_v14, %v2092_v25  ;;  %v2309_v50 = vpop.f32.mrf.mxu3  ;;  %v8273_v14 = vld [vmem:[#allocation90_spill] sm:$0xff]  ;;  %v8274_v25 = vld [vmem:[#allocation65_spill] sm:$0xff] }
 0x460   :  { %v2310_v12 = vadd.f32 %v2309_v50, %v6708_v16  ;;  %v8076_v16 = vunpack.c.l.bf16 %v8275_v35 }
 0x466   :  { %v2222_v51 = vpop.f32.mrf.mxu2 }
 0x467   :  { %v6854_v56 = vadd.f32 %v2222_v51, %v2094_v5  ;;  %v2311_v38 = vpop.f32.mrf.mxu3 }
 0x468   :  { %v2312_v0 = vadd.f32 %v2311_v38, %v6716_v33  ;;  %v2099_v33 = vadd.f32 %v6788_v23, %v8076_v16  ;;  %v6870_v38 = vpop.f32.mrf.mxu1 }
 0x46a   :  { %v2425_v53 = vpack.c.bf16 %v2312_v0, %v2310_v12 }
 0x46b   :  { %2264 = vmatmul.bf16.gmra.mxu2 %v8273_v14  ;;  %v8278_v14 = vld [vmem:[#allocation68_spill] sm:$0xff] }
 0x46c   :  { %2353 = vmatmul.bf16.gmra.mxu3 %v8274_v25  ;;  %2529 = vmatmul.bf16.gmra.mxu0 %v2425_v53  ;;  %v8277_v25 = vld [vmem:[#allocation93_spill] sm:$0xff] }
 0x46e   :  { %v2225_v8 = vpop.f32.mrf.mxu2 }
 0x46f   :  { %v6864_v5 = vadd.f32 %v2225_v8, %v2097_v45  ;;  %v2314_v51 = vpop.f32.mrf.mxu3  ;;  %v8276_v8 = vld [vmem:[#allocation110_spill] sm:$0xff] }
 0x470   :  { %v2315_v0 = vadd.f32 %v2314_v51, %v6727_v57  ;;  %v8077_v45 = vunpack.c.l.bf16 %v8276_v8  ;;  %v6884_v3 = vpop.f32.mrf.mxu1  ;;  %v8279_v57 = vld [vmem:[#allocation111_spill] sm:$0xff] }
 0x472   :  { %v2102_v23 = vadd.f32 %v6801_v22, %v8077_v45 }
 0x476   :  { %v2227_v50 = vpop.f32.mrf.mxu2 }
 0x477   :  { %v6872_v12 = vadd.f32 %v2227_v50, %v2099_v33  ;;  %v2316_v53 = vpop.f32.mrf.mxu3 }
 0x478   :  { %v2317_v63 = vadd.f32 %v2316_v53, %v6735_v20  ;;  %v8078_v20 = vunpack.c.l.bf16 %v8279_v57  ;;  %v8290_v57 = vld [vmem:[#allocation89_spill] sm:$0xff] }
 0x47a   :  { %v2426_v26 = vpack.c.bf16 %v2317_v63, %v2315_v0  ;;  %v2104_v51 = vadd.f32 %v6810_v42, %v8078_v20 }
 0x47b   :  { %2269 = vmatmul.bf16.gmra.mxu2 %v8277_v25 }
 0x47c   :  { %2358 = vmatmul.bf16.gmra.mxu3 %v8278_v14  ;;  %2534 = vmatmul.bf16.gmra.mxu0 %v2426_v26  ;;  %v8281_v14 = vld [vmem:[#allocation71_spill] sm:$0xff] }
 0x47e   :  { %v2230_v16 = vpop.f32.mrf.mxu2 }
 0x47f   :  { %v6882_v33 = vadd.f32 %v2230_v16, %v2102_v23  ;;  %v2319_v50 = vpop.f32.mrf.mxu3  ;;  %v6894_v16 = vpop.f32.mrf.mxu1  ;;  %v8280_v23 = vld [vmem:[#allocation96_spill] sm:$0xff] }
 0x480   :  { %v2320_v63 = vadd.f32 %v2319_v50, %v6746_v1  ;;  %v8282_v1 = vld [vmem:[#allocation38_spill] sm:$0xff] }
 0x486   :  { %v2232_v53 = vpop.f32.mrf.mxu2 }
 0x487   :  { %v6890_v0 = vadd.f32 %v2232_v53, %v2104_v51  ;;  %v2321_v26 = vpop.f32.mrf.mxu3  ;;  %v6898_v24 = vpop.f32.mrf.mxu1 }
 0x488   :  { %v2322_v22 = vadd.f32 %v2321_v26, %v6752_v59  ;;  %v8283_v59 = vld [vmem:[#allocation74_spill] sm:$0xff] }
 0x48a   :  { %v2427_v45 = vpack.c.bf16 %v2322_v22, %v2320_v63  ;;  %v5325_v22 = vld [vmem:[#allocation10 + $0x38] sm:$0xff] }
 0x48b   :  { %2274 = vmatmul.bf16.gmra.mxu2 %v8280_v23  ;;  %2785 = vmatpush.bf16.msra.mxu1 %v5325_v22  ;;  %v8286_v22 = vld [vmem:[#allocation46_spill] sm:$0xff] }
 0x48c   :  { %2363 = vmatmul.bf16.gmra.mxu3 %v8281_v14  ;;  %2539 = vmatmul.bf16.gmra.mxu0 %v2427_v45 }
 0x48f   :  { %v2324_v25 = vpop.f32.mrf.mxu3  ;;  %v6904_v50 = vpop.f32.mrf.mxu1 }
 0x490   :  { %v2325_v51 = vadd.f32 %v2324_v25, %v6763_v41  ;;  %v5324_v25 = vld [vmem:[#allocation10 + $0x30] sm:$0xff] }
 0x491   :  { %2786 = vmatpush.bf16.msra.mxu1 %v5324_v25 }
 0x497   :  { %v2326_v42 = vpop.f32.mrf.mxu3  ;;  %v6908_v23 = vpop.f32.mrf.mxu1 }
 0x498   :  { %v2327_v53 = vadd.f32 %v2326_v42, %v6771_v19  ;;  %v8284_v19 = vld [vmem:[#allocation42_spill] sm:$0xff]  ;;  %v8285_v42 = vld [vmem:[#allocation77_spill] sm:$0xff] }
 0x49a   :  { %v2428_v20 = vpack.c.bf16 %v2327_v53, %v2325_v51  ;;  %v5323_v51 = vld [vmem:[#allocation10 + $0x28] sm:$0xff]  ;;  %v5322_v53 = vld [vmem:[#allocation10 + $0x20] sm:$0xff] }
 0x49b   :  { %2279 = vmatmul.bf16.gmra.mxu2 %v8282_v1  ;;  %2787 = vmatpush.bf16.msra.mxu1 %v5323_v51 }
 0x49c   :  { %2368 = vmatmul.bf16.gmra.mxu3 %v8283_v59  ;;  %2544 = vmatmul.bf16.gmra.mxu0 %v2428_v20 }
 0x49f   :  { %v2329_v26 = vpop.f32.mrf.mxu3  ;;  %v6912_v59 = vpop.f32.mrf.mxu1  ;;  %2788 = vmatpush.bf16.msra.mxu1 %v5322_v53  ;;  %v5318_v53 = vld [vmem:[#allocation10] sm:$0xff] }
 0x4a0   :  { %v2330_v45 = vadd.f32 %v2329_v26, %v6782_v47 }
 0x4a7   :  { %v2331_v63 = vpop.f32.mrf.mxu3  ;;  %v6918_v25 = vpop.f32.mrf.mxu1 }
 0x4a8   :  { %v2332_v14 = vadd.f32 %v2331_v63, %v6790_v44  ;;  %v5321_v44 = vld [vmem:[#allocation10 + $0x18] sm:$0xff] }
 0x4a9   :  { %2789 = vmatpush.bf16.msra.mxu1 %v5321_v44  ;;  %v8288_v44 = vld [vmem:[#allocation83_spill] sm:$0xff] }
 0x4aa   :  { %v2429_v41 = vpack.c.bf16 %v2332_v14, %v2330_v45  ;;  %v5320_v45 = vld [vmem:[#allocation10 + $0x10] sm:$0xff] }
 0x4ab   :  { %2284 = vmatmul.bf16.gmra.mxu2 %v8284_v19 }
 0x4ac   :  { %2373 = vmatmul.bf16.gmra.mxu3 %v8285_v42  ;;  %2549 = vmatmul.bf16.gmra.mxu0 %v2429_v41  ;;  %v8287_v41 = vld [vmem:[#allocation80_spill] sm:$0xff]  ;;  %v5319_v42 = vld [vmem:[#allocation10 + $0x8] sm:$0xff] }
 0x4ad   :  { %2790 = vmatpush.bf16.msra.mxu1 %v5320_v45 }
 0x4af   :  { %v2334_v20 = vpop.f32.mrf.mxu3  ;;  %v6920_v19 = vpop.f32.mrf.mxu1 }
 0x4b0   :  { %v2335_v26 = vadd.f32 %v2334_v20, %v6799_v49 }
 0x4b1   :  { %2791 = vmatpush.bf16.msra.mxu1 %v5319_v42 }
 0x4b5   :  { %2792 = vmatpush.bf16.msra.mxu1 %v5318_v53 }
 0x4b7   :  { %v2336_v47 = vpop.f32.mrf.mxu3 }
 0x4b8   :  { %v2337_v14 = vadd.f32 %v2336_v47, %v6807_v17 }
 0x4ba   :  { %v2430_v63 = vpack.c.bf16 %v2337_v14, %v2335_v26  ;;  %v6925_v14 = vpop.f32.mrf.mxu1 }
 0x4bb   :  { %2289 = vmatmul.bf16.gmra.mxu2 %v8286_v22 }
 0x4bc   :  { %2378 = vmatmul.bf16.gmra.mxu3 %v8287_v41  ;;  %2554 = vmatmul.bf16.gmra.mxu0 %v2430_v63 }
 0x4bf   :  { %v2339_v51 = vpop.f32.mrf.mxu3 }
 0x4c0   :  { %v2340_v17 = vadd.f32 %v2339_v51, %v6818_v13  ;;  %v8289_v13 = vld [vmem:[#allocation86_spill] sm:$0xff]  ;;  %v6937_v51 = vpop.f32.mrf.mxu2 }
 0x4c2   :  { %v6929_v22 = vpop.f32.mrf.mxu1 }
 0x4c7   :  { %v2341_v49 = vpop.f32.mrf.mxu3 }
 0x4c8   :  { %v2342_v20 = vadd.f32 %v2341_v49, %v6824_v46  ;;  %v6934_v46 = vld [vmem:[%s7882_s7] ss:$0 sm:$0xff] }
 0x4ca   :  { %v2431_v47 = vpack.c.bf16 %v2342_v20, %v2340_v17 }
 0x4cc   :  { %2383 = vmatmul.bf16.gmra.mxu3 %v8288_v44  ;;  %2559 = vmatmul.bf16.gmra.mxu0 %v2431_v47 }
 0x4cf   :  { %v2344_v26 = vpop.f32.mrf.mxu3 }
 0x4d0   :  { %v2345_v45 = vadd.f32 %v2344_v26, %v6832_v21  ;;  %v6941_v26 = vpop.f32.mrf.mxu1 }
 0x4d7   :  { %v2346_v63 = vpop.f32.mrf.mxu3 }
 0x4d8   :  { %v2347_v42 = vadd.f32 %v2346_v63, %v6838_v61 }
 0x4d9   :  { %v2525_v53 = vpop.f32.mrf.mxu0 }
 0x4da   :  { %v2432_v41 = vpack.c.bf16 %v2347_v42, %v2345_v45  ;;  %v2526_v17 = vadd.f32 %v6934_v46, %v2525_v53  ;;  %v2237_v45 = vpop.f32.mrf.mxu2  ;;  %v6946_v53 = vpop.f32.mrf.mxu1 }
 0x4dc   :  { %2388 = vmatmul.bf16.gmra.mxu3 %v8289_v13  ;;  %2564 = vmatmul.bf16.gmra.mxu0 %v2432_v41  ;;  %v2645_v20 = vmax.f32 %v2526_v17, 0.0 }
 0x4df   :  { %v2349_v49 = vpop.f32.mrf.mxu3 }
 0x4e0   :  { %v2350_v44 = vadd.f32 %v2349_v49, %v6848_v34 }
 0x4e1   :  { %v2527_v21 = vpop.f32.mrf.mxu0 }
 0x4e2   :  { %v2528_v61 = vadd.f32 %v6934_v46, %v2527_v21 }
 0x4e4   :  { %v2646_v47 = vmax.f32 %v2528_v61, 0.0  ;;  %v6949_v61 = vpop.f32.mrf.mxu2 }
 0x4e6   :  { %v2693_v63 = vpack.c.bf16 %v2646_v47, %v2645_v20 }
 0x4e7   :  { %v2351_v42 = vpop.f32.mrf.mxu3 }
 0x4e8   :  { %v2352_v13 = vadd.f32 %v2351_v42, %v6854_v56  ;;  %2793 = vmatmul.bf16.vlgmr.msra.gmra.mxu1 %v2693_v63 }
 0x4e9   :  { %v2530_v41 = vpop.f32.mrf.mxu0 }
 0x4ea   :  { %v2433_v1 = vpack.c.bf16 %v2352_v13, %v2350_v44  ;;  %v2531_v17 = vadd.f32 %v6934_v46, %v2530_v41  ;;  %v8291_v41 = vld [vmem:[#allocation92_spill] sm:$0xff] }
 0x4ec   :  { %2393 = vmatmul.bf16.gmra.mxu3 %v8290_v57  ;;  %2569 = vmatmul.bf16.gmra.mxu0 %v2433_v1  ;;  %v2647_v8 = vmax.f32 %v2531_v17, 0.0  ;;  %v6954_v1 = vpop.f32.mrf.mxu1  ;;  %v2242_v57 = vpop.f32.mrf.mxu2 }
 0x4ef   :  { %v2354_v21 = vpop.f32.mrf.mxu3 }
 0x4f0   :  { %v2355_v63 = vadd.f32 %v2354_v21, %v6864_v5 }
 0x4f1   :  { %v2532_v20 = vpop.f32.mrf.mxu0 }
 0x4f2   :  { %v2533_v47 = vadd.f32 %v6934_v46, %v2532_v20 }
 0x4f4   :  { %v2648_v34 = vmax.f32 %v2533_v47, 0.0  ;;  %v6959_v47 = vpop.f32.mrf.mxu1 }
 0x4f6   :  { %v2694_v49 = vpack.c.bf16 %v2648_v34, %v2647_v8 }
 0x4f7   :  { %v2356_v56 = vpop.f32.mrf.mxu3 }
 0x4f8   :  { %v2357_v44 = vadd.f32 %v2356_v56, %v6872_v12  ;;  %2798 = vmatmul.bf16.gmra.mxu1 %v2694_v49  ;;  %v6961_v12 = vpop.f32.mrf.mxu2 }
 0x4f9   :  { %v2535_v13 = vpop.f32.mrf.mxu0 }
 0x4fa   :  { %v2434_v42 = vpack.c.bf16 %v2357_v44, %v2355_v63  ;;  %v2536_v20 = vadd.f32 %v6934_v46, %v2535_v13 }
 0x4fc   :  { %2398 = vmatmul.bf16.gmra.mxu3 %v8291_v41  ;;  %2574 = vmatmul.bf16.gmra.mxu0 %v2434_v42  ;;  %v2649_v5 = vmax.f32 %v2536_v20, 0.0  ;;  %v8292_v41 = vld [vmem:[#allocation95_spill] sm:$0xff]  ;;  %v6966_v13 = vpop.f32.mrf.mxu1 }
 0x4ff   :  { %v2359_v35 = vpop.f32.mrf.mxu3 }
 0x500   :  { %v2360_v56 = vadd.f32 %v2359_v35, %v6882_v33 }
 0x501   :  { %v2537_v17 = vpop.f32.mrf.mxu0 }
 0x502   :  { %v2538_v8 = vadd.f32 %v6934_v46, %v2537_v17  ;;  %v2247_v17 = vpop.f32.mrf.mxu2 }
 0x504   :  { %v2650_v21 = vmax.f32 %v2538_v8, 0.0 }
 0x506   :  { %v2695_v34 = vpack.c.bf16 %v2650_v21, %v2649_v5  ;;  %v8086_v5 = vunpack.c.l.bf16 %v6555_v48  ;;  %v8087_v21 = vunpack.c.l.bf16 %v6552_v2  ;;  %v8294_v2 = vld [vmem:[#allocation54_spill] sm:$0xff] }
 0x507   :  { %v2361_v49 = vpop.f32.mrf.mxu3 }
 0x508   :  { %v2362_v63 = vadd.f32 %v2361_v49, %v6890_v0  ;;  %2803 = vmatmul.bf16.gmra.mxu1 %v2695_v34  ;;  %v2107_v33 = vadd.f32 %v6870_v38, %v8086_v5  ;;  %v2109_v0 = vadd.f32 %v6884_v3, %v8087_v21  ;;  %v8293_v5 = vld [vmem:[#allocation50_spill] sm:$0xff] }
 0x509   :  { %v2540_v44 = vpop.f32.mrf.mxu0 }
 0x50a   :  { %v2435_v42 = vpack.c.bf16 %v2362_v63, %v2360_v56  ;;  %v2541_v20 = vadd.f32 %v6934_v46, %v2540_v44  ;;  %v2236_v56 = vadd.f32 %v6937_v51, %v2107_v33  ;;  %v2238_v63 = vadd.f32 %v2237_v45, %v2109_v0 }
 0x50b   :  { %v8089_v45 = vunpack.c.l.bf16 %v6549_v37  ;;  %v8090_v33 = vunpack.c.l.bf16 %v6545_v18 }
 0x50c   :  { %2403 = vmatmul.bf16.gmra.mxu3 %v8292_v41  ;;  %2579 = vmatmul.bf16.gmra.mxu0 %v2435_v42  ;;  %v2651_v34 = vmax.f32 %v2541_v20, 0.0  ;;  %v6979_v42 = vpop.f32.mrf.mxu1 }
 0x50f   :  { %v2364_v52 = vpop.f32.mrf.mxu3 }
 0x510   :  { %v2365_v28 = vadd.f32 %v2364_v52, %v2236_v56 }
 0x511   :  { %v2542_v8 = vpop.f32.mrf.mxu0 }
 0x512   :  { %v2543_v35 = vadd.f32 %v6934_v46, %v2542_v8  ;;  %v6981_v8 = vpop.f32.mrf.mxu2 }
 0x514   :  { %v2652_v49 = vmax.f32 %v2543_v35, 0.0  ;;  %v6985_v35 = vpop.f32.mrf.mxu1 }
 0x516   :  { %v2696_v44 = vpack.c.bf16 %v2652_v49, %v2651_v34 }
 0x517   :  { %v2366_v41 = vpop.f32.mrf.mxu3 }
 0x518   :  { %v2367_v54 = vadd.f32 %v2366_v41, %v2238_v63  ;;  %2808 = vmatmul.bf16.gmra.mxu1 %v2696_v44 }
 0x519   :  { %v2545_v48 = vpop.f32.mrf.mxu0 }
 0x51a   :  { %v2436_v38 = vpack.c.bf16 %v2367_v54, %v2365_v28  ;;  %v2546_v20 = vadd.f32 %v6934_v46, %v2545_v48  ;;  %v2252_v41 = vpop.f32.mrf.mxu2  ;;  %v2112_v54 = vadd.f32 %v6894_v16, %v8089_v45  ;;  %v2114_v28 = vadd.f32 %v6898_v24, %v8090_v33 }
 0x51c   :  { %2408 = vmatmul.bf16.gmra.mxu3 %v8293_v5  ;;  %2584 = vmatmul.bf16.gmra.mxu0 %v2436_v38  ;;  %v2653_v0 = vmax.f32 %v2546_v20, 0.0  ;;  %v2241_v34 = vadd.f32 %v6949_v61, %v2112_v54  ;;  %v2243_v49 = vadd.f32 %v2242_v57, %v2114_v28  ;;  %v6997_v5 = vpop.f32.mrf.mxu1  ;;  %v8296_v57 = vld [vmem:[#allocation113_spill] sm:$0xff] }
 0x51d   :  { %v8092_v54 = vunpack.c.l.bf16 %v8296_v57 }
 0x51f   :  { %v2369_v3 = vpop.f32.mrf.mxu3 }
 0x520   :  { %v2370_v44 = vadd.f32 %v2369_v3, %v2241_v34 }
 0x521   :  { %v2547_v51 = vpop.f32.mrf.mxu0 }
 0x522   :  { %v2548_v52 = vadd.f32 %v6934_v46, %v2547_v51  ;;  %v2255_v16 = vpop.f32.mrf.mxu2 }
 0x524   :  { %v2654_v48 = vmax.f32 %v2548_v52, 0.0  ;;  %v8295_v52 = vld [vmem:[#allocation115_spill] sm:$0xff]  ;;  %v7010_v34 = vpop.f32.mrf.mxu1 }
 0x525   :  { %v8091_v61 = vunpack.c.l.bf16 %v8295_v52 }
 0x526   :  { %v2697_v56 = vpack.c.bf16 %v2654_v48, %v2653_v0  ;;  %v2119_v0 = vadd.f32 %v6908_v23, %v8092_v54 }
 0x527   :  { %v2371_v63 = vpop.f32.mrf.mxu3  ;;  %v2117_v28 = vadd.f32 %v6904_v50, %v8091_v61  ;;  %v8297_v50 = vld [vmem:[#allocation58_spill] sm:$0xff] }
 0x528   :  { %v2372_v38 = vadd.f32 %v2371_v63, %v2243_v49  ;;  %2813 = vmatmul.bf16.gmra.mxu1 %v2697_v56  ;;  %v2248_v56 = vadd.f32 %v2247_v17, %v2119_v0 }
 0x529   :  { %v2550_v51 = vpop.f32.mrf.mxu0  ;;  %v2246_v49 = vadd.f32 %v6961_v12, %v2117_v28  ;;  %v8298_v12 = vld [vmem:[#allocation112_spill] sm:$0xff]  ;;  %v8299_v28 = vld [vmem:[#allocation114_spill] sm:$0xff] }
 0x52a   :  { %v2437_v21 = vpack.c.bf16 %v2372_v38, %v2370_v44  ;;  %v2551_v24 = vadd.f32 %v6934_v46, %v2550_v51  ;;  %v2257_v44 = vpop.f32.mrf.mxu2  ;;  %v8095_v17 = vunpack.c.l.bf16 %v8298_v12  ;;  %v8097_v0 = vunpack.c.l.bf16 %v8299_v28 }
 0x52c   :  { %2413 = vmatmul.bf16.gmra.mxu3 %v8294_v2  ;;  %2589 = vmatmul.bf16.gmra.mxu0 %v2437_v21  ;;  %v2655_v21 = vmax.f32 %v2551_v24, 0.0  ;;  %v7014_v61 = vpop.f32.mrf.mxu1 }
 0x52f   :  { %v2374_v45 = vpop.f32.mrf.mxu3 }
 0x530   :  { %v2375_v51 = vadd.f32 %v2374_v45, %v2246_v49 }
 0x531   :  { %v2552_v20 = vpop.f32.mrf.mxu0 }
 0x532   :  { %v2553_v3 = vadd.f32 %v6934_v46, %v2552_v20 }
 0x534   :  { %v2656_v48 = vmax.f32 %v2553_v3, 0.0  ;;  %v2260_v3 = vpop.f32.mrf.mxu2 }
 0x536   :  { %v2698_v63 = vpack.c.bf16 %v2656_v48, %v2655_v21  ;;  %v2122_v21 = vadd.f32 %v6912_v59, %v8095_v17 }
 0x537   :  { %v2376_v38 = vpop.f32.mrf.mxu3 }
 0x538   :  { %v2377_v20 = vadd.f32 %v2376_v38, %v2248_v56  ;;  %2818 = vmatmul.bf16.gmra.mxu1 %v2698_v63 }
 0x539   :  { %v2555_v33 = vpop.f32.mrf.mxu0 }
 0x53a   :  { %v2438_v2 = vpack.c.bf16 %v2377_v20, %v2375_v51  ;;  %v2556_v24 = vadd.f32 %v6934_v46, %v2555_v33  ;;  %v2251_v33 = vadd.f32 %v6981_v8, %v2122_v21  ;;  %v8098_v8 = vunpack.c.l.bf16 %v6672_v15 }
 0x53c   :  { %2418 = vmatmul.bf16.gmra.mxu3 %v8297_v50  ;;  %2594 = vmatmul.bf16.gmra.mxu0 %v2438_v2  ;;  %v2124_v2 = vadd.f32 %v6918_v25, %v8097_v0  ;;  %v2657_v48 = vmax.f32 %v2556_v24, 0.0  ;;  %v7027_v50 = vpop.f32.mrf.mxu1  ;;  %v2262_v18 = vpop.f32.mrf.mxu2  ;;  %v8096_v24 = vunpack.c.l.bf16 %v6675_v11 }
 0x53e   :  { %v2253_v56 = vadd.f32 %v2252_v41, %v2124_v2 }
 0x53f   :  { %v2379_v23 = vpop.f32.mrf.mxu3 }
 0x540   :  { %v2380_v51 = vadd.f32 %v2379_v23, %v2251_v33  ;;  %v2127_v23 = vadd.f32 %v6920_v19, %v8096_v24 }
 0x541   :  { %v2557_v54 = vpop.f32.mrf.mxu0 }
 0x542   :  { %v2558_v45 = vadd.f32 %v6934_v46, %v2557_v54 }
 0x544   :  { %v2658_v49 = vmax.f32 %v2558_v45, 0.0  ;;  %v7033_v45 = vpop.f32.mrf.mxu1 }
 0x546   :  { %v2699_v63 = vpack.c.bf16 %v2658_v49, %v2657_v48  ;;  %v2265_v48 = vpop.f32.mrf.mxu2  ;;  %v2256_v49 = vadd.f32 %v2255_v16, %v2127_v23  ;;  %v8100_v16 = vunpack.c.l.bf16 %v6664_v6 }
 0x547   :  { %v2381_v38 = vpop.f32.mrf.mxu3 }
 0x548   :  { %v2382_v20 = vadd.f32 %v2381_v38, %v2253_v56  ;;  %2823 = vmatmul.bf16.gmra.mxu1 %v2699_v63 }
 0x549   :  { %v2560_v54 = vpop.f32.mrf.mxu0 }
 0x54a   :  { %v2439_v37 = vpack.c.bf16 %v2382_v20, %v2380_v51  ;;  %v2561_v17 = vadd.f32 %v6934_v46, %v2560_v54 }
 0x54c   :  { %2599 = vmatmul.bf16.gmra.mxu0 %v2439_v37  ;;  %v2129_v37 = vadd.f32 %v6925_v14, %v8098_v8  ;;  %v2659_v21 = vmax.f32 %v2561_v17, 0.0  ;;  %v8099_v17 = vunpack.c.l.bf16 %v6669_v32 }
 0x54e   :  { %v2258_v33 = vadd.f32 %v2257_v44, %v2129_v37  ;;  %v2267_v19 = vpop.f32.mrf.mxu2 }
 0x54f   :  { %v2384_v59 = vpop.f32.mrf.mxu3 }
 0x550   :  { %v2385_v38 = vadd.f32 %v2384_v59, %v2256_v49  ;;  %v2132_v59 = vadd.f32 %v6929_v22, %v8099_v17 }
 0x551   :  { %v2562_v25 = vpop.f32.mrf.mxu0 }
 0x552   :  { %v2563_v41 = vadd.f32 %v6934_v46, %v2562_v25  ;;  %v7041_v25 = vpop.f32.mrf.mxu1 }
 0x554   :  { %v2660_v2 = vmax.f32 %v2563_v41, 0.0  ;;  %v2134_v41 = vadd.f32 %v6941_v26, %v8100_v16 }
 0x556   :  { %v2700_v56 = vpack.c.bf16 %v2660_v2, %v2659_v21  ;;  %v2261_v2 = vadd.f32 %v2260_v3, %v2132_v59  ;;  %v2263_v49 = vadd.f32 %v2262_v18, %v2134_v41  ;;  %v2270_v22 = vpop.f32.mrf.mxu2  ;;  %v8300_v3 = vunpack.c.l.bf16 %v6362_v43 }
 0x557   :  { %v2386_v63 = vpop.f32.mrf.mxu3  ;;  %v8301_v41 = vunpack.c.l.bf16 %v6364_v36 }
 0x558   :  { %v2387_v51 = vadd.f32 %v2386_v63, %v2258_v33  ;;  %2828 = vmatmul.bf16.gmra.mxu1 %v2700_v56  ;;  %v7056_v33 = vld [vmem:[%s7884_s9] ss:$0 sm:$0xff] }
 0x559   :  { %v2565_v20 = vpop.f32.mrf.mxu0 }
 0x55a   :  { %v2440_v54 = vpack.c.bf16 %v2387_v51, %v2385_v38  ;;  %v2566_v0 = vadd.f32 %v6934_v46, %v2565_v20 }
 0x55c   :  { %2604 = vmatmul.bf16.gmra.mxu0 %v2440_v54  ;;  %v2661_v23 = vmax.f32 %v2566_v0, 0.0 }
 0x55f   :  { %v2389_v24 = vpop.f32.mrf.mxu3 }
 0x560   :  { %v2390_v38 = vadd.f32 %v2389_v24, %v2261_v2  ;;  %v8102_v2 = vunpack.c.l.bf16 %v6654_v62 }
 0x561   :  { %v2567_v14 = vpop.f32.mrf.mxu0 }
 0x562   :  { %v2568_v44 = vadd.f32 %v6934_v46, %v2567_v14 }
 0x564   :  { %v2662_v37 = vmax.f32 %v2568_v44, 0.0 }
 0x565   :  { %v2794_v21 = vpop.f32.mrf.mxu1 }
 0x566   :  { %v2701_v56 = vpack.c.bf16 %v2662_v37, %v2661_v23  ;;  %v2795_v54 = vadd.f32 %v7056_v33, %v2794_v21  ;;  %v8101_v23 = vunpack.c.l.bf16 %v6659_v27 }
 0x567   :  { %v2391_v63 = vpop.f32.mrf.mxu3 }
 0x568   :  { %v2392_v51 = vadd.f32 %v2391_v63, %v2263_v49  ;;  %2833 = vmatmul.bf16.gmra.mxu1 %v2701_v56  ;;  %v2914_v18 = vadd.f32 %v2795_v54, %v8300_v3  ;;  %v2137_v43 = vadd.f32 %v6946_v53, %v8101_v23  ;;  %v2272_v63 = vpop.f32.mrf.mxu2 }
 0x569   :  { %v2570_v20 = vpop.f32.mrf.mxu0 }
 0x56a   :  { %v2441_v26 = vpack.c.bf16 %v2392_v51, %v2390_v38  ;;  %v2571_v59 = vadd.f32 %v6934_v46, %v2570_v20  ;;  %v2962_v21 = vmax.f32 %v2914_v18, 0.0  ;;  %v2139_v38 = vadd.f32 %v6954_v1, %v8102_v2 }
 0x56b   :  { %v8302_v1 = vunpack.c.l.bf16 %v6378_v55 }
 0x56c   :  { %2609 = vmatmul.bf16.gmra.mxu0 %v2441_v26  ;;  %v2663_v36 = vmax.f32 %v2571_v59, 0.0  ;;  %v2266_v26 = vadd.f32 %v2265_v48, %v2137_v43 }
 0x56d   :  { %v2796_v0 = vpop.f32.mrf.mxu1 }
 0x56e   :  { %v2797_v14 = vadd.f32 %v7056_v33, %v2796_v0  ;;  %v2268_v0 = vadd.f32 %v2267_v19, %v2139_v38  ;;  %v8303_v19 = vunpack.c.l.bf16 %v6380_v10  ;;  %v8104_v38 = vunpack.c.l.bf16 %v6644_v40 }
 0x56f   :  { %v2394_v44 = vpop.f32.mrf.mxu3 }
 0x570   :  { %v2915_v24 = vadd.f32 %v2797_v14, %v8301_v41  ;;  %v2395_v14 = vadd.f32 %v2394_v44, %v2266_v26  ;;  %v2275_v8 = vpop.f32.mrf.mxu2 }
 0x571   :  { %v2572_v37 = vpop.f32.mrf.mxu0 }
 0x572   :  { %v2963_v49 = vmax.f32 %v2915_v24, 0.0  ;;  %v2573_v56 = vadd.f32 %v6934_v46, %v2572_v37 }
 0x574   :  { %v2664_v51 = vmax.f32 %v2573_v56, 0.0  ;;  %v7074_v20 = vpack.c.bf16 %v2963_v49, %v2962_v21  ;;  %v8103_v56 = vunpack.c.l.bf16 %v6649_v39 }
 0x575   :  { %v2799_v54 = vpop.f32.mrf.mxu1 }
 0x576   :  { %v2702_v3 = vpack.c.bf16 %v2664_v51, %v2663_v36  ;;  %v2800_v53 = vadd.f32 %v7056_v33, %v2799_v54  ;;  %v2142_v55 = vadd.f32 %v6959_v47, %v8103_v56 }
 0x577   :  { %v2396_v18 = vpop.f32.mrf.mxu3 }
 0x578   :  { %v2397_v41 = vadd.f32 %v2396_v18, %v2268_v0  ;;  %2838 = vmatmul.bf16.gmra.mxu1 %v2702_v3  ;;  %v2916_v59 = vadd.f32 %v2800_v53, %v8302_v1  ;;  %v2271_v18 = vadd.f32 %v2270_v22, %v2142_v55  ;;  %v8106_v55 = vunpack.c.l.bf16 %v6632_v7 }
 0x579   :  { %v2575_v24 = vpop.f32.mrf.mxu0 }
 0x57a   :  { %v2442_v37 = vpack.c.bf16 %v2397_v41, %v2395_v14  ;;  %v2576_v48 = vadd.f32 %v6934_v46, %v2575_v24  ;;  %v2964_v36 = vmax.f32 %v2916_v59, 0.0  ;;  %v2277_v24 = vpop.f32.mrf.mxu2 }
 0x57c   :  { %2614 = vmatmul.bf16.gmra.mxu0 %v2442_v37  ;;  %v2665_v26 = vmax.f32 %v2576_v48, 0.0 }
 0x57d   :  { %v2801_v17 = vpop.f32.mrf.mxu1 }
 0x57e   :  { %v2802_v21 = vadd.f32 %v7056_v33, %v2801_v17  ;;  %v2144_v17 = vadd.f32 %v6966_v13, %v8104_v38  ;;  %v8304_v13 = vunpack.c.l.bf16 %v6394_v60 }
 0x57f   :  { %v2399_v49 = vpop.f32.mrf.mxu3 }
 0x580   :  { %v2917_v44 = vadd.f32 %v2802_v21, %v8303_v19  ;;  %v2273_v14 = vadd.f32 %v2272_v63, %v2144_v17  ;;  %v2400_v37 = vadd.f32 %v2399_v49, %v2271_v18  ;;  %v8305_v63 = vunpack.c.l.bf16 %v6396_v29 }
 0x581   :  { %v2577_v43 = vpop.f32.mrf.mxu0  ;;  %v8105_v49 = vunpack.c.l.bf16 %v6639_v58 }
 0x582   :  { %v2965_v51 = vmax.f32 %v2917_v44, 0.0  ;;  %v2578_v54 = vadd.f32 %v6934_v46, %v2577_v43 }
 0x583   :  { %v2147_v60 = vadd.f32 %v6979_v42, %v8105_v49 }
 0x584   :  { %v2666_v10 = vmax.f32 %v2578_v54, 0.0  ;;  %v7092_v0 = vpack.c.bf16 %v2965_v51, %v2964_v36  ;;  %v2280_v51 = vpop.f32.mrf.mxu2 }
 0x585   :  { %v2804_v3 = vpop.f32.mrf.mxu1 }
 0x586   :  { %v2703_v41 = vpack.c.bf16 %v2666_v10, %v2665_v26  ;;  %v2805_v47 = vadd.f32 %v7056_v33, %v2804_v3  ;;  %v2149_v3 = vadd.f32 %v6985_v35, %v8106_v55  ;;  %v8306_v35 = vunpack.c.l.bf16 %v6410_v31 }
 0x587   :  { %v2401_v53 = vpop.f32.mrf.mxu3 }
 0x588   :  { %v2402_v1 = vadd.f32 %v2401_v53, %v2273_v14  ;;  %2843 = vmatmul.bf16.gmra.mxu1 %v2703_v41  ;;  %v2918_v48 = vadd.f32 %v2805_v47, %v8304_v13  ;;  %v2276_v53 = vadd.f32 %v2275_v8, %v2147_v60 }
 0x589   :  { %v2580_v59 = vpop.f32.mrf.mxu0 }
 0x58a   :  { %v2443_v21 = vpack.c.bf16 %v2402_v1, %v2400_v37  ;;  %v2581_v22 = vadd.f32 %v6934_v46, %v2580_v59  ;;  %v2966_v17 = vmax.f32 %v2918_v48, 0.0  ;;  %v2278_v37 = vadd.f32 %v2277_v24, %v2149_v3 }
 0x58b   :  { %v8307_v24 = vunpack.c.l.bf16 %v8255_v4 }
 0x58c   :  { %2619 = vmatmul.bf16.gmra.mxu0 %v2443_v21  ;;  %v2667_v29 = vmax.f32 %v2581_v22, 0.0  ;;  %v2282_v48 = vpop.f32.mrf.mxu2 }
 0x58d   :  { %v2806_v19 = vpop.f32.mrf.mxu1 }
 0x58e   :  { %v2807_v44 = vadd.f32 %v7056_v33, %v2806_v19 }
 0x58f   :  { %v2404_v43 = vpop.f32.mrf.mxu3 }
 0x590   :  { %v2919_v36 = vadd.f32 %v2807_v44, %v8305_v63  ;;  %v2405_v47 = vadd.f32 %v2404_v43, %v2276_v53 }
 0x591   :  { %v2582_v54 = vpop.f32.mrf.mxu0 }
 0x592   :  { %v2967_v26 = vmax.f32 %v2919_v36, 0.0  ;;  %v2583_v10 = vadd.f32 %v6934_v46, %v2582_v54  ;;  %v8308_v54 = vld [vmem:[#allocation125_spill] sm:$0xff] }
 0x594   :  { %v2668_v18 = vmax.f32 %v2583_v10, 0.0  ;;  %v7110_v14 = vpack.c.bf16 %v2967_v26, %v2966_v17  ;;  %v8107_v17 = vunpack.c.l.bf16 %v8308_v54  ;;  %v8309_v10 = vld [vmem:[#allocation124_spill] sm:$0xff] }
 0x595   :  { %v2809_v41 = vpop.f32.mrf.mxu1  ;;  %v8108_v60 = vunpack.c.l.bf16 %v8309_v10 }
 0x596   :  { %v2704_v1 = vpack.c.bf16 %v2668_v18, %v2667_v29  ;;  %v2810_v13 = vadd.f32 %v7056_v33, %v2809_v41  ;;  %v2152_v31 = vadd.f32 %v6997_v5, %v8107_v17  ;;  %v8379_v17 = vld [vmem:[#allocation70_spill] sm:$0xff] }
 0x597   :  { %v2406_v59 = vpop.f32.mrf.mxu3  ;;  %v2154_v41 = vadd.f32 %v7010_v34, %v8108_v60 }
 0x598   :  { %v2407_v21 = vadd.f32 %v2406_v59, %v2278_v37  ;;  %2848 = vmatmul.bf16.gmra.mxu1 %v2704_v1  ;;  %v2920_v22 = vadd.f32 %v2810_v13, %v8306_v35  ;;  %v2285_v1 = vpop.f32.mrf.mxu2 }
 0x599   :  { %v2585_v19 = vpop.f32.mrf.mxu0 }
 0x59a   :  { %v2444_v42 = vpack.c.bf16 %v2407_v21, %v2405_v47  ;;  %v2586_v8 = vadd.f32 %v6934_v46, %v2585_v19  ;;  %v2968_v3 = vmax.f32 %v2920_v22, 0.0  ;;  %v2281_v47 = vadd.f32 %v2280_v51, %v2152_v31 }
 0x59b   :  { %v2283_v21 = vadd.f32 %v2282_v48, %v2154_v41 }
 0x59c   :  { %2624 = vmatmul.bf16.gmra.mxu0 %v2444_v42  ;;  %v2669_v53 = vmax.f32 %v2586_v8, 0.0 }
 0x59d   :  { %v2811_v44 = vpop.f32.mrf.mxu1 }
 0x59e   :  { %v2812_v63 = vadd.f32 %v7056_v33, %v2811_v44 }
 0x59f   :  { %v2409_v36 = vpop.f32.mrf.mxu3 }
 0x5a0   :  { %v2921_v43 = vadd.f32 %v2812_v63, %v8307_v24  ;;  %v2410_v42 = vadd.f32 %v2409_v36, %v2281_v47  ;;  %v2287_v34 = vpop.f32.mrf.mxu2 }
 0x5a1   :  { %v2587_v26 = vpop.f32.mrf.mxu0 }
 0x5a2   :  { %v2969_v29 = vmax.f32 %v2921_v43, 0.0  ;;  %v2588_v18 = vadd.f32 %v6934_v46, %v2587_v26  ;;  %v8310_v43 = vld [vmem:[#allocation123_spill] sm:$0xff] }
 0x5a3   :  { %v8109_v26 = vunpack.c.l.bf16 %v8310_v43 }
 0x5a4   :  { %v2670_v4 = vmax.f32 %v2588_v18, 0.0  ;;  %v7128_v37 = vpack.c.bf16 %v2969_v29, %v2968_v3  ;;  %v8311_v3 = vld [vmem:[#allocation121_spill] sm:$0xff] }
 0x5a5   :  { %v7130_v59 = vpop.f32.mrf.mxu1  ;;  %v8111_v51 = vunpack.c.l.bf16 %v8311_v3  ;;  %v2157_v36 = vadd.f32 %v7014_v61, %v8109_v26 }
 0x5a6   :  { %v2705_v19 = vpack.c.bf16 %v2670_v4, %v2669_v53 }
 0x5a7   :  { %v2411_v13 = vpop.f32.mrf.mxu3  ;;  %v2159_v29 = vadd.f32 %v7027_v50, %v8111_v51  ;;  %v2286_v53 = vadd.f32 %v2285_v1, %v2157_v36  ;;  %v8312_v50 = vld [vmem:[#allocation120_spill] sm:$0xff] }
 0x5a8   :  { %v2412_v44 = vadd.f32 %v2411_v13, %v2283_v21  ;;  %2853 = vmatmul.bf16.gmra.mxu1 %v2705_v19 }
 0x5a9   :  { %v2590_v35 = vpop.f32.mrf.mxu0  ;;  %v2288_v4 = vadd.f32 %v2287_v34, %v2159_v29 }
 0x5aa   :  { %v2445_v5 = vpack.c.bf16 %v2412_v44, %v2410_v42  ;;  %v2591_v8 = vadd.f32 %v6934_v46, %v2590_v35  ;;  %v2290_v42 = vpop.f32.mrf.mxu2 }
 0x5ac   :  { %2629 = vmatmul.bf16.gmra.mxu0 %v2445_v5  ;;  %v2671_v18 = vmax.f32 %v2591_v8, 0.0  ;;  %v8112_v8 = vunpack.c.l.bf16 %v8312_v50 }
 0x5ad   :  { %v7132_v22 = vpop.f32.mrf.mxu1 }
 0x5af   :  { %v2414_v63 = vpop.f32.mrf.mxu3 }
 0x5b0   :  { %v2415_v19 = vadd.f32 %v2414_v63, %v2286_v53  ;;  %v2162_v63 = vadd.f32 %v7033_v45, %v8112_v8 }
 0x5b1   :  { %v2592_v24 = vpop.f32.mrf.mxu0 }
 0x5b2   :  { %v2593_v48 = vadd.f32 %v6934_v46, %v2592_v24  ;;  %v2292_v34 = vpop.f32.mrf.mxu2  ;;  %v2291_v53 = vadd.f32 %v2290_v42, %v2162_v63 }
 0x5b4   :  { %v2672_v31 = vmax.f32 %v2593_v48, 0.0  ;;  %v8313_v48 = vld [vmem:[#allocation122_spill] sm:$0xff] }
 0x5b5   :  { %v2819_v41 = vpop.f32.mrf.mxu1  ;;  %v8110_v23 = vunpack.c.l.bf16 %v8313_v48 }
 0x5b6   :  { %v2706_v47 = vpack.c.bf16 %v2672_v31, %v2671_v18 }
 0x5b7   :  { %v2416_v21 = vpop.f32.mrf.mxu3  ;;  %v2164_v36 = vadd.f32 %v7041_v25, %v8110_v23 }
 0x5b8   :  { %v2417_v13 = vadd.f32 %v2416_v21, %v2288_v4  ;;  %2858 = vmatmul.bf16.gmra.mxu1 %v2706_v47 }
 0x5b9   :  { %v2595_v44 = vpop.f32.mrf.mxu0  ;;  %v2293_v4 = vadd.f32 %v2292_v34, %v2164_v36 }
 0x5ba   :  { %v2446_v35 = vpack.c.bf16 %v2417_v13, %v2415_v19  ;;  %v2596_v24 = vadd.f32 %v6934_v46, %v2595_v44 }
 0x5bc   :  { %2634 = vmatmul.bf16.gmra.mxu0 %v2446_v35  ;;  %v2673_v29 = vmax.f32 %v2596_v24, 0.0 }
 0x5bd   :  { %v2821_v5 = vpop.f32.mrf.mxu1 }
 0x5bf   :  { %v2419_v61 = vpop.f32.mrf.mxu3 }
 0x5c0   :  { %v2420_v19 = vadd.f32 %v2419_v61, %v2291_v53 }
 0x5c1   :  { %v2597_v16 = vpop.f32.mrf.mxu0 }
 0x5c2   :  { %v2598_v1 = vadd.f32 %v6934_v46, %v2597_v16 }
 0x5c4   :  { %v2674_v18 = vmax.f32 %v2598_v1, 0.0 }
 0x5c5   :  { %v2824_v31 = vpop.f32.mrf.mxu1 }
 0x5c6   :  { %v2707_v47 = vpack.c.bf16 %v2674_v18, %v2673_v29  ;;  %v2825_v36 = vadd.f32 %v7056_v33, %v2824_v31  ;;  %v8314_v29 = vunpack.c.l.bf16 %v6434_v30 }
 0x5c7   :  { %v2421_v21 = vpop.f32.mrf.mxu3 }
 0x5c8   :  { %v2422_v13 = vadd.f32 %v2421_v21, %v2293_v4  ;;  %2863 = vmatmul.bf16.gmra.mxu1 %v2707_v47  ;;  %v8315_v4 = vld [vmem:[#allocation98_spill] sm:$0xff]  ;;  %v8317_v21 = vld [vmem:[#allocation99_spill] sm:$0xff] }
 0x5c9   :  { %v2600_v16 = vpop.f32.mrf.mxu0 }
 0x5ca   :  { %v2447_v44 = vpack.c.bf16 %v2422_v13, %v2420_v19  ;;  %v2601_v45 = vadd.f32 %v6934_v46, %v2600_v16  ;;  %v8318_v19 = vunpack.c.l.bf16 %v8317_v21  ;;  %v2820_v16 = vadd.f32 %v7056_v33, %v2819_v41 }
 0x5cc   :  { %2639 = vmatmul.bf16.gmra.mxu0 %v2447_v44  ;;  %v2675_v25 = vmax.f32 %v2601_v45, 0.0 }
 0x5cd   :  { %v2826_v35 = vpop.f32.mrf.mxu1 }
 0x5ce   :  { %v2827_v61 = vadd.f32 %v7056_v33, %v2826_v35  ;;  %v8319_v35 = vld [vmem:[#allocation100_spill] sm:$0xff] }
 0x5cf   :  { %v8320_v31 = vunpack.c.l.bf16 %v8319_v35  ;;  %v8327_v35 = vld [vmem:[#allocation104_spill] sm:$0xff] }
 0x5d1   :  { %v2602_v2 = vpop.f32.mrf.mxu0  ;;  %v2926_v45 = vadd.f32 %v2825_v36, %v8320_v31  ;;  %v8323_v36 = vld [vmem:[#allocation102_spill] sm:$0xff]  ;;  %v8328_v31 = vunpack.c.l.bf16 %v8327_v35 }
 0x5d2   :  { %v2603_v56 = vadd.f32 %v6934_v46, %v2602_v2  ;;  %v2822_v2 = vadd.f32 %v7056_v33, %v2821_v5  ;;  %v2817_v5 = vadd.f32 %v7056_v33, %v7132_v22  ;;  %v8325_v22 = vld [vmem:[#allocation103_spill] sm:$0xff] }
 0x5d3   :  { %v2974_v21 = vmax.f32 %v2926_v45, 0.0 }
 0x5d4   :  { %v2676_v24 = vmax.f32 %v2603_v56, 0.0  ;;  %v8316_v56 = vunpack.c.l.bf16 %v8315_v4  ;;  %v2815_v4 = vadd.f32 %v7056_v33, %v7130_v59 }
 0x5d5   :  { %v2829_v1 = vpop.f32.mrf.mxu1 }
 0x5d6   :  { %v2708_v38 = vpack.c.bf16 %v2676_v24, %v2675_v25  ;;  %v2830_v34 = vadd.f32 %v7056_v33, %v2829_v1  ;;  %v2927_v47 = vadd.f32 %v2827_v61, %v8316_v56  ;;  %v8321_v1 = vld [vmem:[#allocation101_spill] sm:$0xff] }
 0x5d8   :  { %2868 = vmatmul.bf16.gmra.mxu1 %v2708_v38  ;;  %v2928_v18 = vadd.f32 %v2830_v34, %v8314_v29  ;;  %v8322_v34 = vunpack.c.l.bf16 %v8321_v1 }
 0x5d9   :  { %v2605_v42 = vpop.f32.mrf.mxu0 }
 0x5da   :  { %v2606_v38 = vadd.f32 %v6934_v46, %v2605_v42  ;;  %v2976_v30 = vmax.f32 %v2928_v18, 0.0  ;;  %v2925_v61 = vadd.f32 %v2822_v2, %v8322_v34  ;;  %v2975_v42 = vmax.f32 %v2927_v47, 0.0  ;;  %v8329_v34 = vld [vmem:[#allocation105_spill] sm:$0xff] }
 0x5db   :  { %v8324_v18 = vunpack.c.l.bf16 %v8323_v36 }
 0x5dc   :  { %v2973_v2 = vmax.f32 %v2925_v61, 0.0  ;;  %v7185_v47 = vpack.c.bf16 %v2975_v42, %v2974_v21 }
 0x5dd   :  { %v2831_v63 = vpop.f32.mrf.mxu1  ;;  %v2924_v56 = vadd.f32 %v2820_v16, %v8324_v18 }
 0x5de   :  { %v2832_v53 = vadd.f32 %v7056_v33, %v2831_v63  ;;  %v2677_v63 = vmax.f32 %v2606_v38, 0.0 }
 0x5e0   :  { %v2929_v13 = vadd.f32 %v2832_v53, %v8318_v19 }
 0x5e1   :  { %v2607_v44 = vpop.f32.mrf.mxu0 }
 0x5e2   :  { %v2977_v25 = vmax.f32 %v2929_v13, 0.0  ;;  %v2608_v24 = vadd.f32 %v6934_v46, %v2607_v44  ;;  %v8326_v13 = vunpack.c.l.bf16 %v8325_v22 }
 0x5e4   :  { %v7176_v29 = vpack.c.bf16 %v2977_v25, %v2976_v30  ;;  %v2678_v53 = vmax.f32 %v2608_v24, 0.0  ;;  %v2923_v44 = vadd.f32 %v2817_v5, %v8326_v13  ;;  %v2922_v30 = vadd.f32 %v2815_v4, %v8328_v31  ;;  %v8333_v31 = vld [vmem:[#allocation106_spill] sm:$0xff] }
 0x5e5   :  { %v2834_v41 = vpop.f32.mrf.mxu1  ;;  %v2972_v25 = vmax.f32 %v2924_v56, 0.0  ;;  %v8330_v5 = vunpack.c.l.bf16 %v8329_v34 }
 0x5e6   :  { %3082 = vmatpush.bf16.msra.mxu2 %v7176_v29  ;;  %v2709_v19 = vpack.c.bf16 %v2678_v53, %v2677_v63  ;;  %v2835_v59 = vadd.f32 %v7056_v33, %v2834_v41  ;;  %v2971_v16 = vmax.f32 %v2923_v44, 0.0  ;;  %v2970_v1 = vmax.f32 %v2922_v30, 0.0 }
 0x5e7   :  { %v7191_v45 = vpack.c.bf16 %v2973_v2, %v2972_v25  ;;  %v8331_v53 = vunpack.c.l.bf16 %v6466_v9  ;;  %v8334_v30 = vunpack.c.l.bf16 %v8333_v31 }
 0x5e8   :  { %2873 = vmatmul.bf16.gmra.mxu1 %v2709_v19  ;;  %v2930_v61 = vadd.f32 %v2835_v59, %v8330_v5  ;;  %v7200_v41 = vpack.c.bf16 %v2971_v16, %v2970_v1 }
 0x5e9   :  { %v2610_v38 = vpop.f32.mrf.mxu0 }
 0x5ea   :  { %3083 = vmatpush.bf16.msra.mxu2 %v7185_v47  ;;  %v2611_v63 = vadd.f32 %v6934_v46, %v2610_v38  ;;  %v2978_v18 = vmax.f32 %v2930_v61, 0.0 }
 0x5ec   :  { %v2679_v19 = vmax.f32 %v2611_v63, 0.0 }
 0x5ed   :  { %v2836_v24 = vpop.f32.mrf.mxu1 }
 0x5ee   :  { %v2837_v42 = vadd.f32 %v7056_v33, %v2836_v24  ;;  %3084 = vmatpush.bf16.msra.mxu2 %v7191_v45  ;;  %v8335_v24 = vld [vmem:[#allocation107_spill] sm:$0xff] }
 0x5ef   :  { %v8336_v1 = vunpack.c.l.bf16 %v8335_v24 }
 0x5f0   :  { %v2931_v4 = vadd.f32 %v2837_v42, %v8331_v53 }
 0x5f1   :  { %v2612_v36 = vpop.f32.mrf.mxu0 }
 0x5f2   :  { %v2979_v56 = vmax.f32 %v2931_v4, 0.0  ;;  %v2613_v21 = vadd.f32 %v6934_v46, %v2612_v36  ;;  %3085 = vmatpush.bf16.msra.mxu2 %v7200_v41 }
 0x5f4   :  { %v2680_v22 = vmax.f32 %v2613_v21, 0.0  ;;  %v7204_v13 = vpack.c.bf16 %v2979_v56, %v2978_v18  ;;  %v8338_v56 = vld [vmem:[#allocation25_spill] sm:$0xff] }
 0x5f5   :  { %v2839_v44 = vpop.f32.mrf.mxu1 }
 0x5f6   :  { %8332 = vst [vmem:[#allocation97_spill] sm:$0xff] %v7204_v13  ;;  %3086 = vmatpush.bf16.msra.mxu2 %v7128_v37  ;;  %v2710_v2 = vpack.c.bf16 %v2680_v22, %v2679_v19  ;;  %v2840_v38 = vadd.f32 %v7056_v33, %v2839_v44 }
 0x5f8   :  { %2878 = vmatmul.bf16.gmra.mxu1 %v2710_v2  ;;  %v2932_v25 = vadd.f32 %v2840_v38, %v8334_v30  ;;  %v8339_v2 = vld [vmem:[#allocation108_spill] sm:$0xff]  ;;  %v8341_v30 = vld [vmem:[#allocation109_spill] sm:$0xff] }
 0x5f9   :  { %v2615_v9 = vpop.f32.mrf.mxu0 }
 0x5fa   :  { %3087 = vmatpush.bf16.msra.mxu2 %v7110_v14  ;;  %v2616_v16 = vadd.f32 %v6934_v46, %v2615_v9  ;;  %v2980_v61 = vmax.f32 %v2932_v25, 0.0  ;;  %v8340_v9 = vunpack.c.l.bf16 %v8339_v2  ;;  %v8342_v25 = vunpack.c.l.bf16 %v8341_v30 }
 0x5fc   :  { %v2681_v53 = vmax.f32 %v2616_v16, 0.0 }
 0x5fd   :  { %v2841_v35 = vpop.f32.mrf.mxu1 }
 0x5fe   :  { %v2842_v59 = vadd.f32 %v7056_v33, %v2841_v35  ;;  %3088 = vmatpush.bf16.msra.mxu2 %v7092_v0 }
 0x600   :  { %v2933_v34 = vadd.f32 %v2842_v59, %v8336_v1 }
 0x601   :  { %v2617_v5 = vpop.f32.mrf.mxu0 }
 0x602   :  { %v2981_v42 = vmax.f32 %v2933_v34, 0.0  ;;  %v2618_v63 = vadd.f32 %v6934_v46, %v2617_v5  ;;  %3089 = vmatpush.bf16.msra.mxu2 %v7074_v20 }
 0x604   :  { %v2682_v4 = vmax.f32 %v2618_v63, 0.0  ;;  %v7218_v36 = vpack.c.bf16 %v2981_v42, %v2980_v61 }
 0x605   :  { %v2844_v18 = vpop.f32.mrf.mxu1  ;;  %3090 = vmatmul.bf16.vlgmr.msra.gmra.mxu2 %v8338_v56 }
 0x606   :  { %8337 = vst [vmem:[#allocation115_spill] sm:$0xff] %v7218_v36  ;;  %v2711_v21 = vpack.c.bf16 %v2682_v4, %v2681_v53  ;;  %v2845_v22 = vadd.f32 %v7056_v33, %v2844_v18  ;;  %v8344_v53 = vld [vmem:[#allocation29_spill] sm:$0xff] }
 0x608   :  { %2883 = vmatmul.bf16.gmra.mxu1 %v2711_v21  ;;  %v2934_v38 = vadd.f32 %v2845_v22, %v8340_v9 }
 0x609   :  { %v2620_v19 = vpop.f32.mrf.mxu0 }
 0x60a   :  { %v2621_v31 = vadd.f32 %v6934_v46, %v2620_v19  ;;  %v2982_v24 = vmax.f32 %v2934_v38, 0.0  ;;  %v8345_v19 = vld [vmem:[#allocation110_spill] sm:$0xff]  ;;  %v8347_v38 = vld [vmem:[#allocation111_spill] sm:$0xff] }
 0x60b   :  { %v8346_v22 = vunpack.c.l.bf16 %v8345_v19 }
 0x60c   :  { %v2683_v5 = vmax.f32 %v2621_v31, 0.0 }
 0x60d   :  { %v2846_v44 = vpop.f32.mrf.mxu1 }
 0x60e   :  { %v2847_v35 = vadd.f32 %v7056_v33, %v2846_v44 }
 0x610   :  { %v2935_v59 = vadd.f32 %v2847_v35, %v8342_v25  ;;  %v8348_v35 = vunpack.c.l.bf16 %v8347_v38 }
 0x611   :  { %v2622_v16 = vpop.f32.mrf.mxu0 }
 0x612   :  { %v2983_v1 = vmax.f32 %v2935_v59, 0.0  ;;  %v2623_v34 = vadd.f32 %v6934_v46, %v2622_v16 }
 0x614   :  { %v2684_v61 = vmax.f32 %v2623_v34, 0.0  ;;  %v7229_v42 = vpack.c.bf16 %v2983_v1, %v2982_v24 }
 0x615   :  { %v2849_v63 = vpop.f32.mrf.mxu1  ;;  %3095 = vmatmul.bf16.gmra.mxu2 %v8344_v53 }
 0x616   :  { %8343 = vst [vmem:[#allocation113_spill] sm:$0xff] %v7229_v42  ;;  %v2712_v4 = vpack.c.bf16 %v2684_v61, %v2683_v5  ;;  %v2850_v56 = vadd.f32 %v7056_v33, %v2849_v63  ;;  %v8350_v61 = vld [vmem:[#allocation33_spill] sm:$0xff] }
 0x618   :  { %2888 = vmatmul.bf16.gmra.mxu1 %v2712_v4  ;;  %v2936_v44 = vadd.f32 %v2850_v56, %v8346_v22 }
 0x619   :  { %v2625_v18 = vpop.f32.mrf.mxu0 }
 0x61a   :  { %v2626_v9 = vadd.f32 %v6934_v46, %v2625_v18  ;;  %v2984_v25 = vmax.f32 %v2936_v44, 0.0 }
 0x61c   :  { %v2685_v24 = vmax.f32 %v2626_v9, 0.0 }
 0x61d   :  { %v2851_v21 = vpop.f32.mrf.mxu1 }
 0x61e   :  { %v2852_v2 = vadd.f32 %v7056_v33, %v2851_v21 }
 0x620   :  { %v2937_v31 = vadd.f32 %v2852_v2, %v8348_v35  ;;  %v8351_v2 = vld [vmem:[#allocation37_spill] sm:$0xff] }
 0x621   :  { %v2627_v30 = vpop.f32.mrf.mxu0 }
 0x622   :  { %v2985_v59 = vmax.f32 %v2937_v31, 0.0  ;;  %v2628_v16 = vadd.f32 %v6934_v46, %v2627_v30 }
 0x624   :  { %v2686_v1 = vmax.f32 %v2628_v16, 0.0  ;;  %v7240_v34 = vpack.c.bf16 %v2985_v59, %v2984_v25 }
 0x625   :  { %v2854_v5 = vpop.f32.mrf.mxu1  ;;  %3100 = vmatmul.bf16.gmra.mxu2 %v8350_v61 }
 0x626   :  { %8349 = vst [vmem:[#allocation112_spill] sm:$0xff] %v7240_v34  ;;  %v2713_v63 = vpack.c.bf16 %v2686_v1, %v2685_v24  ;;  %v8352_v1 = vld [vmem:[#allocation41_spill] sm:$0xff] }
 0x628   :  { %2893 = vmatmul.bf16.gmra.mxu1 %v2713_v63 }
 0x629   :  { %v2630_v53 = vpop.f32.mrf.mxu0 }
 0x62a   :  { %v2631_v18 = vadd.f32 %v6934_v46, %v2630_v53 }
 0x62c   :  { %v2687_v19 = vmax.f32 %v2631_v18, 0.0  ;;  %v5433_v18 = vld [vmem:[%s7882_s7] ss:$0 sm:$0xff] }
 0x62d   :  { %v2856_v4 = vpop.f32.mrf.mxu1 }
 0x631   :  { %v2632_v56 = vpop.f32.mrf.mxu0 }
 0x632   :  { %v2633_v21 = vadd.f32 %v6934_v46, %v2632_v56 }
 0x634   :  { %v2688_v22 = vmax.f32 %v2633_v21, 0.0 }
 0x635   :  { %v2859_v44 = vpop.f32.mrf.mxu1  ;;  %3105 = vmatmul.bf16.gmra.mxu2 %v8351_v2 }
 0x636   :  { %v2714_v9 = vpack.c.bf16 %v2688_v22, %v2687_v19 }
 0x638   :  { %2898 = vmatmul.bf16.gmra.mxu1 %v2714_v9 }
 0x639   :  { %v2635_v38 = vpop.f32.mrf.mxu0 }
 0x63a   :  { %v2636_v31 = vadd.f32 %v6934_v46, %v2635_v38 }
 0x63c   :  { %v2689_v59 = vmax.f32 %v2636_v31, 0.0 }
 0x63d   :  { %v2861_v35 = vpop.f32.mrf.mxu1 }
 0x641   :  { %v2637_v30 = vpop.f32.mrf.mxu0 }
 0x642   :  { %v2638_v25 = vadd.f32 %v6934_v46, %v2637_v30  ;;  %v8353_v46 = vld [vmem:[#allocation45_spill] sm:$0xff] }
 0x644   :  { %v2690_v16 = vmax.f32 %v2638_v25, 0.0 }
 0x645   :  { %v2864_v24 = vpop.f32.mrf.mxu1  ;;  %3110 = vmatmul.bf16.gmra.mxu2 %v8352_v1 }
 0x646   :  { %v2715_v61 = vpack.c.bf16 %v2690_v16, %v2689_v59  ;;  %v2865_v59 = vadd.f32 %v7056_v33, %v2864_v24  ;;  %v8354_v16 = vunpack.c.l.bf16 %v8298_v12  ;;  %v2857_v12 = vadd.f32 %v7056_v33, %v2856_v4 }
 0x648   :  { %2903 = vmatmul.bf16.gmra.mxu1 %v2715_v61 }
 0x649   :  { %v2640_v63 = vpop.f32.mrf.mxu0 }
 0x64a   :  { %v2641_v56 = vadd.f32 %v5433_v18, %v2640_v63  ;;  %v2862_v63 = vadd.f32 %v7056_v33, %v2861_v35 }
 0x64c   :  { %v2691_v22 = vmax.f32 %v2641_v56, 0.0 }
 0x64d   :  { %v2866_v53 = vpop.f32.mrf.mxu1 }
 0x64e   :  { %v2867_v30 = vadd.f32 %v7056_v33, %v2866_v53  ;;  %v8357_v53 = vunpack.c.l.bf16 %v8295_v52 }
 0x651   :  { %v2642_v21 = vpop.f32.mrf.mxu0 }
 0x652   :  { %v2643_v19 = vadd.f32 %v5433_v18, %v2642_v21  ;;  %v8355_v18 = vunpack.c.l.bf16 %v8296_v57  ;;  %v8356_v21 = vunpack.c.l.bf16 %v8299_v28  ;;  %v2855_v28 = vadd.f32 %v7056_v33, %v2854_v5 }
 0x654   :  { %v2692_v2 = vmax.f32 %v2643_v19, 0.0  ;;  %v2943_v56 = vadd.f32 %v2867_v30, %v8355_v18  ;;  %v8361_v30 = vld [vmem:[#allocation49_spill] sm:$0xff] }
 0x655   :  { %v2869_v9 = vpop.f32.mrf.mxu1  ;;  %3115 = vmatmul.bf16.gmra.mxu2 %v8353_v46  ;;  %v8358_v46 = vld [vmem:[#allocation116_spill] sm:$0xff] }
 0x656   :  { %v2716_v38 = vpack.c.bf16 %v2692_v2, %v2691_v22  ;;  %v2870_v31 = vadd.f32 %v7056_v33, %v2869_v9  ;;  %v2860_v22 = vadd.f32 %v7056_v33, %v2859_v44  ;;  %v2942_v2 = vadd.f32 %v2865_v59, %v8357_v53  ;;  %v8362_v44 = vld [vmem:[#allocation117_spill] sm:$0xff] }
 0x658   :  { %2908 = vmatmul.bf16.gmra.mxu1 %v2716_v38  ;;  %v2944_v1 = vadd.f32 %v2870_v31, %v8354_v16  ;;  %v8359_v38 = vunpack.c.l.bf16 %v8358_v46  ;;  %v8363_v16 = vunpack.c.l.bf16 %v8362_v44  ;;  %v2990_v59 = vmax.f32 %v2942_v2, 0.0  ;;  %v8370_v46 = vld [vmem:[#allocation53_spill] sm:$0xff] }
 0x65a   :  { %v2992_v9 = vmax.f32 %v2944_v1, 0.0  ;;  %v2941_v31 = vadd.f32 %v2862_v63, %v8359_v38  ;;  %v2940_v52 = vadd.f32 %v2860_v22, %v8363_v16  ;;  %v8364_v1 = vld [vmem:[#allocation118_spill] sm:$0xff] }
 0x65b   :  { %v8365_v4 = vunpack.c.l.bf16 %v8364_v1  ;;  %v8374_v1 = vld [vmem:[#allocation32_spill] sm:$0xff] }
 0x65c   :  { %v2989_v18 = vmax.f32 %v2941_v31, 0.0  ;;  %v2988_v53 = vmax.f32 %v2940_v52, 0.0 }
 0x65d   :  { %v2871_v25 = vpop.f32.mrf.mxu1 }
 0x65e   :  { %v2872_v61 = vadd.f32 %v7056_v33, %v2871_v25  ;;  %v2991_v25 = vmax.f32 %v2943_v56, 0.0  ;;  %v8367_v56 = vld [vmem:[#allocation119_spill] sm:$0xff]  ;;  %v7286_v5 = vpack.c.bf16 %v2989_v18, %v2988_v53 }
 0x660   :  { %v2945_v19 = vadd.f32 %v2872_v61, %v8356_v21  ;;  %v2939_v61 = vadd.f32 %v2857_v12, %v8365_v4  ;;  %v7281_v63 = vpack.c.bf16 %v2991_v25, %v2990_v59  ;;  %v8368_v21 = vunpack.c.l.bf16 %v8367_v56  ;;  %8369 = vst [vmem:[#allocation124_spill] sm:$0xff] %v7286_v5  ;;  %v8371_v25 = vld [vmem:[#allocation57_spill] sm:$0xff] }
 0x661   :  { %v8373_v59 = vld [vmem:[#allocation61_spill] sm:$0xff] }
 0x662   :  { %v2993_v24 = vmax.f32 %v2945_v19, 0.0  ;;  %8366 = vst [vmem:[#allocation125_spill] sm:$0xff] %v7281_v63  ;;  %v2938_v19 = vadd.f32 %v2855_v28, %v8368_v21  ;;  %v8375_v21 = vld [vmem:[#allocation64_spill] sm:$0xff] }
 0x664   :  { %v7270_v35 = vpack.c.bf16 %v2993_v24, %v2992_v9  ;;  %v2987_v9 = vmax.f32 %v2939_v61, 0.0  ;;  %v2986_v22 = vmax.f32 %v2938_v19, 0.0  ;;  %v8376_v19 = vld [vmem:[#allocation36_spill] sm:$0xff] }
 0x665   :  { %v7272_v57 = vpop.f32.mrf.mxu1  ;;  %3120 = vmatmul.bf16.gmra.mxu2 %v8361_v30  ;;  %v8372_v30 = vld [vmem:[#allocation28_spill] sm:$0xff] }
 0x666   :  { %8360 = vst [vmem:[#allocation114_spill] sm:$0xff] %v7270_v35  ;;  %3211 = vmatpush.bf16.msrb.mxu3 %v7270_v35  ;;  %v7291_v2 = vpack.c.bf16 %v2987_v9, %v2986_v22 }
 0x66a   :  { %3212 = vmatpush.bf16.msrb.mxu3 %v7281_v63  ;;  %v8385_v63 = vunpack.c.l.bf16 %v8311_v3 }
 0x66d   :  { %v7288_v24 = vpop.f32.mrf.mxu1 }
 0x66e   :  { %3213 = vmatpush.bf16.msrb.mxu3 %v7286_v5 }
 0x672   :  { %3214 = vmatpush.bf16.msrb.mxu3 %v7291_v2 }
 0x675   :  { %v7294_v12 = vpop.f32.mrf.mxu1  ;;  %3125 = vmatmul.bf16.gmra.mxu2 %v8370_v46 }
 0x676   :  { %3215 = vmatpush.bf16.msrb.mxu3 %v7240_v34  ;;  %v8381_v34 = vld [vmem:[#allocation73_spill] sm:$0xff] }
 0x67a   :  { %3216 = vmatpush.bf16.msrb.mxu3 %v7229_v42  ;;  %v8382_v42 = vld [vmem:[#allocation48_spill] sm:$0xff] }
 0x67d   :  { %v7299_v38 = vpop.f32.mrf.mxu1 }
 0x67e   :  { %3217 = vmatpush.bf16.msrb.mxu3 %v7218_v36 }
 0x682   :  { %3218 = vmatpush.bf16.msrb.mxu3 %v7204_v13 }
 0x685   :  { %v7303_v31 = vpop.f32.mrf.mxu1  ;;  %3130 = vmatmul.bf16.gmra.mxu2 %v8371_v25  ;;  %3219 = vmatmul.bf16.vlgmr.msrb.gmra.mxu3 %v8372_v30  ;;  %v8377_v25 = vld [vmem:[#allocation67_spill] sm:$0xff]  ;;  %v8378_v30 = vld [vmem:[#allocation40_spill] sm:$0xff] }
 0x688   :  { %v7307_v28 = vpop.f32.mrf.mxu2 }
 0x68d   :  { %v7309_v44 = vpop.f32.mrf.mxu1 }
 0x690   :  { %v7311_v16 = vpop.f32.mrf.mxu2 }
 0x695   :  { %v7313_v52 = vpop.f32.mrf.mxu1  ;;  %3135 = vmatmul.bf16.gmra.mxu2 %v8373_v59  ;;  %3224 = vmatmul.bf16.gmra.mxu3 %v8374_v1 }
 0x698   :  { %v7317_v4 = vpop.f32.mrf.mxu2 }
 0x69d   :  { %v2891_v61 = vpop.f32.mrf.mxu1 }
 0x6a0   :  { %v7319_v18 = vpop.f32.mrf.mxu2 }
 0x6a5   :  { %v2894_v56 = vpop.f32.mrf.mxu1  ;;  %3140 = vmatmul.bf16.gmra.mxu2 %v8375_v21  ;;  %3229 = vmatmul.bf16.gmra.mxu3 %v8376_v19  ;;  %v8380_v21 = vld [vmem:[#allocation44_spill] sm:$0xff]  ;;  %v3042_v19 = vunpack.c.l.bf16 %v7200_v41 }
 0x6a8   :  { %v7323_v53 = vpop.f32.mrf.mxu2 }
 0x6ad   :  { %v2896_v9 = vpop.f32.mrf.mxu1 }
 0x6b0   :  { %v7325_v22 = vpop.f32.mrf.mxu2 }
 0x6b5   :  { %v2899_v46 = vpop.f32.mrf.mxu1  ;;  %3145 = vmatmul.bf16.gmra.mxu2 %v8377_v25  ;;  %3234 = vmatmul.bf16.gmra.mxu3 %v8378_v30  ;;  %v3043_v25 = vunpack.c.h.bf16 %v7200_v41 }
 0x6b8   :  { %v7329_v59 = vpop.f32.mrf.mxu2 }
 0x6bd   :  { %v2901_v1 = vpop.f32.mrf.mxu1 }
 0x6c0   :  { %v7331_v49 = vpop.f32.mrf.mxu2 }
 0x6c5   :  { %v2904_v55 = vpop.f32.mrf.mxu1  ;;  %3150 = vmatmul.bf16.gmra.mxu2 %v8379_v17  ;;  %3239 = vmatmul.bf16.gmra.mxu3 %v8380_v21  ;;  %v3044_v17 = vunpack.c.l.bf16 %v7191_v45 }
 0x6c6   :  { %v2905_v41 = vadd.f32 %v7056_v33, %v2904_v55  ;;  %v2900_v55 = vadd.f32 %v7056_v33, %v2899_v46  ;;  %v8391_v46 = vunpack.c.l.bf16 %v8308_v54  ;;  %v2890_v54 = vadd.f32 %v7056_v33, %v7313_v52 }
 0x6c7   :  { %v8395_v52 = vunpack.c.l.bf16 %v6649_v39  ;;  %v2880_v39 = vadd.f32 %v7056_v33, %v7294_v12  ;;  %v8401_v12 = vunpack.c.l.bf16 %v6669_v32 }
 0x6c8   :  { %v3111_v60 = vpop.f32.mrf.mxu2 }
 0x6c9   :  { %v7336_v26 = vadd.f32 %v3111_v60, %v3042_v19 }
 0x6cd   :  { %v2906_v23 = vpop.f32.mrf.mxu1 }
 0x6ce   :  { %v2907_v60 = vadd.f32 %v7056_v33, %v2906_v23 }
 0x6d0   :  { %v3113_v51 = vpop.f32.mrf.mxu2 }
 0x6d1   :  { %v7339_v30 = vadd.f32 %v3113_v51, %v3043_v25  ;;  %v8384_v51 = vunpack.c.l.bf16 %v8312_v50  ;;  %v8387_v50 = vunpack.c.l.bf16 %v8310_v43  ;;  %v2956_v43 = vadd.f32 %v2900_v55, %v8391_v46 }
 0x6d3   :  { %v3004_v55 = vmax.f32 %v2956_v43, 0.0 }
 0x6d5   :  { %v2909_v8 = vpop.f32.mrf.mxu1  ;;  %3155 = vmatmul.bf16.gmra.mxu2 %v8381_v34  ;;  %3244 = vmatmul.bf16.gmra.mxu3 %v8382_v42  ;;  %v3045_v34 = vunpack.c.h.bf16 %v7191_v45  ;;  %v2902_v42 = vadd.f32 %v7056_v33, %v2901_v1  ;;  %v2897_v45 = vadd.f32 %v7056_v33, %v2896_v9  ;;  %v8388_v1 = vunpack.c.l.bf16 %v8309_v10 }
 0x6d6   :  { %v2910_v13 = vadd.f32 %v7056_v33, %v2909_v8  ;;  %v3046_v9 = vunpack.c.l.bf16 %v7185_v47  ;;  %v2892_v10 = vadd.f32 %v7056_v33, %v2891_v61  ;;  %v2887_v61 = vadd.f32 %v7056_v33, %v7309_v44 }
 0x6d7   :  { %v2957_v5 = vadd.f32 %v2902_v42, %v8388_v1  ;;  %v2882_v44 = vadd.f32 %v7056_v33, %v7299_v38 }
 0x6d8   :  { %v3116_v36 = vpop.f32.mrf.mxu2  ;;  %v2960_v25 = vadd.f32 %v2910_v13, %v8384_v51  ;;  %v2958_v13 = vadd.f32 %v2905_v41, %v8387_v50  ;;  %v8392_v41 = vunpack.c.l.bf16 %v6632_v7  ;;  %v8394_v7 = vunpack.c.l.bf16 %v6644_v40 }
 0x6d9   :  { %v7344_v21 = vadd.f32 %v3116_v36, %v3044_v17  ;;  %v2959_v36 = vadd.f32 %v2907_v60, %v8385_v63  ;;  %v8386_v17 = vunpack.c.l.bf16 %v8313_v48  ;;  %v8389_v48 = vld [vmem:[#allocation76_spill] sm:$0xff]  ;;  %v8396_v40 = vunpack.c.l.bf16 %v6654_v62 }
 0x6da   :  { %v3008_v51 = vmax.f32 %v2960_v25, 0.0  ;;  %v3006_v60 = vmax.f32 %v2958_v13, 0.0  ;;  %v2955_v25 = vadd.f32 %v2897_v45, %v8392_v41  ;;  %v3047_v45 = vunpack.c.h.bf16 %v7185_v47  ;;  %v8400_v41 = vld [vmem:[#allocation56_spill] sm:$0xff] }
 0x6db   :  { %8383 = vst [vmem:[#allocation123_spill] sm:$0xff] %v7344_v21  ;;  %v3007_v3 = vmax.f32 %v2959_v36, 0.0  ;;  %v2951_v1 = vadd.f32 %v2887_v61, %v8396_v40  ;;  %v2877_v47 = vadd.f32 %v7056_v33, %v7288_v24  ;;  %v8398_v62 = vunpack.c.l.bf16 %v6664_v6 }
 0x6dc   :  { %v3003_v50 = vmax.f32 %v2955_v25, 0.0  ;;  %v2948_v25 = vadd.f32 %v2880_v39, %v8401_v12  ;;  %v3048_v24 = vunpack.c.l.bf16 %v7176_v29  ;;  %v8402_v6 = vunpack.c.l.bf16 %v6672_v15 }
 0x6dd   :  { %v2911_v19 = vpop.f32.mrf.mxu1  ;;  %v7378_v36 = vpack.c.bf16 %v3007_v3, %v3006_v60  ;;  %v2949_v38 = vadd.f32 %v2882_v44, %v8398_v62  ;;  %v2999_v60 = vmax.f32 %v2951_v1, 0.0  ;;  %v8403_v61 = vunpack.c.l.bf16 %v6675_v11  ;;  %v8408_v62 = vld [vmem:[#allocation63_spill] sm:$0xff] }
 0x6de   :  { %v2912_v35 = vadd.f32 %v7056_v33, %v2911_v19  ;;  %v3049_v15 = vunpack.c.h.bf16 %v7176_v29  ;;  %v3034_v11 = vunpack.c.l.bf16 %v7074_v20 }
 0x6e0   :  { %v2961_v8 = vadd.f32 %v2912_v35, %v8386_v17  ;;  %v3118_v21 = vpop.f32.mrf.mxu2  ;;  %v8390_v35 = vld [vmem:[#allocation52_spill] sm:$0xff]  ;;  %v3092_v44 = vadd.f32 %v7307_v28, %v3034_v11  ;;  %v8409_v28 = vld [vmem:[#allocation31_spill] sm:$0xff] }
 0x6e1   :  { %v7358_v23 = vadd.f32 %v3118_v21, %v3045_v34  ;;  %v2895_v21 = vadd.f32 %v7056_v33, %v2894_v56  ;;  %v3005_v34 = vmax.f32 %v2957_v5, 0.0  ;;  %v8393_v56 = vunpack.c.l.bf16 %v6639_v58 }
 0x6e2   :  { %v3009_v19 = vmax.f32 %v2961_v8, 0.0  ;;  %v2953_v5 = vadd.f32 %v2892_v10, %v8394_v7  ;;  %v8399_v10 = vld [vmem:[#allocation79_spill] sm:$0xff] }
 0x6e3   :  { %v2954_v8 = vadd.f32 %v2895_v21, %v8393_v56  ;;  %v7391_v13 = vpack.c.bf16 %v3005_v34, %v3004_v55 }
 0x6e4   :  { %v7366_v63 = vpack.c.bf16 %v3009_v19, %v3008_v51  ;;  %v2885_v51 = vadd.f32 %v7056_v33, %v7303_v31  ;;  %v2952_v19 = vadd.f32 %v2890_v54, %v8395_v52  ;;  %v3001_v3 = vmax.f32 %v2953_v5, 0.0 }
 0x6e5   :  { %3160 = vmatmul.bf16.gmra.mxu2 %v8389_v48  ;;  %3249 = vmatmul.bf16.gmra.mxu3 %v8390_v35  ;;  %v3002_v58 = vmax.f32 %v2954_v8, 0.0  ;;  %v8397_v31 = vunpack.c.l.bf16 %v6659_v27  ;;  %v2875_v27 = vadd.f32 %v7056_v33, %v7272_v57  ;;  %v2997_v54 = vmax.f32 %v2949_v38, 0.0 }
 0x6e6   :  { %3340 = vmatpush.bf16.msrb.mxu0 %v7366_v63  ;;  %v3000_v43 = vmax.f32 %v2952_v19, 0.0  ;;  %v2996_v57 = vmax.f32 %v2948_v25, 0.0  ;;  %v8404_v19 = vld [vmem:[#allocation82_spill] sm:$0xff] }
 0x6e7   :  { %v7403_v35 = vpack.c.bf16 %v3003_v50, %v3002_v58  ;;  %v2950_v46 = vadd.f32 %v2885_v51, %v8397_v31  ;;  %v2946_v33 = vadd.f32 %v2875_v27, %v8403_v61  ;;  %v8405_v58 = vld [vmem:[#allocation60_spill] sm:$0xff] }
 0x6e8   :  { %v3121_v42 = vpop.f32.mrf.mxu2  ;;  %v7435_v7 = vpack.c.bf16 %v2997_v54, %v2996_v57 }
 0x6e9   :  { %v7380_v17 = vadd.f32 %v3121_v42, %v3046_v9  ;;  %v7416_v9 = vpack.c.bf16 %v3001_v3, %v3000_v43  ;;  %v2998_v34 = vmax.f32 %v2950_v46, 0.0  ;;  %v2947_v42 = vadd.f32 %v2877_v47, %v8402_v6  ;;  %v8407_v47 = vld [vmem:[#allocation85_spill] sm:$0xff]  ;;  %v8411_v6 = vld [vmem:[#allocation66_spill] sm:$0xff] }
 0x6ea   :  { %3341 = vmatpush.bf16.msrb.mxu0 %v7378_v36  ;;  %v2994_v5 = vmax.f32 %v2946_v33, 0.0  ;;  %v3035_v3 = vunpack.c.h.bf16 %v7074_v20  ;;  %v3036_v43 = vunpack.c.l.bf16 %v7092_v0 }
 0x6eb   :  { %v7428_v8 = vpack.c.bf16 %v2999_v60, %v2998_v34  ;;  %v2995_v32 = vmax.f32 %v2947_v42, 0.0  ;;  %v3038_v34 = vunpack.c.l.bf16 %v7110_v14 }
 0x6ec   :  { %v3097_v38 = vadd.f32 %v7317_v4, %v3036_v43  ;;  %v8412_v4 = vld [vmem:[#allocation35_spill] sm:$0xff] }
 0x6ed   :  { %v7439_v51 = vpack.c.bf16 %v2995_v32, %v2994_v5  ;;  %v3102_v42 = vadd.f32 %v7323_v53, %v3038_v34  ;;  %v3040_v5 = vunpack.c.l.bf16 %v7128_v37  ;;  %v8415_v53 = vld [vmem:[#allocation39_spill] sm:$0xff] }
 0x6ee   :  { %3342 = vmatpush.bf16.msrb.mxu0 %v7391_v13  ;;  %v8418_v43 = vld [vmem:[#allocation43_spill] sm:$0xff] }
 0x6ef   :  { %v3107_v11 = vadd.f32 %v7329_v59, %v3040_v5  ;;  %v3058_v59 = vunpack.c.l.bf16 %v7291_v2  ;;  %v8420_v34 = vld [vmem:[#allocation75_spill] sm:$0xff]  ;;  %v5329_v5 = vld [vmem:[#allocation12 + $0x18] sm:$0xff] }
 0x6f0   :  { %v3123_v48 = vpop.f32.mrf.mxu2 }
 0x6f1   :  { %v7405_v21 = vadd.f32 %v3123_v48, %v3047_v45  ;;  %v8406_v45 = vld [vmem:[#allocation27_spill] sm:$0xff]  ;;  %v3094_v48 = vadd.f32 %v7311_v16, %v3035_v3  ;;  %v3037_v16 = vunpack.c.h.bf16 %v7092_v0 }
 0x6f2   :  { %3343 = vmatpush.bf16.msrb.mxu0 %v7403_v35 }
 0x6f5   :  { %3165 = vmatmul.bf16.gmra.mxu2 %v8399_v10  ;;  %3254 = vmatmul.bf16.gmra.mxu3 %v8400_v41  ;;  %v3099_v41 = vadd.f32 %v7319_v18, %v3037_v16  ;;  %v3039_v18 = vunpack.c.h.bf16 %v7110_v14 }
 0x6f6   :  { %3344 = vmatpush.bf16.msrb.mxu0 %v7416_v9 }
 0x6f7   :  { %v3104_v61 = vadd.f32 %v7325_v22, %v3039_v18  ;;  %v3041_v22 = vunpack.c.h.bf16 %v7128_v37 }
 0x6f8   :  { %v3126_v56 = vpop.f32.mrf.mxu2 }
 0x6f9   :  { %v7430_v55 = vadd.f32 %v3126_v56, %v3048_v24  ;;  %v8410_v24 = vld [vmem:[#allocation88_spill] sm:$0xff] }
 0x6fa   :  { %3345 = vmatpush.bf16.msrb.mxu0 %v7428_v8 }
 0x6fe   :  { %3346 = vmatpush.bf16.msrb.mxu0 %v7435_v7 }
 0x700   :  { %v3128_v50 = vpop.f32.mrf.mxu2 }
 0x701   :  { %v7441_v52 = vadd.f32 %v3128_v50, %v3049_v15  ;;  %v8413_v15 = vld [vmem:[#allocation91_spill] sm:$0xff]  ;;  %v8414_v50 = vld [vmem:[#allocation69_spill] sm:$0xff] }
 0x702   :  { %3347 = vmatpush.bf16.msrb.mxu0 %v7439_v51 }
 0x705   :  { %3170 = vmatmul.bf16.gmra.mxu2 %v8404_v19  ;;  %3259 = vmatmul.bf16.gmra.mxu3 %v8405_v58 }
 0x706   :  { %3348 = vmatmul.bf16.vlgmr.msrb.gmra.mxu0 %v8406_v45  ;;  %v3109_v45 = vadd.f32 %v7331_v49, %v3041_v22  ;;  %v5333_v49 = vld [vmem:[#allocation12 + $0x38] sm:$0xff]  ;;  %v8425_v22 = vld [vmem:[#allocation78_spill] sm:$0xff] }
 0x707   :  { %3561 = vmatpush.bf16.msrb.mxu1 %v5333_v49 }
 0x708   :  { %v7449_v40 = vpop.f32.mrf.mxu2  ;;  %v3220_v29 = vpop.f32.mrf.mxu3 }
 0x709   :  { %v7451_v1 = vadd.f32 %v3220_v29, %v3092_v44 }
 0x710   :  { %v7455_v39 = vpop.f32.mrf.mxu2  ;;  %v3222_v31 = vpop.f32.mrf.mxu3 }
 0x711   :  { %v7457_v46 = vadd.f32 %v3222_v31, %v3094_v48  ;;  %v8416_v48 = vld [vmem:[#allocation94_spill] sm:$0xff]  ;;  %v8417_v31 = vld [vmem:[#allocation72_spill] sm:$0xff] }
 0x715   :  { %3175 = vmatmul.bf16.gmra.mxu2 %v8407_v47  ;;  %3264 = vmatmul.bf16.gmra.mxu3 %v8408_v62 }
 0x716   :  { %3353 = vmatmul.bf16.gmra.mxu0 %v8409_v28 }
 0x718   :  { %v7464_v60 = vpop.f32.mrf.mxu2  ;;  %v3225_v20 = vpop.f32.mrf.mxu3 }
 0x719   :  { %v7466_v10 = vadd.f32 %v3225_v20, %v3097_v38 }
 0x720   :  { %v7470_v27 = vpop.f32.mrf.mxu2  ;;  %v3227_v12 = vpop.f32.mrf.mxu3 }
 0x721   :  { %v7472_v25 = vadd.f32 %v3227_v12, %v3099_v41  ;;  %v5332_v41 = vld [vmem:[#allocation12 + $0x30] sm:$0xff]  ;;  %v8419_v12 = vld [vmem:[#allocation26_spill] sm:$0xff] }
 0x722   :  { %3562 = vmatpush.bf16.msrb.mxu1 %v5332_v41 }
 0x725   :  { %3180 = vmatmul.bf16.gmra.mxu2 %v8410_v24  ;;  %3269 = vmatmul.bf16.gmra.mxu3 %v8411_v6  ;;  %v8421_v24 = vld [vmem:[#allocation47_spill] sm:$0xff]  ;;  %v8422_v6 = vld [vmem:[#allocation124_spill] sm:$0xff] }
 0x726   :  { %3358 = vmatmul.bf16.gmra.mxu0 %v8412_v4  ;;  %v3060_v4 = vunpack.c.l.bf16 %v8422_v6 }
 0x728   :  { %v7479_v54 = vpop.f32.mrf.mxu2  ;;  %v3230_v0 = vpop.f32.mrf.mxu3 }
 0x729   :  { %v7481_v56 = vadd.f32 %v3230_v0, %v3102_v42 }
 0x730   :  { %v7485_v33 = vpop.f32.mrf.mxu2  ;;  %v3232_v57 = vpop.f32.mrf.mxu3 }
 0x731   :  { %v7487_v32 = vadd.f32 %v3232_v57, %v3104_v61  ;;  %v8423_v61 = vld [vmem:[#allocation123_spill] sm:$0xff] }
 0x735   :  { %3185 = vmatmul.bf16.gmra.mxu2 %v8413_v15  ;;  %3274 = vmatmul.bf16.gmra.mxu3 %v8414_v50 }
 0x736   :  { %3363 = vmatmul.bf16.gmra.mxu0 %v8415_v53 }
 0x738   :  { %v7494_v19 = vpop.f32.mrf.mxu2  ;;  %v3235_v14 = vpop.f32.mrf.mxu3 }
 0x739   :  { %v7496_v58 = vadd.f32 %v3235_v14, %v3107_v11  ;;  %v5328_v11 = vld [vmem:[#allocation12 + $0x10] sm:$0xff]  ;;  %v8424_v14 = vld [vmem:[#allocation30_spill] sm:$0xff] }
 0x740   :  { %v7500_v44 = vpop.f32.mrf.mxu2  ;;  %v3237_v29 = vpop.f32.mrf.mxu3 }
 0x741   :  { %v7502_v3 = vadd.f32 %v3237_v29, %v3109_v45  ;;  %v8426_v45 = vld [vmem:[#allocation51_spill] sm:$0xff]  ;;  %v8427_v29 = vld [vmem:[#allocation125_spill] sm:$0xff] }
 0x745   :  { %3190 = vmatmul.bf16.gmra.mxu2 %v8416_v48  ;;  %3279 = vmatmul.bf16.gmra.mxu3 %v8417_v31  ;;  %v3062_v48 = vunpack.c.l.bf16 %v8427_v29  ;;  %v5327_v31 = vld [vmem:[#allocation12 + $0x8] sm:$0xff] }
 0x746   :  { %3368 = vmatmul.bf16.gmra.mxu0 %v8418_v43 }
 0x748   :  { %v3151_v47 = vpop.f32.mrf.mxu2  ;;  %v3240_v62 = vpop.f32.mrf.mxu3 }
 0x749   :  { %v7508_v28 = vadd.f32 %v3151_v47, %v3058_v59  ;;  %v7511_v37 = vadd.f32 %v3240_v62, %v7336_v26  ;;  %v5331_v26 = vld [vmem:[#allocation12 + $0x28] sm:$0xff] }
 0x74a   :  { %3563 = vmatpush.bf16.msrb.mxu1 %v5331_v26 }
 0x750   :  { %v7513_v38 = vpop.f32.mrf.mxu2  ;;  %v3242_v20 = vpop.f32.mrf.mxu3 }
 0x751   :  { %v7516_v16 = vadd.f32 %v3242_v20, %v7339_v30  ;;  %v5330_v30 = vld [vmem:[#allocation12 + $0x20] sm:$0xff] }
 0x752   :  { %3564 = vmatpush.bf16.msrb.mxu1 %v5330_v30 }
 0x755   :  { %3195 = vmatmul.bf16.gmra.mxu2 %v8419_v12  ;;  %3284 = vmatmul.bf16.gmra.mxu3 %v8420_v34  ;;  %v8428_v12 = vld [vmem:[#allocation34_spill] sm:$0xff]  ;;  %v8429_v34 = vld [vmem:[#allocation81_spill] sm:$0xff] }
 0x756   :  { %3373 = vmatmul.bf16.gmra.mxu0 %v8421_v24  ;;  %3565 = vmatpush.bf16.msrb.mxu1 %v5329_v5  ;;  %v8430_v24 = vld [vmem:[#allocation55_spill] sm:$0xff] }
 0x758   :  { %v3156_v42 = vpop.f32.mrf.mxu2  ;;  %v3245_v0 = vpop.f32.mrf.mxu3 }
 0x759   :  { %v7522_v18 = vadd.f32 %v3156_v42, %v3060_v4  ;;  %v7525_v57 = vadd.f32 %v3245_v0, %v8423_v61  ;;  %v8431_v4 = vld [vmem:[#allocation114_spill] sm:$0xff] }
 0x75a   :  { %3566 = vmatpush.bf16.msrb.mxu1 %v5328_v11  ;;  %v3064_v26 = vunpack.c.l.bf16 %v8431_v4  ;;  %v8432_v11 = vld [vmem:[#allocation97_spill] sm:$0xff] }
 0x75e   :  { %3567 = vmatpush.bf16.msrb.mxu1 %v5327_v31 }
 0x760   :  { %v7527_v15 = vpop.f32.mrf.mxu2  ;;  %v3247_v50 = vpop.f32.mrf.mxu3 }
 0x761   :  { %v7530_v53 = vadd.f32 %v3247_v50, %v7358_v23  ;;  %v5326_v23 = vld [vmem:[#allocation12] sm:$0xff] }
 0x762   :  { %3568 = vmatpush.bf16.msrb.mxu1 %v5326_v23 }
 0x765   :  { %3200 = vmatmul.bf16.gmra.mxu2 %v8424_v14  ;;  %3289 = vmatmul.bf16.gmra.mxu3 %v8425_v22  ;;  %v3050_v14 = vunpack.c.l.bf16 %v8432_v11  ;;  %v8433_v22 = vld [vmem:[#allocation84_spill] sm:$0xff] }
 0x766   :  { %3378 = vmatmul.bf16.gmra.mxu0 %v8426_v45  ;;  %v8434_v45 = vld [vmem:[#allocation59_spill] sm:$0xff] }
 0x768   :  { %v3161_v43 = vpop.f32.mrf.mxu2  ;;  %v3250_v59 = vpop.f32.mrf.mxu3 }
 0x769   :  { %v7536_v47 = vadd.f32 %v3161_v43, %v3062_v48  ;;  %v7539_v62 = vadd.f32 %v3250_v59, %v7380_v17  ;;  %v3132_v48 = vadd.f32 %v7449_v40, %v3050_v14  ;;  %v8436_v14 = vld [vmem:[#allocation87_spill] sm:$0xff] }
 0x770   :  { %v7541_v49 = vpop.f32.mrf.mxu2  ;;  %v3252_v20 = vpop.f32.mrf.mxu3 }
 0x771   :  { %v7544_v41 = vadd.f32 %v3252_v20, %v7405_v21  ;;  %v3051_v20 = vunpack.c.h.bf16 %v8432_v11 }
 0x775   :  { %3205 = vmatmul.bf16.gmra.mxu2 %v8428_v12  ;;  %3294 = vmatmul.bf16.gmra.mxu3 %v8429_v34  ;;  %v3134_v34 = vadd.f32 %v7455_v39, %v3051_v20 }
 0x776   :  { %3383 = vmatmul.bf16.gmra.mxu0 %v8430_v24 }
 0x778   :  { %v3166_v42 = vpop.f32.mrf.mxu2  ;;  %v3255_v17 = vpop.f32.mrf.mxu3 }
 0x779   :  { %v7550_v0 = vadd.f32 %v3166_v42, %v3064_v26  ;;  %v7553_v61 = vadd.f32 %v3255_v17, %v7430_v55  ;;  %v8435_v17 = vld [vmem:[#allocation115_spill] sm:$0xff] }
 0x780   :  { %v7555_v30 = vpop.f32.mrf.mxu2  ;;  %v3257_v5 = vpop.f32.mrf.mxu3 }
 0x781   :  { %v7558_v21 = vadd.f32 %v3257_v5, %v7441_v52  ;;  %v3052_v5 = vunpack.c.l.bf16 %v8435_v17 }
 0x783   :  { %v3349_v50 = vpop.f32.mrf.mxu0 }
 0x784   :  { %v3350_v23 = vadd.f32 %v3349_v50, %v7451_v1  ;;  %v3137_v1 = vadd.f32 %v7464_v60, %v3052_v5  ;;  %v8439_v5 = vld [vmem:[#allocation90_spill] sm:$0xff] }
 0x785   :  { %3299 = vmatmul.bf16.gmra.mxu3 %v8433_v22  ;;  %v8437_v22 = vld [vmem:[#allocation62_spill] sm:$0xff] }
 0x786   :  { %3388 = vmatmul.bf16.gmra.mxu0 %v8434_v45 }
 0x788   :  { %v7564_v31 = vpop.f32.mrf.mxu2  ;;  %v3260_v43 = vpop.f32.mrf.mxu3 }
 0x789   :  { %v7566_v55 = vadd.f32 %v3260_v43, %v3132_v48  ;;  %v3053_v43 = vunpack.c.h.bf16 %v8435_v17 }
 0x78b   :  { %v3351_v59 = vpop.f32.mrf.mxu0 }
 0x78c   :  { %v3352_v52 = vadd.f32 %v3351_v59, %v7457_v46 }
 0x78e   :  { %v3469_v12 = vpack.c.bf16 %v3352_v52, %v3350_v23  ;;  %v3139_v23 = vadd.f32 %v7470_v27, %v3053_v43 }
 0x790   :  { %3569 = vmatmul.bf16.vlgmr.msrb.gmra.mxu1 %v3469_v12  ;;  %v7572_v24 = vpop.f32.mrf.mxu2  ;;  %v3262_v26 = vpop.f32.mrf.mxu3 }
 0x791   :  { %v7574_v40 = vadd.f32 %v3262_v26, %v3134_v34  ;;  %v8438_v34 = vld [vmem:[#allocation113_spill] sm:$0xff] }
 0x792   :  { %v3054_v26 = vunpack.c.l.bf16 %v8438_v34 }
 0x793   :  { %v3354_v42 = vpop.f32.mrf.mxu0 }
 0x794   :  { %v3355_v45 = vadd.f32 %v3354_v42, %v7466_v10  ;;  %v3142_v10 = vadd.f32 %v7479_v54, %v3054_v26  ;;  %v8442_v26 = vld [vmem:[#allocation93_spill] sm:$0xff] }
 0x795   :  { %3304 = vmatmul.bf16.gmra.mxu3 %v8436_v14  ;;  %v8440_v14 = vld [vmem:[#allocation65_spill] sm:$0xff] }
 0x796   :  { %3393 = vmatmul.bf16.gmra.mxu0 %v8437_v22 }
 0x798   :  { %v7580_v46 = vpop.f32.mrf.mxu2  ;;  %v3265_v50 = vpop.f32.mrf.mxu3 }
 0x799   :  { %v7582_v11 = vadd.f32 %v3265_v50, %v3137_v1  ;;  %v3055_v50 = vunpack.c.h.bf16 %v8438_v34 }
 0x79b   :  { %v3356_v39 = vpop.f32.mrf.mxu0 }
 0x79c   :  { %v3357_v48 = vadd.f32 %v3356_v39, %v7472_v25 }
 0x79e   :  { %v3470_v59 = vpack.c.bf16 %v3357_v48, %v3355_v45  ;;  %v3144_v45 = vadd.f32 %v7485_v33, %v3055_v50 }
 0x7a0   :  { %3574 = vmatmul.bf16.gmra.mxu1 %v3470_v59  ;;  %v7588_v52 = vpop.f32.mrf.mxu2  ;;  %v3267_v20 = vpop.f32.mrf.mxu3 }
 0x7a1   :  { %v7590_v60 = vadd.f32 %v3267_v20, %v3139_v23  ;;  %v8441_v23 = vld [vmem:[#allocation112_spill] sm:$0xff] }
 0x7a2   :  { %v3056_v20 = vunpack.c.l.bf16 %v8441_v23 }
 0x7a3   :  { %v3359_v12 = vpop.f32.mrf.mxu0 }
 0x7a4   :  { %v3360_v22 = vadd.f32 %v3359_v12, %v7481_v56  ;;  %v3147_v56 = vadd.f32 %v7494_v19, %v3056_v20 }
 0x7a5   :  { %3309 = vmatmul.bf16.gmra.mxu3 %v8439_v5  ;;  %v8443_v5 = vld [vmem:[#allocation68_spill] sm:$0xff] }
 0x7a6   :  { %3398 = vmatmul.bf16.gmra.mxu0 %v8440_v14 }
 0x7a8   :  { %v7596_v25 = vpop.f32.mrf.mxu2  ;;  %v3270_v42 = vpop.f32.mrf.mxu3 }
 0x7a9   :  { %v7598_v17 = vadd.f32 %v3270_v42, %v3142_v10  ;;  %v3057_v42 = vunpack.c.h.bf16 %v8441_v23 }
 0x7ab   :  { %v3361_v27 = vpop.f32.mrf.mxu0 }
 0x7ac   :  { %v3362_v1 = vadd.f32 %v3361_v27, %v7487_v32 }
 0x7ae   :  { %v3471_v39 = vpack.c.bf16 %v3362_v1, %v3360_v22  ;;  %v3149_v22 = vadd.f32 %v7500_v44, %v3057_v42 }
 0x7b0   :  { %3579 = vmatmul.bf16.gmra.mxu1 %v3471_v39  ;;  %v7604_v48 = vpop.f32.mrf.mxu2  ;;  %v3272_v43 = vpop.f32.mrf.mxu3 }
 0x7b1   :  { %v7606_v54 = vadd.f32 %v3272_v43, %v3144_v45  ;;  %v8444_v45 = vld [vmem:[#allocation96_spill] sm:$0xff]  ;;  %v8445_v43 = vld [vmem:[#allocation71_spill] sm:$0xff] }
 0x7b3   :  { %v3364_v59 = vpop.f32.mrf.mxu0 }
 0x7b4   :  { %v3365_v14 = vadd.f32 %v3364_v59, %v7496_v58  ;;  %v3074_v58 = vunpack.c.l.bf16 %v7403_v35 }
 0x7b5   :  { %3314 = vmatmul.bf16.gmra.mxu3 %v8442_v26 }
 0x7b6   :  { %3403 = vmatmul.bf16.gmra.mxu0 %v8443_v5 }
 0x7b8   :  { %v7612_v32 = vpop.f32.mrf.mxu2  ;;  %v3275_v12 = vpop.f32.mrf.mxu3 }
 0x7b9   :  { %v7614_v34 = vadd.f32 %v3275_v12, %v3147_v56  ;;  %v8446_v12 = vld [vmem:[#allocation38_spill] sm:$0xff] }
 0x7bb   :  { %v3366_v33 = vpop.f32.mrf.mxu0 }
 0x7bc   :  { %v3367_v10 = vadd.f32 %v3366_v33, %v7502_v3  ;;  %v8447_v33 = vld [vmem:[#allocation74_spill] sm:$0xff] }
 0x7be   :  { %v3472_v27 = vpack.c.bf16 %v3367_v10, %v3365_v14  ;;  %v3076_v14 = vunpack.c.l.bf16 %v7391_v13 }
 0x7c0   :  { %3584 = vmatmul.bf16.gmra.mxu1 %v3472_v27  ;;  %v7620_v1 = vpop.f32.mrf.mxu2  ;;  %v3277_v50 = vpop.f32.mrf.mxu3 }
 0x7c1   :  { %v7622_v19 = vadd.f32 %v3277_v50, %v3149_v22  ;;  %v5341_v22 = vld [vmem:[#allocation13 + $0x38] sm:$0xff] }
 0x7c2   :  { %3830 = vmatpush.bf16.msrb.mxu2 %v5341_v22 }
 0x7c3   :  { %v3369_v39 = vpop.f32.mrf.mxu0 }
 0x7c4   :  { %v3370_v20 = vadd.f32 %v3369_v39, %v7511_v37  ;;  %v5340_v39 = vld [vmem:[#allocation13 + $0x30] sm:$0xff] }
 0x7c5   :  { %3319 = vmatmul.bf16.gmra.mxu3 %v8444_v45 }
 0x7c6   :  { %3408 = vmatmul.bf16.gmra.mxu0 %v8445_v43  ;;  %3831 = vmatpush.bf16.msrb.mxu2 %v5340_v39  ;;  %v3080_v39 = vunpack.c.l.bf16 %v7366_v63 }
 0x7c8   :  { %v3191_v59 = vpop.f32.mrf.mxu2 }
 0x7c9   :  { %v7627_v3 = vadd.f32 %v3191_v59, %v3074_v58  ;;  %v5339_v58 = vld [vmem:[#allocation13 + $0x28] sm:$0xff] }
 0x7ca   :  { %v8448_v59 = vld [vmem:[#allocation42_spill] sm:$0xff]  ;;  %3832 = vmatpush.bf16.msrb.mxu2 %v5339_v58  ;;  %v5334_v58 = vld [vmem:[#allocation13] sm:$0xff] }
 0x7cb   :  { %v3371_v23 = vpop.f32.mrf.mxu0 }
 0x7cc   :  { %v3372_v44 = vadd.f32 %v3371_v23, %v7516_v16  ;;  %v8449_v23 = vld [vmem:[#allocation77_spill] sm:$0xff] }
 0x7ce   :  { %v3473_v26 = vpack.c.bf16 %v3372_v44, %v3370_v20  ;;  %v3078_v20 = vunpack.c.l.bf16 %v7378_v36  ;;  %v5338_v44 = vld [vmem:[#allocation13 + $0x20] sm:$0xff] }
 0x7cf   :  { %3833 = vmatpush.bf16.msrb.mxu2 %v5338_v44 }
 0x7d0   :  { %3589 = vmatmul.bf16.gmra.mxu1 %v3473_v26  ;;  %v7631_v5 = vpop.f32.mrf.mxu2 }
 0x7d3   :  { %v3374_v56 = vpop.f32.mrf.mxu0 }
 0x7d4   :  { %v3375_v37 = vadd.f32 %v3374_v56, %v7525_v57  ;;  %v5337_v56 = vld [vmem:[#allocation13 + $0x18] sm:$0xff] }
 0x7d5   :  { %3324 = vmatmul.bf16.gmra.mxu3 %v8446_v12  ;;  %3834 = vmatpush.bf16.msrb.mxu2 %v5337_v56 }
 0x7d6   :  { %3413 = vmatmul.bf16.gmra.mxu0 %v8447_v33 }
 0x7d8   :  { %v3196_v10 = vpop.f32.mrf.mxu2 }
 0x7d9   :  { %v7636_v42 = vadd.f32 %v3196_v10, %v3076_v14  ;;  %v5336_v10 = vld [vmem:[#allocation13 + $0x10] sm:$0xff] }
 0x7da   :  { %3835 = vmatpush.bf16.msrb.mxu2 %v5336_v10  ;;  %v7664_v10 = vld [vmem:[%s7886_s11] ss:$0 sm:$0xff] }
 0x7db   :  { %v3376_v27 = vpop.f32.mrf.mxu0 }
 0x7dc   :  { %v3377_v16 = vadd.f32 %v3376_v27, %v7530_v53 }
 0x7de   :  { %v3474_v50 = vpack.c.bf16 %v3377_v16, %v3375_v37  ;;  %v5335_v37 = vld [vmem:[#allocation13 + $0x8] sm:$0xff] }
 0x7df   :  { %v8450_v16 = vld [vmem:[#allocation46_spill] sm:$0xff]  ;;  %3836 = vmatpush.bf16.msrb.mxu2 %v5335_v37 }
 0x7e0   :  { %3594 = vmatmul.bf16.gmra.mxu1 %v3474_v50  ;;  %v7640_v45 = vpop.f32.mrf.mxu2  ;;  %v8451_v50 = vld [vmem:[#allocation80_spill] sm:$0xff] }
 0x7e3   :  { %v3379_v43 = vpop.f32.mrf.mxu0  ;;  %3837 = vmatpush.bf16.msrb.mxu2 %v5334_v58 }
 0x7e4   :  { %v3380_v12 = vadd.f32 %v3379_v43, %v7539_v62 }
 0x7e5   :  { %3329 = vmatmul.bf16.gmra.mxu3 %v8448_v59 }
 0x7e6   :  { %3418 = vmatmul.bf16.gmra.mxu0 %v8449_v23 }
 0x7e8   :  { %v3201_v57 = vpop.f32.mrf.mxu2 }
 0x7e9   :  { %v7645_v26 = vadd.f32 %v3201_v57, %v3078_v20  ;;  %v8452_v57 = vld [vmem:[#allocation83_spill] sm:$0xff] }
 0x7eb   :  { %v3381_v53 = vpop.f32.mrf.mxu0 }
 0x7ec   :  { %v3382_v33 = vadd.f32 %v3381_v53, %v7544_v41 }
 0x7ee   :  { %v3475_v14 = vpack.c.bf16 %v3382_v33, %v3380_v12 }
 0x7f0   :  { %3599 = vmatmul.bf16.gmra.mxu1 %v3475_v14  ;;  %v7649_v27 = vpop.f32.mrf.mxu2 }
 0x7f3   :  { %v3384_v22 = vpop.f32.mrf.mxu0 }
 0x7f4   :  { %v3385_v59 = vadd.f32 %v3384_v22, %v7553_v61  ;;  %v3280_v61 = vpop.f32.mrf.mxu3 }
 0x7f5   :  { %3334 = vmatmul.bf16.gmra.mxu3 %v8450_v16 }
 0x7f6   :  { %3423 = vmatmul.bf16.gmra.mxu0 %v8451_v50  ;;  %v8453_v50 = vld [vmem:[#allocation86_spill] sm:$0xff] }
 0x7f8   :  { %v3206_v62 = vpop.f32.mrf.mxu2 }
 0x7f9   :  { %v7654_v43 = vadd.f32 %v3206_v62, %v3080_v39 }
 0x7fb   :  { %v3386_v41 = vpop.f32.mrf.mxu0 }
 0x7fc   :  { %v3387_v23 = vadd.f32 %v3386_v41, %v7558_v21  ;;  %v3282_v58 = vpop.f32.mrf.mxu3 }
 0x7fe   :  { %v3476_v20 = vpack.c.bf16 %v3387_v23, %v3385_v59 }
 0x800   :  { %3604 = vmatmul.bf16.gmra.mxu1 %v3476_v20 }
 0x803   :  { %v3389_v44 = vpop.f32.mrf.mxu0 }
 0x804   :  { %v3390_v56 = vadd.f32 %v3389_v44, %v7566_v55 }
 0x806   :  { %3428 = vmatmul.bf16.gmra.mxu0 %v8452_v57 }
 0x80b   :  { %v3391_v53 = vpop.f32.mrf.mxu0 }
 0x80c   :  { %v3392_v12 = vadd.f32 %v3391_v53, %v7574_v40  ;;  %v3285_v53 = vpop.f32.mrf.mxu3 }
 0x80d   :  { %v3570_v33 = vpop.f32.mrf.mxu1 }
 0x80e   :  { %v3477_v14 = vpack.c.bf16 %v3392_v12, %v3390_v56  ;;  %v3571_v22 = vadd.f32 %v7664_v10, %v3570_v33  ;;  %v8454_v33 = vld [vmem:[#allocation89_spill] sm:$0xff] }
 0x810   :  { %3609 = vmatmul.bf16.gmra.mxu1 %v3477_v14  ;;  %v3690_v55 = vmax.f32 %v3571_v22, 0.0 }
 0x813   :  { %v3394_v21 = vpop.f32.mrf.mxu0 }
 0x814   :  { %v3395_v41 = vadd.f32 %v3394_v21, %v7582_v11 }
 0x815   :  { %v3572_v37 = vpop.f32.mrf.mxu1 }
 0x816   :  { %v3573_v16 = vadd.f32 %v7664_v10, %v3572_v37  ;;  %3433 = vmatmul.bf16.gmra.mxu0 %v8453_v50 }
 0x818   :  { %v3691_v39 = vmax.f32 %v3573_v16, 0.0 }
 0x81a   :  { %v3738_v40 = vpack.c.bf16 %v3691_v39, %v3690_v55  ;;  %v3287_v55 = vpop.f32.mrf.mxu3 }
 0x81b   :  { %v3396_v62 = vpop.f32.mrf.mxu0 }
 0x81c   :  { %v3397_v59 = vadd.f32 %v3396_v62, %v7590_v60  ;;  %3838 = vmatmul.bf16.vlgmr.msrb.gmra.mxu2 %v3738_v40 }
 0x81d   :  { %v3575_v23 = vpop.f32.mrf.mxu1 }
 0x81e   :  { %v3478_v20 = vpack.c.bf16 %v3397_v59, %v3395_v41  ;;  %v3576_v57 = vadd.f32 %v7664_v10, %v3575_v23  ;;  %v8455_v59 = vld [vmem:[#allocation92_spill] sm:$0xff] }
 0x820   :  { %3614 = vmatmul.bf16.gmra.mxu1 %v3478_v20  ;;  %v3692_v14 = vmax.f32 %v3576_v57, 0.0 }
 0x822   :  { %v3290_v57 = vpop.f32.mrf.mxu3 }
 0x823   :  { %v3399_v44 = vpop.f32.mrf.mxu0 }
 0x824   :  { %v3400_v11 = vadd.f32 %v3399_v44, %v7598_v17 }
 0x825   :  { %v3577_v56 = vpop.f32.mrf.mxu1 }
 0x826   :  { %v3578_v12 = vadd.f32 %v7664_v10, %v3577_v56  ;;  %3438 = vmatmul.bf16.gmra.mxu0 %v8454_v33 }
 0x828   :  { %v3693_v22 = vmax.f32 %v3578_v12, 0.0 }
 0x82a   :  { %v3739_v37 = vpack.c.bf16 %v3693_v22, %v3692_v14  ;;  %v3292_v14 = vpop.f32.mrf.mxu3 }
 0x82b   :  { %v3401_v16 = vpop.f32.mrf.mxu0 }
 0x82c   :  { %v3402_v60 = vadd.f32 %v3401_v16, %v7606_v54  ;;  %3843 = vmatmul.bf16.gmra.mxu2 %v3739_v37 }
 0x82d   :  { %v3580_v21 = vpop.f32.mrf.mxu1 }
 0x82e   :  { %v3479_v50 = vpack.c.bf16 %v3402_v60, %v3400_v11  ;;  %v3581_v40 = vadd.f32 %v7664_v10, %v3580_v21  ;;  %v3059_v11 = vunpack.c.h.bf16 %v7291_v2  ;;  %v8456_v21 = vld [vmem:[#allocation95_spill] sm:$0xff] }
 0x830   :  { %3619 = vmatmul.bf16.gmra.mxu1 %v3479_v50  ;;  %v3694_v23 = vmax.f32 %v3581_v40, 0.0  ;;  %v3154_v50 = vadd.f32 %v7513_v38, %v3059_v11  ;;  %v3061_v38 = vunpack.c.h.bf16 %v8422_v6 }
 0x832   :  { %v3283_v40 = vadd.f32 %v3282_v58, %v3154_v50 }
 0x833   :  { %v3404_v39 = vpop.f32.mrf.mxu0 }
 0x834   :  { %v3405_v54 = vadd.f32 %v3404_v39, %v7614_v34 }
 0x835   :  { %v3582_v62 = vpop.f32.mrf.mxu1 }
 0x836   :  { %v3583_v41 = vadd.f32 %v7664_v10, %v3582_v62  ;;  %3443 = vmatmul.bf16.gmra.mxu0 %v8455_v59 }
 0x838   :  { %v3695_v20 = vmax.f32 %v3583_v41, 0.0 }
 0x83a   :  { %v3740_v56 = vpack.c.bf16 %v3695_v20, %v3694_v23  ;;  %v3295_v20 = vpop.f32.mrf.mxu3 }
 0x83b   :  { %v3406_v17 = vpop.f32.mrf.mxu0 }
 0x83c   :  { %v3407_v44 = vadd.f32 %v3406_v17, %v7622_v19  ;;  %3848 = vmatmul.bf16.gmra.mxu2 %v3740_v56  ;;  %v3281_v19 = vadd.f32 %v3280_v61, %v7508_v28  ;;  %v3159_v61 = vadd.f32 %v7527_v15, %v3061_v38  ;;  %v3063_v15 = vunpack.c.h.bf16 %v8427_v29 }
 0x83d   :  { %v3585_v12 = vpop.f32.mrf.mxu1 }
 0x83e   :  { %v3480_v33 = vpack.c.bf16 %v3407_v44, %v3405_v54  ;;  %v3586_v37 = vadd.f32 %v7664_v10, %v3585_v12 }
 0x840   :  { %3624 = vmatmul.bf16.gmra.mxu1 %v3480_v33  ;;  %v3696_v34 = vmax.f32 %v3586_v37, 0.0  ;;  %v8457_v33 = vld [vmem:[#allocation50_spill] sm:$0xff]  ;;  %v3286_v37 = vadd.f32 %v3285_v53, %v7522_v18  ;;  %v3164_v18 = vadd.f32 %v7541_v49, %v3063_v15  ;;  %v3065_v49 = vunpack.c.h.bf16 %v8431_v4 }
 0x842   :  { %v3297_v28 = vpop.f32.mrf.mxu3 }
 0x843   :  { %v3409_v22 = vpop.f32.mrf.mxu0 }
 0x844   :  { %v3410_v59 = vadd.f32 %v3409_v22, %v3281_v19 }
 0x845   :  { %v3587_v16 = vpop.f32.mrf.mxu1 }
 0x846   :  { %v3588_v60 = vadd.f32 %v7664_v10, %v3587_v16  ;;  %3448 = vmatmul.bf16.gmra.mxu0 %v8456_v21  ;;  %v3288_v16 = vadd.f32 %v3287_v55, %v3159_v61 }
 0x848   :  { %v3697_v39 = vmax.f32 %v3588_v60, 0.0 }
 0x84a   :  { %v3741_v62 = vpack.c.bf16 %v3697_v39, %v3696_v34  ;;  %v3300_v6 = vpop.f32.mrf.mxu3 }
 0x84b   :  { %v3411_v41 = vpop.f32.mrf.mxu0 }
 0x84c   :  { %v3412_v23 = vadd.f32 %v3411_v41, %v3283_v40  ;;  %3853 = vmatmul.bf16.gmra.mxu2 %v3741_v62 }
 0x84d   :  { %v3590_v56 = vpop.f32.mrf.mxu1 }
 0x84e   :  { %v3481_v17 = vpack.c.bf16 %v3412_v23, %v3410_v59  ;;  %v3591_v54 = vadd.f32 %v7664_v10, %v3590_v56  ;;  %v8458_v59 = vld [vmem:[#allocation54_spill] sm:$0xff]  ;;  %v3291_v23 = vadd.f32 %v3290_v57, %v7536_v47  ;;  %v3293_v56 = vadd.f32 %v3292_v14, %v3164_v18 }
 0x84f   :  { %v8459_v47 = vld [vmem:[#allocation58_spill] sm:$0xff]  ;;  %v3169_v57 = vadd.f32 %v7555_v30, %v3065_v49  ;;  %v3066_v30 = vunpack.c.l.bf16 %v7439_v51 }
 0x850   :  { %3629 = vmatmul.bf16.gmra.mxu1 %v3481_v17  ;;  %v3698_v58 = vmax.f32 %v3591_v54, 0.0 }
 0x853   :  { %v3414_v2 = vpop.f32.mrf.mxu0 }
 0x854   :  { %v3415_v21 = vadd.f32 %v3414_v2, %v3286_v37  ;;  %v3302_v2 = vpop.f32.mrf.mxu3 }
 0x855   :  { %v3592_v44 = vpop.f32.mrf.mxu1 }
 0x856   :  { %v3593_v12 = vadd.f32 %v7664_v10, %v3592_v44  ;;  %3453 = vmatmul.bf16.gmra.mxu0 %v8457_v33 }
 0x858   :  { %v3699_v22 = vmax.f32 %v3593_v12, 0.0 }
 0x85a   :  { %v3742_v11 = vpack.c.bf16 %v3699_v22, %v3698_v58 }
 0x85b   :  { %v3416_v60 = vpop.f32.mrf.mxu0 }
 0x85c   :  { %v3417_v50 = vadd.f32 %v3416_v60, %v3288_v16  ;;  %3858 = vmatmul.bf16.gmra.mxu2 %v3742_v11  ;;  %v3305_v58 = vpop.f32.mrf.mxu3  ;;  %v3296_v11 = vadd.f32 %v3295_v20, %v7550_v0  ;;  %v3298_v60 = vadd.f32 %v3297_v28, %v3169_v57  ;;  %v3172_v20 = vadd.f32 %v7564_v31, %v3066_v30 }
 0x85d   :  { %v3595_v34 = vpop.f32.mrf.mxu1 }
 0x85e   :  { %v3482_v39 = vpack.c.bf16 %v3417_v50, %v3415_v21  ;;  %v3596_v40 = vadd.f32 %v7664_v10, %v3595_v34 }
 0x860   :  { %3634 = vmatmul.bf16.gmra.mxu1 %v3482_v39  ;;  %v3700_v53 = vmax.f32 %v3596_v40, 0.0 }
 0x863   :  { %v3419_v19 = vpop.f32.mrf.mxu0 }
 0x864   :  { %v3420_v44 = vadd.f32 %v3419_v19, %v3291_v23  ;;  %v3301_v23 = vadd.f32 %v3300_v6, %v3172_v20 }
 0x865   :  { %v3597_v62 = vpop.f32.mrf.mxu1 }
 0x866   :  { %v3598_v41 = vadd.f32 %v7664_v10, %v3597_v62  ;;  %3458 = vmatmul.bf16.gmra.mxu0 %v8458_v59  ;;  %v3307_v62 = vpop.f32.mrf.mxu3  ;;  %v3067_v59 = vunpack.c.h.bf16 %v7439_v51 }
 0x868   :  { %v3701_v55 = vmax.f32 %v3598_v41, 0.0  ;;  %v3174_v28 = vadd.f32 %v7572_v24, %v3067_v59  ;;  %v3068_v24 = vunpack.c.l.bf16 %v7435_v7 }
 0x86a   :  { %v3743_v17 = vpack.c.bf16 %v3701_v55, %v3700_v53  ;;  %v3177_v49 = vadd.f32 %v7580_v46, %v3068_v24 }
 0x86b   :  { %v3421_v54 = vpop.f32.mrf.mxu0 }
 0x86c   :  { %v3422_v38 = vadd.f32 %v3421_v54, %v3293_v56  ;;  %3863 = vmatmul.bf16.gmra.mxu2 %v3743_v17  ;;  %v3303_v56 = vadd.f32 %v3302_v2, %v3174_v28  ;;  %v7715_v2 = vpop.f32.mrf.mxu2 }
 0x86d   :  { %v3600_v12 = vpop.f32.mrf.mxu1 }
 0x86e   :  { %v3483_v33 = vpack.c.bf16 %v3422_v38, %v3420_v44  ;;  %v3601_v61 = vadd.f32 %v7664_v10, %v3600_v12  ;;  %v3310_v55 = vpop.f32.mrf.mxu3 }
 0x870   :  { %3639 = vmatmul.bf16.gmra.mxu1 %v3483_v33  ;;  %v3702_v14 = vmax.f32 %v3601_v61, 0.0 }
 0x873   :  { %v3424_v29 = vpop.f32.mrf.mxu0 }
 0x874   :  { %v3425_v34 = vadd.f32 %v3424_v29, %v3296_v11 }
 0x875   :  { %v3602_v22 = vpop.f32.mrf.mxu1 }
 0x876   :  { %v3603_v37 = vadd.f32 %v7664_v10, %v3602_v22  ;;  %3463 = vmatmul.bf16.gmra.mxu0 %v8459_v47  ;;  %v3312_v51 = vpop.f32.mrf.mxu3  ;;  %v3069_v22 = vunpack.c.h.bf16 %v7435_v7 }
 0x878   :  { %v3703_v16 = vmax.f32 %v3603_v37, 0.0  ;;  %v3179_v37 = vadd.f32 %v7588_v52, %v3069_v22 }
 0x87a   :  { %v3744_v21 = vpack.c.bf16 %v3703_v16, %v3702_v14  ;;  %v3306_v14 = vadd.f32 %v3305_v58, %v3177_v49  ;;  %v3308_v16 = vadd.f32 %v3307_v62, %v3179_v37  ;;  %v3070_v62 = vunpack.c.l.bf16 %v7428_v8 }
 0x87b   :  { %v3426_v50 = vpop.f32.mrf.mxu0 }
 0x87c   :  { %v3427_v39 = vadd.f32 %v3426_v50, %v3298_v60  ;;  %3868 = vmatmul.bf16.gmra.mxu2 %v3744_v21  ;;  %v3182_v59 = vadd.f32 %v7596_v25, %v3070_v62 }
 0x87d   :  { %v3605_v19 = vpop.f32.mrf.mxu1 }
 0x87e   :  { %v3484_v40 = vpack.c.bf16 %v3427_v39, %v3425_v34  ;;  %v3606_v15 = vadd.f32 %v7664_v10, %v3605_v19  ;;  %v3315_v34 = vpop.f32.mrf.mxu3  ;;  %v7722_v19 = vld [vmem:[%s7888_s13] ss:$0 sm:$0xff] }
 0x880   :  { %3644 = vmatmul.bf16.gmra.mxu1 %v3484_v40  ;;  %v3704_v18 = vmax.f32 %v3606_v15, 0.0  ;;  %v3071_v15 = vunpack.c.h.bf16 %v7428_v8 }
 0x882   :  { %v3184_v28 = vadd.f32 %v7604_v48, %v3071_v15 }
 0x883   :  { %v3429_v4 = vpop.f32.mrf.mxu0 }
 0x884   :  { %v3430_v44 = vadd.f32 %v3429_v4, %v3301_v23 }
 0x885   :  { %v3607_v41 = vpop.f32.mrf.mxu1 }
 0x886   :  { %v3608_v0 = vadd.f32 %v7664_v10, %v3607_v41 }
 0x888   :  { %v3705_v53 = vmax.f32 %v3608_v0, 0.0  ;;  %v3317_v0 = vpop.f32.mrf.mxu3 }
 0x88a   :  { %v3745_v17 = vpack.c.bf16 %v3705_v53, %v3704_v18 }
 0x88b   :  { %v3431_v54 = vpop.f32.mrf.mxu0 }
 0x88c   :  { %v3432_v38 = vadd.f32 %v3431_v54, %v3303_v56  ;;  %3873 = vmatmul.bf16.gmra.mxu2 %v3745_v17  ;;  %v3311_v56 = vadd.f32 %v3310_v55, %v3182_v59  ;;  %v3313_v17 = vadd.f32 %v3312_v51, %v3184_v28 }
 0x88d   :  { %v3610_v12 = vpop.f32.mrf.mxu1 }
 0x88e   :  { %v3485_v33 = vpack.c.bf16 %v3432_v38, %v3430_v44  ;;  %v3611_v61 = vadd.f32 %v7664_v10, %v3610_v12 }
 0x890   :  { %3649 = vmatmul.bf16.gmra.mxu1 %v3485_v33  ;;  %v3706_v47 = vmax.f32 %v3611_v61, 0.0  ;;  %v3320_v22 = vpop.f32.mrf.mxu3 }
 0x893   :  { %v3434_v29 = vpop.f32.mrf.mxu0 }
 0x894   :  { %v3435_v21 = vadd.f32 %v3434_v29, %v3306_v14  ;;  %v3073_v14 = vunpack.c.h.bf16 %v7416_v9 }
 0x895   :  { %v3612_v31 = vpop.f32.mrf.mxu1 }
 0x896   :  { %v3613_v6 = vadd.f32 %v7664_v10, %v3612_v31 }
 0x898   :  { %v3707_v57 = vmax.f32 %v3613_v6, 0.0  ;;  %v3322_v15 = vpop.f32.mrf.mxu3 }
 0x89a   :  { %v3746_v11 = vpack.c.bf16 %v3707_v57, %v3706_v47  ;;  %v3072_v57 = vunpack.c.l.bf16 %v7416_v9 }
 0x89b   :  { %v3436_v60 = vpop.f32.mrf.mxu0 }
 0x89c   :  { %v3437_v50 = vadd.f32 %v3436_v60, %v3308_v16  ;;  %3878 = vmatmul.bf16.gmra.mxu2 %v3746_v11 }
 0x89d   :  { %v3615_v39 = vpop.f32.mrf.mxu1 }
 0x89e   :  { %v3486_v7 = vpack.c.bf16 %v3437_v50, %v3435_v21  ;;  %v3616_v58 = vadd.f32 %v7664_v10, %v3615_v39  ;;  %v3187_v21 = vadd.f32 %v7612_v32, %v3072_v57  ;;  %v3189_v50 = vadd.f32 %v7620_v1, %v3073_v14 }
 0x89f   :  { %v3839_v46 = vpop.f32.mrf.mxu2 }
 0x8a0   :  { %3654 = vmatmul.bf16.gmra.mxu1 %v3486_v7  ;;  %v3840_v52 = vadd.f32 %v7722_v19, %v3839_v46  ;;  %v3708_v18 = vmax.f32 %v3616_v58, 0.0  ;;  %v3316_v58 = vadd.f32 %v3315_v34, %v3187_v21  ;;  %v3318_v62 = vadd.f32 %v3317_v0, %v3189_v50 }
 0x8a2   :  { %v3959_v41 = vmax.f32 %v3840_v52, 0.0 }
 0x8a3   :  { %v3439_v40 = vpop.f32.mrf.mxu0 }
 0x8a4   :  { %v7732_v54 = vpack.c.bf16 %v3959_v41, %v3959_v41  ;;  %v3440_v12 = vadd.f32 %v3439_v40, %v3311_v56 }
 0x8a5   :  { %v3617_v4 = vpop.f32.mrf.mxu1 }
 0x8a6   :  { %v3618_v30 = vadd.f32 %v7664_v10, %v3617_v4  ;;  %v4055_v61 = vunpack.c.l.bf16 %v7732_v54  ;;  %v3075_v54 = vunpack.c.h.bf16 %v7403_v35 }
 0x8a7   :  { %v3841_v20 = vpop.f32.mrf.mxu2 }
 0x8a8   :  { %v3709_v53 = vmax.f32 %v3618_v30, 0.0  ;;  %v3842_v23 = vadd.f32 %v7722_v19, %v3841_v20 }
 0x8aa   :  { %v3960_v44 = vmax.f32 %v3842_v23, 0.0  ;;  %v3747_v38 = vpack.c.bf16 %v3709_v53, %v3708_v18 }
 0x8ab   :  { %v3441_v8 = vpop.f32.mrf.mxu0 }
 0x8ac   :  { %v7734_v33 = vpack.c.bf16 %v3960_v44, %v3960_v44  ;;  %v3442_v29 = vadd.f32 %v3441_v8, %v3313_v17  ;;  %3883 = vmatmul.bf16.gmra.mxu2 %v3747_v38  ;;  %v3325_v44 = vpop.f32.mrf.mxu3 }
 0x8ad   :  { %v3620_v25 = vpop.f32.mrf.mxu1 }
 0x8ae   :  { %v4056_v48 = vunpack.c.l.bf16 %v7734_v33  ;;  %v3487_v31 = vpack.c.bf16 %v3442_v29, %v3440_v12  ;;  %v3621_v37 = vadd.f32 %v7664_v10, %v3620_v25  ;;  %v3194_v29 = vadd.f32 %v7631_v5, %v3075_v54 }
 0x8af   :  { %v3844_v24 = vpop.f32.mrf.mxu2 }
 0x8b0   :  { %v4248_v55 = vadd.f32 %v4056_v48, %v4055_v61  ;;  %v3845_v51 = vadd.f32 %v7722_v19, %v3844_v24  ;;  %3659 = vmatmul.bf16.gmra.mxu1 %v3487_v31  ;;  %v3710_v7 = vmax.f32 %v3621_v37, 0.0  ;;  %v3323_v37 = vadd.f32 %v3322_v15, %v3194_v29 }
 0x8b2   :  { %v3961_v6 = vmax.f32 %v3845_v51, 0.0 }
 0x8b3   :  { %v3444_v49 = vpop.f32.mrf.mxu0 }
 0x8b4   :  { %v7742_v47 = vpack.c.bf16 %v3961_v6, %v3961_v6  ;;  %v3445_v30 = vadd.f32 %v3444_v49, %v3316_v58  ;;  %v3321_v49 = vadd.f32 %v3320_v22, %v7627_v3 }
 0x8b5   :  { %v3622_v16 = vpop.f32.mrf.mxu1 }
 0x8b6   :  { %v4057_v11 = vunpack.c.l.bf16 %v7742_v47  ;;  %v3623_v60 = vadd.f32 %v7664_v10, %v3622_v16 }
 0x8b7   :  { %v3846_v39 = vpop.f32.mrf.mxu2 }
 0x8b8   :  { %v4249_v46 = vadd.f32 %v4248_v55, %v4057_v11  ;;  %v3711_v52 = vmax.f32 %v3623_v60, 0.0  ;;  %v3847_v40 = vadd.f32 %v7722_v19, %v3846_v39 }
 0x8ba   :  { %v3962_v9 = vmax.f32 %v3847_v40, 0.0  ;;  %v3748_v4 = vpack.c.bf16 %v3711_v52, %v3710_v7  ;;  %v3327_v7 = vpop.f32.mrf.mxu3 }
 0x8bb   :  { %v3446_v41 = vpop.f32.mrf.mxu0 }
 0x8bc   :  { %v7753_v59 = vpack.c.bf16 %v3962_v9, %v3962_v9  ;;  %v3447_v32 = vadd.f32 %v3446_v41, %v3318_v62  ;;  %3888 = vmatmul.bf16.gmra.mxu2 %v3748_v4  ;;  %v3077_v9 = vunpack.c.h.bf16 %v7391_v13 }
 0x8bd   :  { %v3625_v1 = vpop.f32.mrf.mxu1 }
 0x8be   :  { %v4058_v20 = vunpack.c.l.bf16 %v7753_v59  ;;  %v3488_v28 = vpack.c.bf16 %v3447_v32, %v3445_v30  ;;  %v3626_v23 = vadd.f32 %v7664_v10, %v3625_v1  ;;  %v3199_v30 = vadd.f32 %v7640_v45, %v3077_v9 }
 0x8bf   :  { %v3849_v18 = vpop.f32.mrf.mxu2 }
 0x8c0   :  { %v4250_v53 = vadd.f32 %v4249_v46, %v4058_v20  ;;  %v3850_v34 = vadd.f32 %v7722_v19, %v3849_v18  ;;  %3664 = vmatmul.bf16.gmra.mxu1 %v3488_v28  ;;  %v3712_v25 = vmax.f32 %v3626_v23, 0.0  ;;  %v3328_v13 = vadd.f32 %v3327_v7, %v3199_v30 }
 0x8c2   :  { %v3963_v0 = vmax.f32 %v3850_v34, 0.0  ;;  %v3326_v34 = vadd.f32 %v3325_v44, %v7636_v42 }
 0x8c3   :  { %v3449_v56 = vpop.f32.mrf.mxu0 }
 0x8c4   :  { %v4011_v17 = vpack.c.bf16 %v3963_v0, %v3963_v0  ;;  %v3450_v16 = vadd.f32 %v3449_v56, %v3321_v49 }
 0x8c5   :  { %v3627_v38 = vpop.f32.mrf.mxu1 }
 0x8c6   :  { %v4059_v8 = vunpack.c.l.bf16 %v4011_v17  ;;  %v3628_v12 = vadd.f32 %v7664_v10, %v3627_v38 }
 0x8c7   :  { %v3851_v31 = vpop.f32.mrf.mxu2 }
 0x8c8   :  { %v4251_v24 = vadd.f32 %v4250_v53, %v4059_v8  ;;  %v7763_v55 = vmax.f32 %v4055_v61, %v4059_v8  ;;  %v3713_v51 = vmax.f32 %v3628_v12, 0.0  ;;  %v3852_v6 = vadd.f32 %v7722_v19, %v3851_v31  ;;  %v3330_v53 = vpop.f32.mrf.mxu3 }
 0x8ca   :  { %v3964_v57 = vmax.f32 %v3852_v6, 0.0  ;;  %v3749_v35 = vpack.c.bf16 %v3713_v51, %v3712_v25  ;;  %v3079_v6 = vunpack.c.h.bf16 %v7378_v36 }
 0x8cb   :  { %v3451_v14 = vpop.f32.mrf.mxu0 }
 0x8cc   :  { %v4012_v60 = vpack.c.bf16 %v3964_v57, %v3964_v57  ;;  %v3452_v21 = vadd.f32 %v3451_v14, %v3323_v37  ;;  %3893 = vmatmul.bf16.gmra.mxu2 %v3749_v35  ;;  %v3204_v35 = vadd.f32 %v7649_v27, %v3079_v6 }
 0x8cd   :  { %v3630_v50 = vpop.f32.mrf.mxu1 }
 0x8ce   :  { %v4060_v5 = vunpack.c.l.bf16 %v4012_v60  ;;  %v3489_v39 = vpack.c.bf16 %v3452_v21, %v3450_v16  ;;  %v3631_v40 = vadd.f32 %v7664_v10, %v3630_v50  ;;  %v3331_v50 = vadd.f32 %v3330_v53, %v7645_v26 }
 0x8cf   :  { %v3854_v46 = vpop.f32.mrf.mxu2 }
 0x8d0   :  { %v4252_v61 = vadd.f32 %v4251_v24, %v4060_v5  ;;  %v7769_v52 = vmax.f32 %v4056_v48, %v4060_v5  ;;  %v3855_v3 = vadd.f32 %v7722_v19, %v3854_v46  ;;  %3669 = vmatmul.bf16.gmra.mxu1 %v3489_v39  ;;  %v3714_v32 = vmax.f32 %v3631_v40, 0.0  ;;  %v3332_v44 = vpop.f32.mrf.mxu3 }
 0x8d1   :  { %v3333_v5 = vadd.f32 %v3332_v44, %v3204_v35 }
 0x8d2   :  { %v3965_v22 = vmax.f32 %v3855_v3, 0.0 }
 0x8d3   :  { %v3454_v58 = vpop.f32.mrf.mxu0 }
 0x8d4   :  { %v4013_v62 = vpack.c.bf16 %v3965_v22, %v3965_v22  ;;  %v3455_v17 = vadd.f32 %v3454_v58, %v3326_v34 }
 0x8d5   :  { %v3632_v4 = vpop.f32.mrf.mxu1 }
 0x8d6   :  { %v4061_v15 = vunpack.c.l.bf16 %v4013_v62  ;;  %v3633_v41 = vadd.f32 %v7664_v10, %v3632_v4 }
 0x8d7   :  { %v3856_v33 = vpop.f32.mrf.mxu2 }
 0x8d8   :  { %v4253_v48 = vadd.f32 %v4252_v61, %v4061_v15  ;;  %v7778_v1 = vmax.f32 %v4057_v11, %v4061_v15  ;;  %v3715_v28 = vmax.f32 %v3633_v41, 0.0  ;;  %v3857_v18 = vadd.f32 %v7722_v19, %v3856_v33  ;;  %v3335_v27 = vpop.f32.mrf.mxu3 }
 0x8da   :  { %v3750_v0 = vpack.c.bf16 %v3715_v28, %v3714_v32  ;;  %v3966_v23 = vmax.f32 %v3857_v18, 0.0  ;;  %v3081_v32 = vunpack.c.h.bf16 %v7366_v63 }
 0x8db   :  { %v3456_v56 = vpop.f32.mrf.mxu0 }
 0x8dc   :  { %v4014_v54 = vpack.c.bf16 %v3966_v23, %v3966_v23  ;;  %v3457_v45 = vadd.f32 %v3456_v56, %v3328_v13  ;;  %3898 = vmatmul.bf16.gmra.mxu2 %v3750_v0  ;;  %v3209_v18 = vadd.f32 %v7715_v2, %v3081_v32 }
 0x8dd   :  { %v3635_v38 = vpop.f32.mrf.mxu1 }
 0x8de   :  { %v4062_v8 = vunpack.c.l.bf16 %v4014_v54  ;;  %v3490_v12 = vpack.c.bf16 %v3457_v45, %v3455_v17  ;;  %v3636_v31 = vadd.f32 %v7664_v10, %v3635_v38  ;;  %v3336_v17 = vadd.f32 %v3335_v27, %v7654_v43 }
 0x8df   :  { %v3859_v47 = vpop.f32.mrf.mxu2 }
 0x8e0   :  { %v4254_v11 = vadd.f32 %v4253_v48, %v4062_v8  ;;  %v7784_v29 = vmax.f32 %v4058_v20, %v4062_v8  ;;  %v3860_v25 = vadd.f32 %v7722_v19, %v3859_v47  ;;  %3674 = vmatmul.bf16.gmra.mxu1 %v3490_v12  ;;  %v3716_v59 = vmax.f32 %v3636_v31, 0.0  ;;  %v3337_v53 = vpop.f32.mrf.mxu3 }
 0x8e1   :  { %v3338_v54 = vadd.f32 %v3337_v53, %v3209_v18 }
 0x8e2   :  { %v3967_v42 = vmax.f32 %v3860_v25, 0.0 }
 0x8e3   :  { %v3459_v24 = vpop.f32.mrf.mxu0 }
 0x8e4   :  { %v4015_v51 = vpack.c.bf16 %v3967_v42, %v3967_v42  ;;  %v3460_v46 = vadd.f32 %v3459_v24, %v3331_v50 }
 0x8e5   :  { %v3637_v49 = vpop.f32.mrf.mxu1 }
 0x8e6   :  { %v4063_v37 = vunpack.c.l.bf16 %v4015_v51  ;;  %v3638_v57 = vadd.f32 %v7664_v10, %v3637_v49 }
 0x8e7   :  { %v3861_v20 = vpop.f32.mrf.mxu2 }
 0x8e8   :  { %v4255_v14 = vadd.f32 %v4254_v11, %v4063_v37  ;;  %v7792_v16 = vmax.f32 %v7763_v55, %v4063_v37  ;;  %v3717_v60 = vmax.f32 %v3638_v57, 0.0  ;;  %v3862_v21 = vadd.f32 %v7722_v19, %v3861_v20 }
 0x8ea   :  { %v3751_v39 = vpack.c.bf16 %v3717_v60, %v3716_v59  ;;  %v3968_v36 = vmax.f32 %v3862_v21, 0.0 }
 0x8eb   :  { %v3461_v7 = vpop.f32.mrf.mxu0 }
 0x8ec   :  { %v4016_v61 = vpack.c.bf16 %v3968_v36, %v3968_v36  ;;  %v3462_v3 = vadd.f32 %v3461_v7, %v3333_v5  ;;  %3903 = vmatmul.bf16.gmra.mxu2 %v3751_v39 }
 0x8ed   :  { %v3640_v22 = vpop.f32.mrf.mxu1 }
 0x8ee   :  { %v4064_v40 = vunpack.c.l.bf16 %v4016_v61  ;;  %v3491_v58 = vpack.c.bf16 %v3462_v3, %v3460_v46  ;;  %v3641_v15 = vadd.f32 %v7664_v10, %v3640_v22 }
 0x8ef   :  { %v3864_v62 = vpop.f32.mrf.mxu2 }
 0x8f0   :  { %v4256_v55 = vadd.f32 %v4255_v14, %v4064_v40  ;;  %v4354_v9 = vmax.f32 %v7769_v52, %v4064_v40  ;;  %v3865_v4 = vadd.f32 %v7722_v19, %v3864_v62  ;;  %3679 = vmatmul.bf16.gmra.mxu1 %v3491_v58  ;;  %v3718_v34 = vmax.f32 %v3641_v15, 0.0 }
 0x8f2   :  { %v3969_v26 = vmax.f32 %v3865_v4, 0.0 }
 0x8f3   :  { %v3464_v41 = vpop.f32.mrf.mxu0 }
 0x8f4   :  { %v4017_v30 = vpack.c.bf16 %v3969_v26, %v3969_v26  ;;  %v3465_v8 = vadd.f32 %v3464_v41, %v3336_v17 }
 0x8f5   :  { %v3642_v33 = vpop.f32.mrf.mxu1 }
 0x8f6   :  { %v4065_v48 = vunpack.c.l.bf16 %v4017_v30  ;;  %v3643_v28 = vadd.f32 %v7664_v10, %v3642_v33 }
 0x8f7   :  { %v3866_v13 = vpop.f32.mrf.mxu2 }
 0x8f8   :  { %v4257_v52 = vadd.f32 %v4256_v55, %v4065_v48  ;;  %v4355_v0 = vmax.f32 %v7778_v1, %v4065_v48  ;;  %v3719_v23 = vmax.f32 %v3643_v28, 0.0  ;;  %v3867_v56 = vadd.f32 %v7722_v19, %v3866_v13 }
 0x8fa   :  { %v3752_v45 = vpack.c.bf16 %v3719_v23, %v3718_v34  ;;  %v3970_v63 = vmax.f32 %v3867_v56, 0.0 }
 0x8fb   :  { %v3466_v38 = vpop.f32.mrf.mxu0 }
 0x8fc   :  { %v4018_v12 = vpack.c.bf16 %v3970_v63, %v3970_v63  ;;  %v3467_v47 = vadd.f32 %v3466_v38, %v3338_v54  ;;  %3908 = vmatmul.bf16.gmra.mxu2 %v3752_v45 }
 0x8fd   :  { %v3645_v2 = vpop.f32.mrf.mxu1 }
 0x8fe   :  { %v4066_v11 = vunpack.c.l.bf16 %v4018_v12  ;;  %v3492_v25 = vpack.c.bf16 %v3467_v47, %v3465_v8  ;;  %v3646_v43 = vadd.f32 %v7664_v10, %v3645_v2 }
 0x8ff   :  { %v3869_v42 = vpop.f32.mrf.mxu2 }
 0x900   :  { %v4258_v44 = vadd.f32 %v4257_v52, %v4066_v11  ;;  %v4356_v1 = vmax.f32 %v7784_v29, %v4066_v11  ;;  %v3870_v31 = vadd.f32 %v7722_v19, %v3869_v42  ;;  %3684 = vmatmul.bf16.gmra.mxu1 %v3492_v25  ;;  %v3720_v57 = vmax.f32 %v3646_v43, 0.0 }
 0x902   :  { %v3971_v24 = vmax.f32 %v3870_v31, 0.0 }
 0x904   :  { %v4019_v51 = vpack.c.bf16 %v3971_v24, %v3971_v24 }
 0x905   :  { %v3647_v6 = vpop.f32.mrf.mxu1 }
 0x906   :  { %v4067_v49 = vunpack.c.l.bf16 %v4019_v51  ;;  %v3648_v37 = vadd.f32 %v7664_v10, %v3647_v6 }
 0x907   :  { %v3871_v35 = vpop.f32.mrf.mxu2 }
 0x908   :  { %v4259_v59 = vadd.f32 %v4258_v44, %v4067_v49  ;;  %v4357_v20 = vmax.f32 %v7792_v16, %v4067_v49  ;;  %v3721_v14 = vmax.f32 %v3648_v37, 0.0  ;;  %v3872_v60 = vadd.f32 %v7722_v19, %v3871_v35 }
 0x90a   :  { %v3753_v29 = vpack.c.bf16 %v3721_v14, %v3720_v57  ;;  %v3972_v21 = vmax.f32 %v3872_v60, 0.0 }
 0x90c   :  { %v4020_v50 = vpack.c.bf16 %v3972_v21, %v3972_v21  ;;  %3913 = vmatmul.bf16.gmra.mxu2 %v3753_v29 }
 0x90d   :  { %v3650_v5 = vpop.f32.mrf.mxu1 }
 0x90e   :  { %v4068_v39 = vunpack.c.l.bf16 %v4020_v50  ;;  %v3651_v27 = vadd.f32 %v7664_v10, %v3650_v5 }
 0x90f   :  { %v3874_v36 = vpop.f32.mrf.mxu2 }
 0x910   :  { %v4260_v7 = vadd.f32 %v4259_v59, %v4068_v39  ;;  %v4358_v46 = vmax.f32 %v4354_v9, %v4068_v39  ;;  %v3875_v61 = vadd.f32 %v7722_v19, %v3874_v36  ;;  %v3722_v62 = vmax.f32 %v3651_v27, 0.0 }
 0x912   :  { %v3973_v3 = vmax.f32 %v3875_v61, 0.0 }
 0x914   :  { %v4021_v22 = vpack.c.bf16 %v3973_v3, %v3973_v3 }
 0x915   :  { %v3652_v40 = vpop.f32.mrf.mxu1 }
 0x916   :  { %v4069_v16 = vunpack.c.l.bf16 %v4021_v22  ;;  %v3653_v58 = vadd.f32 %v7664_v10, %v3652_v40 }
 0x917   :  { %v3876_v55 = vpop.f32.mrf.mxu2 }
 0x918   :  { %v4261_v4 = vadd.f32 %v4260_v7, %v4069_v16  ;;  %v4359_v26 = vmax.f32 %v4355_v0, %v4069_v16  ;;  %v3723_v15 = vmax.f32 %v3653_v58, 0.0  ;;  %v3877_v41 = vadd.f32 %v7722_v19, %v3876_v55 }
 0x91a   :  { %v3754_v30 = vpack.c.bf16 %v3723_v15, %v3722_v62  ;;  %v3974_v32 = vmax.f32 %v3877_v41, 0.0 }
 0x91c   :  { %v4022_v9 = vpack.c.bf16 %v3974_v32, %v3974_v32  ;;  %3918 = vmatmul.bf16.gmra.mxu2 %v3754_v30 }
 0x91d   :  { %v3655_v33 = vpop.f32.mrf.mxu1 }
 0x91e   :  { %v4070_v48 = vunpack.c.l.bf16 %v4022_v9  ;;  %v3656_v52 = vadd.f32 %v7664_v10, %v3655_v33 }
 0x91f   :  { %v3879_v28 = vpop.f32.mrf.mxu2 }
 0x920   :  { %v4262_v18 = vadd.f32 %v4261_v4, %v4070_v48  ;;  %v4360_v53 = vmax.f32 %v4356_v1, %v4070_v48  ;;  %v3880_v34 = vadd.f32 %v7722_v19, %v3879_v28  ;;  %v3724_v54 = vmax.f32 %v3656_v52, 0.0 }
 0x922   :  { %v3975_v13 = vmax.f32 %v3880_v34, 0.0 }
 0x924   :  { %v4023_v23 = vpack.c.bf16 %v3975_v13, %v3975_v13 }
 0x925   :  { %v3657_v56 = vpop.f32.mrf.mxu1 }
 0x926   :  { %v4071_v0 = vunpack.c.l.bf16 %v4023_v23  ;;  %v3658_v17 = vadd.f32 %v7664_v10, %v3657_v56 }
 0x927   :  { %v3881_v45 = vpop.f32.mrf.mxu2 }
 0x928   :  { %v4263_v63 = vadd.f32 %v4262_v18, %v4071_v0  ;;  %v4361_v38 = vmax.f32 %v4357_v20, %v4071_v0  ;;  %v3725_v8 = vmax.f32 %v3658_v17, 0.0  ;;  %v3882_v12 = vadd.f32 %v7722_v19, %v3881_v45 }
 0x92a   :  { %v3755_v47 = vpack.c.bf16 %v3725_v8, %v3724_v54  ;;  %v3976_v2 = vmax.f32 %v3882_v12, 0.0 }
 0x92c   :  { %v4024_v11 = vpack.c.bf16 %v3976_v2, %v3976_v2  ;;  %3923 = vmatmul.bf16.gmra.mxu2 %v3755_v47 }
 0x92d   :  { %v3660_v25 = vpop.f32.mrf.mxu1 }
 0x92e   :  { %v4072_v42 = vunpack.c.l.bf16 %v4024_v11  ;;  %v3661_v51 = vadd.f32 %v7664_v10, %v3660_v25 }
 0x92f   :  { %v3884_v44 = vpop.f32.mrf.mxu2 }
 0x930   :  { %v4264_v1 = vadd.f32 %v4263_v63, %v4072_v42  ;;  %v4362_v31 = vmax.f32 %v4358_v46, %v4072_v42  ;;  %v3885_v24 = vadd.f32 %v7722_v19, %v3884_v44  ;;  %v3726_v35 = vmax.f32 %v3661_v51, 0.0 }
 0x932   :  { %v3977_v43 = vmax.f32 %v3885_v24, 0.0 }
 0x934   :  { %v4025_v6 = vpack.c.bf16 %v3977_v43, %v3977_v43 }
 0x935   :  { %v3662_v49 = vpop.f32.mrf.mxu1 }
 0x936   :  { %v4073_v37 = vunpack.c.l.bf16 %v4025_v6  ;;  %v3663_v57 = vadd.f32 %v7664_v10, %v3662_v49 }
 0x937   :  { %v3886_v59 = vpop.f32.mrf.mxu2 }
 0x938   :  { %v4265_v20 = vadd.f32 %v4264_v1, %v4073_v37  ;;  %v4363_v14 = vmax.f32 %v4359_v26, %v4073_v37  ;;  %v3727_v60 = vmax.f32 %v3663_v57, 0.0  ;;  %v3887_v29 = vadd.f32 %v7722_v19, %v3886_v59 }
 0x93a   :  { %v3756_v21 = vpack.c.bf16 %v3727_v60, %v3726_v35  ;;  %v3978_v50 = vmax.f32 %v3887_v29, 0.0 }
 0x93c   :  { %v4026_v5 = vpack.c.bf16 %v3978_v50, %v3978_v50  ;;  %3928 = vmatmul.bf16.gmra.mxu2 %v3756_v21 }
 0x93d   :  { %v3665_v39 = vpop.f32.mrf.mxu1 }
 0x93e   :  { %v4074_v36 = vunpack.c.l.bf16 %v4026_v5  ;;  %v3666_v22 = vadd.f32 %v7664_v10, %v3665_v39 }
 0x93f   :  { %v3889_v7 = vpop.f32.mrf.mxu2 }
 0x940   :  { %v4266_v46 = vadd.f32 %v4265_v20, %v4074_v36  ;;  %v4364_v61 = vmax.f32 %v4360_v53, %v4074_v36  ;;  %v3890_v3 = vadd.f32 %v7722_v19, %v3889_v7  ;;  %v3728_v55 = vmax.f32 %v3666_v22, 0.0 }
 0x942   :  { %v3979_v27 = vmax.f32 %v3890_v3, 0.0 }
 0x944   :  { %v4027_v40 = vpack.c.bf16 %v3979_v27, %v3979_v27 }
 0x945   :  { %v3667_v16 = vpop.f32.mrf.mxu1 }
 0x946   :  { %v4075_v58 = vunpack.c.l.bf16 %v4027_v40  ;;  %v3668_v62 = vadd.f32 %v7664_v10, %v3667_v16 }
 0x947   :  { %v3891_v4 = vpop.f32.mrf.mxu2 }
 0x948   :  { %v4267_v26 = vadd.f32 %v4266_v46, %v4075_v58  ;;  %v4365_v15 = vmax.f32 %v4361_v38, %v4075_v58  ;;  %v3729_v41 = vmax.f32 %v3668_v62, 0.0  ;;  %v3892_v30 = vadd.f32 %v7722_v19, %v3891_v4 }
 0x94a   :  { %v3757_v32 = vpack.c.bf16 %v3729_v41, %v3728_v55  ;;  %v3980_v9 = vmax.f32 %v3892_v30, 0.0 }
 0x94c   :  { %v4028_v33 = vpack.c.bf16 %v3980_v9, %v3980_v9  ;;  %3933 = vmatmul.bf16.gmra.mxu2 %v3757_v32 }
 0x94d   :  { %v3670_v48 = vpop.f32.mrf.mxu1 }
 0x94e   :  { %v4076_v28 = vunpack.c.l.bf16 %v4028_v33  ;;  %v3671_v23 = vadd.f32 %v7664_v10, %v3670_v48 }
 0x94f   :  { %v3894_v18 = vpop.f32.mrf.mxu2 }
 0x950   :  { %v4268_v53 = vadd.f32 %v4267_v26, %v4076_v28  ;;  %v4366_v34 = vmax.f32 %v4362_v31, %v4076_v28  ;;  %v3895_v13 = vadd.f32 %v7722_v19, %v3894_v18  ;;  %v3730_v45 = vmax.f32 %v3671_v23, 0.0 }
 0x952   :  { %v3981_v52 = vmax.f32 %v3895_v13, 0.0 }
 0x954   :  { %v4029_v56 = vpack.c.bf16 %v3981_v52, %v3981_v52 }
 0x955   :  { %v3672_v0 = vpop.f32.mrf.mxu1 }
 0x956   :  { %v4077_v17 = vunpack.c.l.bf16 %v4029_v56  ;;  %v3673_v54 = vadd.f32 %v7664_v10, %v3672_v0  ;;  %v5434_v10 = vld [vmem:[%s7886_s11] ss:$0 sm:$0xff] }
 0x957   :  { %v3896_v63 = vpop.f32.mrf.mxu2 }
 0x958   :  { %v4269_v38 = vadd.f32 %v4268_v53, %v4077_v17  ;;  %v4367_v8 = vmax.f32 %v4363_v14, %v4077_v17  ;;  %v3731_v12 = vmax.f32 %v3673_v54, 0.0  ;;  %v3897_v47 = vadd.f32 %v7722_v19, %v3896_v63 }
 0x95a   :  { %v3758_v2 = vpack.c.bf16 %v3731_v12, %v3730_v45  ;;  %v3982_v11 = vmax.f32 %v3897_v47, 0.0 }
 0x95c   :  { %v4030_v25 = vpack.c.bf16 %v3982_v11, %v3982_v11  ;;  %3938 = vmatmul.bf16.gmra.mxu2 %v3758_v2  ;;  %v5357_v11 = vld [vmem:[#allocation15 + $0x78] sm:$0xff] }
 0x95d   :  { %v3675_v42 = vpop.f32.mrf.mxu1  ;;  %4487 = vmatpush.bf16.msra.mxu3 %v5357_v11 }
 0x95e   :  { %v4078_v44 = vunpack.c.l.bf16 %v4030_v25  ;;  %v3676_v6 = vadd.f32 %v5434_v10, %v3675_v42  ;;  %v5356_v25 = vld [vmem:[#allocation15 + $0x70] sm:$0xff] }
 0x95f   :  { %v3899_v1 = vpop.f32.mrf.mxu2 }
 0x960   :  { %v4270_v31 = vadd.f32 %v4269_v38, %v4078_v44  ;;  %v4368_v24 = vmax.f32 %v4364_v61, %v4078_v44  ;;  %v3900_v43 = vadd.f32 %v7722_v19, %v3899_v1  ;;  %v3732_v59 = vmax.f32 %v3676_v6, 0.0  ;;  %v5355_v44 = vld [vmem:[#allocation15 + $0x68] sm:$0xff]  ;;  %v5354_v1 = vld [vmem:[#allocation15 + $0x60] sm:$0xff] }
 0x961   :  { %4488 = vmatpush.bf16.msra.mxu3 %v5356_v25  ;;  %v5350_v6 = vld [vmem:[#allocation15 + $0x40] sm:$0xff] }
 0x962   :  { %v3983_v51 = vmax.f32 %v3900_v43, 0.0  ;;  %v5352_v43 = vld [vmem:[#allocation15 + $0x50] sm:$0xff] }
 0x964   :  { %v4031_v49 = vpack.c.bf16 %v3983_v51, %v3983_v51 }
 0x965   :  { %v3677_v37 = vpop.f32.mrf.mxu1  ;;  %4489 = vmatpush.bf16.msra.mxu3 %v5355_v44 }
 0x966   :  { %v4079_v57 = vunpack.c.l.bf16 %v4031_v49  ;;  %v3678_v35 = vadd.f32 %v5434_v10, %v3677_v37  ;;  %v5349_v37 = vld [vmem:[#allocation15 + $0x38] sm:$0xff] }
 0x967   :  { %v3901_v20 = vpop.f32.mrf.mxu2 }
 0x968   :  { %v4271_v14 = vadd.f32 %v4270_v31, %v4079_v57  ;;  %v4369_v60 = vmax.f32 %v4365_v15, %v4079_v57  ;;  %v3733_v29 = vmax.f32 %v3678_v35, 0.0  ;;  %v3902_v21 = vadd.f32 %v7722_v19, %v3901_v20  ;;  %v5348_v57 = vld [vmem:[#allocation15 + $0x30] sm:$0xff] }
 0x969   :  { %4490 = vmatpush.bf16.msra.mxu3 %v5354_v1 }
 0x96a   :  { %v3759_v50 = vpack.c.bf16 %v3733_v29, %v3732_v59  ;;  %v3984_v5 = vmax.f32 %v3902_v21, 0.0 }
 0x96c   :  { %v4032_v39 = vpack.c.bf16 %v3984_v5, %v3984_v5  ;;  %3943 = vmatmul.bf16.gmra.mxu2 %v3759_v50  ;;  %v5346_v50 = vld [vmem:[#allocation15 + $0x20] sm:$0xff] }
 0x96d   :  { %v3680_v36 = vpop.f32.mrf.mxu1 }
 0x96e   :  { %v4080_v7 = vunpack.c.l.bf16 %v4032_v39  ;;  %v3681_v40 = vadd.f32 %v5434_v10, %v3680_v36 }
 0x96f   :  { %v3904_v46 = vpop.f32.mrf.mxu2 }
 0x970   :  { %v4272_v61 = vadd.f32 %v4271_v14, %v4080_v7  ;;  %v7836_v3 = vmax.f32 %v4366_v34, %v4080_v7  ;;  %v3905_v27 = vadd.f32 %v7722_v19, %v3904_v46  ;;  %v3734_v4 = vmax.f32 %v3681_v40, 0.0  ;;  %v5347_v14 = vld [vmem:[#allocation15 + $0x28] sm:$0xff] }
 0x972   :  { %v3985_v22 = vmax.f32 %v3905_v27, 0.0 }
 0x974   :  { %v4033_v16 = vpack.c.bf16 %v3985_v22, %v3985_v22 }
 0x975   :  { %v3682_v58 = vpop.f32.mrf.mxu1 }
 0x976   :  { %v4081_v62 = vunpack.c.l.bf16 %v4033_v16  ;;  %v3683_v55 = vadd.f32 %v5434_v10, %v3682_v58 }
 0x977   :  { %v3906_v26 = vpop.f32.mrf.mxu2 }
 0x978   :  { %v4273_v15 = vadd.f32 %v4272_v61, %v4081_v62  ;;  %v7839_v41 = vmax.f32 %v4367_v8, %v4081_v62  ;;  %v3735_v30 = vmax.f32 %v3683_v55, 0.0  ;;  %v3907_v32 = vadd.f32 %v7722_v19, %v3906_v26  ;;  %v5345_v61 = vld [vmem:[#allocation15 + $0x18] sm:$0xff]  ;;  %v5344_v55 = vld [vmem:[#allocation15 + $0x10] sm:$0xff] }
 0x97a   :  { %v3760_v9 = vpack.c.bf16 %v3735_v30, %v3734_v4  ;;  %v3986_v33 = vmax.f32 %v3907_v32, 0.0 }
 0x97c   :  { %v4034_v48 = vpack.c.bf16 %v3986_v33, %v3986_v33  ;;  %3948 = vmatmul.bf16.gmra.mxu2 %v3760_v9 }
 0x97d   :  { %v3685_v28 = vpop.f32.mrf.mxu1 }
 0x97e   :  { %v4082_v18 = vunpack.c.l.bf16 %v4034_v48  ;;  %v3686_v56 = vadd.f32 %v5434_v10, %v3685_v28 }
 0x97f   :  { %v3909_v53 = vpop.f32.mrf.mxu2 }
 0x980   :  { %v4274_v34 = vadd.f32 %v4273_v15, %v4082_v18  ;;  %v7842_v13 = vmax.f32 %v4368_v24, %v4082_v18  ;;  %v3910_v52 = vadd.f32 %v7722_v19, %v3909_v53  ;;  %v3736_v38 = vmax.f32 %v3686_v56, 0.0  ;;  %v5353_v24 = vld [vmem:[#allocation15 + $0x58] sm:$0xff]  ;;  %v5343_v18 = vld [vmem:[#allocation15 + $0x8] sm:$0xff] }
 0x981   :  { %4491 = vmatpush.bf16.msra.mxu3 %v5353_v24  ;;  %v4103_v56 = vlaneseq }
 0x982   :  { %v3987_v23 = vmax.f32 %v3910_v52, 0.0 }
 0x984   :  { %v4035_v0 = vpack.c.bf16 %v3987_v23, %v3987_v23 }
 0x985   :  { %v3687_v17 = vpop.f32.mrf.mxu1  ;;  %4492 = vmatpush.bf16.msra.mxu3 %v5352_v43 }
 0x986   :  { %v4083_v54 = vunpack.c.l.bf16 %v4035_v0  ;;  %v3688_v45 = vadd.f32 %v5434_v10, %v3687_v17  ;;  %v5351_v10 = vld [vmem:[#allocation15 + $0x48] sm:$0xff] }
 0x987   :  { %v3911_v63 = vpop.f32.mrf.mxu2 }
 0x988   :  { %v7845_v8 = vadd.f32 %v4274_v34, %v4083_v54  ;;  %v7847_v12 = vmax.f32 %v4369_v60, %v4083_v54  ;;  %v3737_v47 = vmax.f32 %v3688_v45, 0.0  ;;  %v3912_v7 = vadd.f32 %v7722_v19, %v3911_v63  ;;  %v5342_v45 = vld [vmem:[#allocation15] sm:$0xff] }
 0x989   :  { %4493 = vmatpush.bf16.msra.mxu3 %v5351_v10 }
 0x98a   :  { %v3761_v2 = vpack.c.bf16 %v3737_v47, %v3736_v38  ;;  %v3988_v62 = vmax.f32 %v3912_v7, 0.0 }
 0x98c   :  { %3953 = vmatmul.bf16.gmra.mxu2 %v3761_v2  ;;  %v4036_v33 = vpack.c.bf16 %v3988_v62, %v3988_v62  ;;  %v5365_v62 = vld [vmem:[#allocation15 + $0xb8] sm:$0xff] }
 0x98d   :  { %4494 = vmatpush.bf16.msra.mxu3 %v5350_v6 }
 0x98e   :  { %v4084_v17 = vunpack.c.l.bf16 %v4036_v33  ;;  %v5362_v33 = vld [vmem:[#allocation15 + $0xa0] sm:$0xff] }
 0x98f   :  { %v3914_v42 = vpop.f32.mrf.mxu2 }
 0x990   :  { %v3915_v35 = vadd.f32 %v7722_v19, %v3914_v42  ;;  %v4276_v38 = vadd.f32 %v7845_v8, %v4084_v17  ;;  %v4374_v10 = vmax.f32 %v7836_v3, %v4084_v17 }
 0x991   :  { %4548 = vmatpush.bf16.msrb.mxu3 %v5349_v37 }
 0x992   :  { %v3989_v29 = vmax.f32 %v3915_v35, 0.0 }
 0x994   :  { %v4037_v39 = vpack.c.bf16 %v3989_v29, %v3989_v29 }
 0x995   :  { %4549 = vmatpush.bf16.msrb.mxu3 %v5348_v57 }
 0x996   :  { %v4085_v40 = vunpack.c.l.bf16 %v4037_v39 }
 0x997   :  { %v3916_v31 = vpop.f32.mrf.mxu2 }
 0x998   :  { %v3917_v59 = vadd.f32 %v7722_v19, %v3916_v31  ;;  %v4375_v30 = vmax.f32 %v7839_v41, %v4085_v40  ;;  %v4277_v25 = vadd.f32 %v4276_v38, %v4085_v40  ;;  %v5372_v38 = vld [vmem:[#allocation16 + $0x30] sm:$0xff] }
 0x999   :  { %4550 = vmatpush.bf16.msrb.mxu3 %v5347_v14 }
 0x99a   :  { %v3990_v21 = vmax.f32 %v3917_v59, 0.0 }
 0x99c   :  { %v4038_v36 = vpack.c.bf16 %v3990_v21, %v3990_v21 }
 0x99d   :  { %4551 = vmatpush.bf16.msrb.mxu3 %v5346_v50 }
 0x99e   :  { %v4086_v16 = vunpack.c.l.bf16 %v4038_v36 }
 0x99f   :  { %v3919_v51 = vpop.f32.mrf.mxu2 }
 0x9a0   :  { %v3920_v15 = vadd.f32 %v7722_v19, %v3919_v51  ;;  %v4376_v32 = vmax.f32 %v7842_v13, %v4086_v16  ;;  %v4104_v13 = vshrl.u32 %v4103_v56, 7  ;;  %v4278_v24 = vadd.f32 %v4277_v25, %v4086_v16  ;;  %v5358_v56 = vld [vmem:[#allocation15 + $0x80] sm:$0xff]  ;;  %v5368_v25 = vld [vmem:[#allocation16 + $0x10] sm:$0xff] }
 0x9a1   :  { %4552 = vmatpush.bf16.msrb.mxu3 %v5345_v61 }
 0x9a2   :  { %v3991_v52 = vmax.f32 %v3920_v15, 0.0  ;;  %v4141_v1 = vadd.s32 296, %v4104_v13  ;;  %v5373_v13 = vld [vmem:[#allocation16 + $0x38] sm:$0xff] }
 0x9a4   :  { %v4039_v41 = vpack.c.bf16 %v3991_v52, %v3991_v52  ;;  %vm4189_vm0 = vcmp.lt.s32.totalorder %v4141_v1, 300  ;;  %v5366_v1 = vld [vmem:[#allocation16] sm:$0xff] }
 0x9a5   :  { %4553 = vmatpush.bf16.msrb.mxu3 %v5344_v55 }
 0x9a6   :  { %v4087_v42 = vunpack.c.l.bf16 %v4039_v41 }
 0x9a7   :  { %v3921_v49 = vpop.f32.mrf.mxu2 }
 0x9a8   :  { %v3922_v48 = vadd.f32 %v7722_v19, %v3921_v49  ;;  %v4279_v6 = vadd.f32 %v4278_v24, %v4087_v42  ;;  %v4377_v8 = vmax.f32 %v7847_v12, %v4087_v42  ;;  %v5381_v24 = vld [vmem:[#allocation18 + $0x38] sm:$0xff] }
 0x9a9   :  { %4554 = vmatpush.bf16.msrb.mxu3 %v5343_v18  ;;  %v5361_v18 = vld [vmem:[#allocation15 + $0x98] sm:$0xff] }
 0x9aa   :  { %v3992_v54 = vmax.f32 %v3922_v48, 0.0 }
 0x9ac   :  { %v4040_v47 = vpack.c.bf16 %v3992_v54, %v3992_v54 }
 0x9ad   :  { %4555 = vmatpush.bf16.msrb.mxu3 %v5342_v45 }
 0x9ae   :  { %v4088_v43 = vunpack.c.l.bf16 %v4040_v47  ;;  %v5371_v47 = vld [vmem:[#allocation16 + $0x28] sm:$0xff] }
 0x9af   :  { %v3924_v20 = vpop.f32.mrf.mxu2 }
 0x9b0   :  { %v3925_v60 = vadd.f32 %v7722_v19, %v3924_v20  ;;  %v4280_v57 = vadd.f32 %v4279_v6, %v4088_v43  ;;  %v4378_v35 = vmax.f32 %v4374_v10, %v4088_v43  ;;  %v5380_v43 = vld [vmem:[#allocation18 + $0x30] sm:$0xff]  ;;  %v5378_v6 = vld [vmem:[#allocation18 + $0x20] sm:$0xff] }
 0x9b2   :  { %v3993_v5 = vmax.f32 %v3925_v60, 0.0 }
 0x9b4   :  { %v4041_v27 = vpack.c.bf16 %v3993_v5, %v3993_v5 }
 0x9b6   :  { %v4089_v4 = vunpack.c.l.bf16 %v4041_v27 }
 0x9b7   :  { %v3926_v46 = vpop.f32.mrf.mxu2 }
 0x9b8   :  { %v3927_v22 = vadd.f32 %v7722_v19, %v3926_v46  ;;  %v4379_v53 = vmax.f32 %v4375_v30, %v4089_v4  ;;  %v4281_v20 = vadd.f32 %v4280_v57, %v4089_v4 }
 0x9ba   :  { %v3994_v58 = vmax.f32 %v3927_v22, 0.0 }
 0x9bc   :  { %v4042_v26 = vpack.c.bf16 %v3994_v58, %v3994_v58 }
 0x9be   :  { %v4090_v9 = vunpack.c.l.bf16 %v4042_v26  ;;  %v5364_v26 = vld [vmem:[#allocation15 + $0xb0] sm:$0xff] }
 0x9bf   :  { %v3929_v28 = vpop.f32.mrf.mxu2 }
 0x9c0   :  { %v4380_v34 = vmax.f32 %v4376_v32, %v4090_v9  ;;  %v3930_v23 = vadd.f32 %v7722_v19, %v3929_v28  ;;  %v4282_v29 = vadd.f32 %v4281_v20, %v4090_v9  ;;  %v5363_v32 = vld [vmem:[#allocation15 + $0xa8] sm:$0xff] }
 0x9c2   :  { %v4394_v0 = vmax.f32 %v4379_v53, %v4380_v34  ;;  %v3995_v63 = vmax.f32 %v3930_v23, 0.0  ;;  %v5360_v34 = vld [vmem:[#allocation15 + $0x90] sm:$0xff]  ;;  %v5359_v23 = vld [vmem:[#allocation15 + $0x88] sm:$0xff] }
 0x9c4   :  { %v4043_v44 = vpack.c.bf16 %v3995_v63, %v3995_v63 }
 0x9c6   :  { %v4091_v49 = vunpack.c.l.bf16 %v4043_v44  ;;  %v5367_v44 = vld [vmem:[#allocation16 + $0x8] sm:$0xff] }
 0x9c7   :  { %v3931_v2 = vpop.f32.mrf.mxu2 }
 0x9c8   :  { %v3932_v11 = vadd.f32 %v7722_v19, %v3931_v2  ;;  %v4381_v14 = vmax.f32 %v4377_v8, %v4091_v49  ;;  %v4283_v5 = vadd.f32 %v4282_v29, %v4091_v49  ;;  %v5370_v2 = vld [vmem:[#allocation16 + $0x20] sm:$0xff]  ;;  %v5377_v49 = vld [vmem:[#allocation18 + $0x18] sm:$0xff]  ;;  %v5376_v8 = vld [vmem:[#allocation18 + $0x10] sm:$0xff] }
 0x9ca   :  { %v3996_v31 = vmax.f32 %v3932_v11, 0.0  ;;  %v5369_v11 = vld [vmem:[#allocation16 + $0x18] sm:$0xff] }
 0x9cc   :  { %v4044_v51 = vpack.c.bf16 %v3996_v31, %v3996_v31 }
 0x9ce   :  { %v4092_v37 = vunpack.c.l.bf16 %v4044_v51  ;;  %v5379_v51 = vld [vmem:[#allocation18 + $0x28] sm:$0xff] }
 0x9cf   :  { %v3934_v59 = vpop.f32.mrf.mxu2 }
 0x9d0   :  { %v4338_v19 = vsel %vm4189_vm0, %v4092_v37, -inf  ;;  %v4237_v50 = vsel %vm4189_vm0, %v4092_v37, 0.0 }
 0x9d1   :  { %v4382_v60 = vmax.f32 %v4378_v35, %v4338_v19  ;;  %v4284_v36 = vadd.f32 %v4283_v5, %v4237_v50  ;;  %v5427_v35 = vld [vmem:[%s7890_s15] ss:$0 sm:$0xff] }
 0x9d2   :  { %v5374_v50 = vld [vmem:[#allocation18] sm:$0xff] }
 0x9d3   :  { %v4393_v21 = vmax.f32 %v4381_v14, %v4382_v60  ;;  %v4295_v61 = vrot.slane %v4284_v36, 4  ;;  %v5428_v5 = vld [vmem:[%s7892_s17] ss:$0 sm:$0xff] }
 0x9d5   :  { %v4395_v39 = vmax.f32 %v4393_v21, %v4394_v0  ;;  %v4296_v12 = vadd.f32 %v4295_v61, %v4284_v36  ;;  %v5375_v21 = vld [vmem:[#allocation18 + $0x8] sm:$0xff]  ;;  %v5429_v61 = vld [vmem:[%s7894_s19] ss:$0 sm:$0xff] }
 0x9d7   :  { %v4396_v3 = vrot.slane %v4395_v39, 4  ;;  %v3936_v7 = vpop.f32.mrf.mxu2  ;;  %v4297_v55 = vrot.slane %v4296_v12, 2 }
 0x9d9   :  { %v4397_v46 = vmax.f32 %v4395_v39, %v4396_v3  ;;  %v4298_v15 = vadd.f32 %v4297_v55, %v4296_v12 }
 0x9db   :  { %v4398_v27 = vrot.slane %v4397_v46, 2  ;;  %v4299_v9 = vrot.slane %v4298_v15, 1 }
 0x9dd   :  { %v4399_v22 = vmax.f32 %v4397_v46, %v4398_v27  ;;  %v4300_v48 = vadd.f32 %v4299_v9, %v4298_v15 }
 0x9df   :  { %v3939_v40 = vpop.f32.mrf.mxu2  ;;  %v4400_v16 = vrot.slane %v4399_v22, 1  ;;  %v4403_v53 = vpack.c.bf16 %v4300_v48, %v4300_v48  ;;  %v4402_v17 = vmul.f32 0.0033333334, %v4300_v48 }
 0x9e1   :  { %v4401_v58 = vmax.f32 %v4399_v22, %v4400_v16  ;;  %v4405_v54 = vpack.c.bf16 %v4402_v17, %v4402_v17 }
 0x9e3   :  { %v4404_v4 = vpack.c.bf16 %v4401_v58, %v4401_v58 }
 0x9e5   :  { %4495 = vmatmul.bf16.vlgmr.msra.gmra.mxu3 %v4404_v4 }
 0x9e6   :  { %4626 = vmatpush.bf16.msra.mxu3 %v5365_v62 }
 0x9e7   :  { %v3941_v30 = vpop.f32.mrf.mxu2 }
 0x9ea   :  { %4627 = vmatpush.bf16.msra.mxu3 %v5364_v26 }
 0x9ee   :  { %4628 = vmatpush.bf16.msra.mxu3 %v5363_v32 }
 0x9ef   :  { %v3944_v28 = vpop.f32.mrf.mxu2 }
 0x9f2   :  { %4629 = vmatpush.bf16.msra.mxu3 %v5362_v33 }
 0x9f5   :  { %4556 = vmatmul.bf16.vlgmr.msrb.gmra.mxu3 %v4403_v53 }
 0x9f6   :  { %4630 = vmatpush.bf16.msra.mxu3 %v5361_v18 }
 0x9f7   :  { %v3946_v52 = vpop.f32.mrf.mxu2 }
 0x9fa   :  { %4631 = vmatpush.bf16.msra.mxu3 %v5360_v34 }
 0x9fe   :  { %4632 = vmatpush.bf16.msra.mxu3 %v5359_v23 }
 0x9ff   :  { %v3949_v0 = vpop.f32.mrf.mxu2 }
 0xa02   :  { %4633 = vmatpush.bf16.msra.mxu3 %v5358_v56 }
 0xa05   :  { %4634 = vmatmul.bf16.vlgmr.msra.gmra.mxu3 %v4405_v54 }
 0xa06   :  { %4715 = vmatpush.bf16.msrb.mxu3 %v5373_v13 }
 0xa07   :  { %v3951_v45 = vpop.f32.mrf.mxu2 }
 0xa0a   :  { %4716 = vmatpush.bf16.msrb.mxu3 %v5372_v38 }
 0xa0e   :  { %4717 = vmatpush.bf16.msrb.mxu3 %v5371_v47 }
 0xa0f   :  { %v3954_v41 = vpop.f32.mrf.mxu2 }
 0xa12   :  { %4718 = vmatpush.bf16.msrb.mxu3 %v5370_v2 }
 0xa16   :  { %4719 = vmatpush.bf16.msrb.mxu3 %v5369_v11 }
 0xa17   :  { %v3956_v63 = vpop.f32.mrf.mxu2 }
 0xa1a   :  { %4720 = vmatpush.bf16.msrb.mxu3 %v5368_v25 }
 0xa1e   :  { %4721 = vmatpush.bf16.msrb.mxu3 %v5367_v44 }
 0xa22   :  { %4722 = vmatpush.bf16.msrb.mxu3 %v5366_v1 }
 0xa26   :  { %4798 = vmatpush.bf16.msra.mxu3 %v5381_v24 }
 0xa2a   :  { %4799 = vmatpush.bf16.msra.mxu3 %v5380_v43 }
 0xa2e   :  { %4800 = vmatpush.bf16.msra.mxu3 %v5379_v51 }
 0xa32   :  { %4801 = vmatpush.bf16.msra.mxu3 %v5378_v6 }
 0xa36   :  { %4802 = vmatpush.bf16.msra.mxu3 %v5377_v49 }
 0xa3a   :  { %4803 = vmatpush.bf16.msra.mxu3 %v5376_v8 }
 0xa3e   :  { %4804 = vmatpush.bf16.msra.mxu3 %v5375_v21 }
 0xa42   :  { %4805 = vmatpush.bf16.msra.mxu3 %v5374_v50 }
 0xa68   :  { %v4496_v42 = vpop.f32.mrf.mxu3 }
 0xa70   :  { %v4498_v31 = vpop.f32.mrf.mxu3 }
 0xa78   :  { %v4557_v10 = vpop.f32.mrf.mxu3 }
 0xa79   :  { %v4558_v57 = vadd.f32 %v4557_v10, %v4496_v42 }
 0xa80   :  { %v4559_v37 = vpop.f32.mrf.mxu3 }
 0xa88   :  { %v4635_v59 = vpop.f32.mrf.mxu3 }
 0xa89   :  { %v4639_v19 = vadd.f32 %v4635_v59, %v4558_v57 }
 0xa8b   :  { %v4644_v20 = vadd.f32 %v5427_v35, %v4639_v19 }
 0xa8d   :  { %v4645_v14 = vmax.f32 %v4644_v20, 0.0 }
 0xa8f   :  { %v4646_v60 = vpack.c.bf16 %v4645_v14, %v4645_v14 }
 0xa90   :  { %v4637_v29 = vpop.f32.mrf.mxu3 }
 0xa91   :  { %4723 = vmatmul.bf16.vlgmr.msrb.gmra.mxu3 %v4646_v60 }
 0xb14   :  { %v4724_v39 = vpop.f32.mrf.mxu3 }
 0xb15   :  { %v4725_v36 = vadd.f32 %v5428_v5, %v4724_v39 }
 0xb17   :  { %v4728_v3 = vmax.f32 %v4725_v36, 0.0 }
 0xb19   :  { %v4729_v7 = vpack.c.bf16 %v4728_v3, %v4728_v3 }
 0xb1b   :  { %4806 = vmatmul.bf16.vlgmr.msra.gmra.mxu3 %v4729_v7 }
 0xb1c   :  { %v4726_v46 = vpop.f32.mrf.mxu3 }
 0xb9e   :  { %v4807_v27 = vpop.f32.mrf.mxu3 }
 0xb9f   :  { %v4808_v22 = vadd.f32 %v5429_v61, %v4807_v27 }
 0xba1   :  { %4811 = vst [vmem:[%s8460_s8] sm:$0xff] %v4808_v22 }
 0xba6   :  { %v4809_v12 = vpop.f32.mrf.mxu3 }
 0xba7   :  { %4816 = vsyncpa [#allocation3], 1 }
 0xba8   :  { %4817 = vsyncpa [#allocation5], 1 }
 0xba9   :  { %4818 = vsyncpa [#allocation8], 1 }
 0xbaa   :  { %4819 = vsyncpa [#allocation11], 1 }
 0xbab   :  { %4820 = vsyncpa [#allocation14], 1 }
 0xbac   :  { %4821 = vsyncpa [#allocation17], 1 }

</bundles_post_ra>
